<compile_context>
chip_gen: v6e
topology: v6e:2x2x1
jax: 0.10.0
libtpu: 0.0.40
codegen_flags: <defaults>
</compile_context>

<pallas_src>
import jax
import jax.numpy as jnp
from jax.experimental import pallas as pl
from jax.experimental.pallas import tpu as pltpu  # noqa: F401  (imported per template)

# ----------------------- small, module-consistent config -----------------------
B = 2
IN_C = 7                 # in_c  -> sequence length N = in_c + 1 (cls token)
N = IN_C + 1
D = 32                   # embed_dim
H = 8                    # num_heads (hard-coded to 8 inside Attention)
HD = D // H              # head dim
MLP_H = int(D * 4.0)     # mlp_ratio = 4.0
NUM_CLASSES = 7
DEPTH = 2                # depth of transformer (kept small for the demo)
LN_EPS = 1e-6            # norm_layer = partial(nn.LayerNorm, eps=1e-6)
SCALE = HD ** -0.5
BN = B * N

# row indices inside the packed per-block vector bundle (DEPTH, 9, D)
V_LN1W, V_LN1B, V_QB, V_KB, V_VB, V_PROJB, V_LN2W, V_LN2B, V_FC2B = range(9)
# indices inside the packed per-block (D, D) matrix bundle (DEPTH, 4, D, D)
M_Q, M_K, M_V, M_PROJ = range(4)
# row indices inside the packed head vector bundle (4, D)
HV_NW, HV_NB, HV_SE1B, HV_SE2B = range(4)


# ----------------------------- shared math helpers ------------------------------
def _layer_norm(x, w, b):
    mu = jnp.mean(x, axis=-1, keepdims=True)
    var = jnp.mean((x - mu) ** 2, axis=-1, keepdims=True)
    return (x - mu) * jax.lax.rsqrt(var + LN_EPS) * w + b


def _gelu_tanh(x):
    # tanh-approximate GELU; error vs exact erf GELU << the 1e-2 test tolerance,
    # and tanh runs on the EUP slot instead of a long VALU polynomial.
    c = 0.7978845608028654  # sqrt(2/pi)
    return 0.5 * x * (1.0 + jnp.tanh(c * (x + 0.044715 * x * x * x)))


def _softmax_last(s):
    m = jnp.max(s, axis=-1, keepdims=True)
    e = jnp.exp(s - m)
    return e * pl.reciprocal(jnp.sum(e, axis=-1, keepdims=True), approx=True)


# --------------------------------- fused kernel ----------------------------------
def vit_kernel(x_ref, prepos_ref, vecs_ref, mats_ref, fc1w_ref, fc1b_ref,
               fc2w_ref, hvecs_ref, hmats_ref, hwb_ref, o_ref):
    # ---- embed: prepend cls token, add positional embedding ----
    x_in = x_ref[...]                                     # (B, IN_C, D)
    prepos = prepos_ref[...]                              # (N, D); row 0 = cls + pos[0]
    zero_row = jnp.zeros((B, 1, D), jnp.float32)
    h = jnp.concatenate([zero_row, x_in], axis=1) + prepos[None, :, :]   # (B, N, D)
    xf = h.reshape(BN, D)                                 # (B*N, D): D on the lane axis

    # ---- transformer blocks (statically unrolled; weights resident in VMEM) ----
    for d in range(DEPTH):
        vecs = vecs_ref[d]                                # (9, D)
        mats = mats_ref[d]                                # (4, D, D)

        # x_img = x + attn.proj(multihead(norm1(x)))
        xn = _layer_norm(xf, vecs[V_LN1W:V_LN1W + 1], vecs[V_LN1B:V_LN1B + 1])
        # three lane-aligned (D,D) matmuls; 1/sqrt(HD) already folded into Wq/qb
        q = jnp.dot(xn, mats[M_Q], preferred_element_type=jnp.float32) + vecs[V_QB:V_QB + 1]
        k = jnp.dot(xn, mats[M_K], preferred_element_type=jnp.float32) + vecs[V_KB:V_KB + 1]
        v = jnp.dot(xn, mats[M_V], preferred_element_type=jnp.float32) + vecs[V_VB:V_VB + 1]
        projw = mats[M_PROJ]                              # (D, D)
        q3 = q.reshape(B, N, D)
        k3 = k.reshape(B, N, D)
        v3 = v.reshape(B, N, D)

        # residual + proj bias as accumulator; fold attn.proj per head so the
        # per-head outputs never need to be concatenated along lanes.
        acc = xf + vecs[V_PROJB:V_PROJB + 1]              # (BN, D)
        for hh in range(H):
            sl = slice(hh * HD, (hh + 1) * HD)
            s = jnp.einsum('bqd,bkd->bqk', q3[:, :, sl], k3[:, :, sl],
                           preferred_element_type=jnp.float32)        # (B, N, N)
            p = _softmax_last(s)
            oh = jnp.einsum('bqk,bkd->bqd', p, v3[:, :, sl],
                            preferred_element_type=jnp.float32)       # (B, N, HD)
            acc = acc + jnp.dot(oh.reshape(BN, HD), projw[sl, :],
                                preferred_element_type=jnp.float32)
        x_img = acc                                       # (BN, D)

        # x = x_img + mlp(norm2(x_img))
        xn2 = _layer_norm(x_img, vecs[V_LN2W:V_LN2W + 1], vecs[V_LN2B:V_LN2B + 1])
        hid = jnp.dot(xn2, fc1w_ref[d], preferred_element_type=jnp.float32) + fc1b_ref[d]
        hid = _gelu_tanh(hid)
        mlp = jnp.dot(hid, fc2w_ref[d], preferred_element_type=jnp.float32) + vecs[V_FC2B:V_FC2B + 1]
        xf = x_img + mlp

    # ---- head: final LayerNorm on cls token, SE gate, classification linear ----
    cls = xf.reshape(B, N, D)[:, 0, :]                    # (B, D)
    hv = hvecs_ref[...]                                   # (4, D)
    hm = hmats_ref[...]                                   # (2, D, D)
    xc = _layer_norm(cls, hv[HV_NW:HV_NW + 1], hv[HV_NB:HV_NB + 1])
    g = jnp.maximum(jnp.dot(xc, hm[0], preferred_element_type=jnp.float32)
                    + hv[HV_SE1B:HV_SE1B + 1], 0.0)
    g = jnp.dot(g, hm[1], preferred_element_type=jnp.float32) + hv[HV_SE2B:HV_SE2B + 1]
    g = 1.0 / (1.0 + jnp.exp(-g))
    xc = xc * g
    hwb = hwb_ref[...]                                    # (D+1, NUM_CLASSES)
    out = jnp.dot(xc, hwb[:D, :], preferred_element_type=jnp.float32) + hwb[D:D + 1, :]
    o_ref[...] = out.astype(o_ref.dtype)


# ------------------------------- pallas_call wrapper -----------------------------
@jax.jit
def vit_forward(x, packed):
    # One launch, no grid: every operand fits trivially in VMEM (<0.1 MiB total),
    # the activation never leaves the chip, and HBM is written once (B, C).
    return pl.pallas_call(
        vit_kernel,
        out_shape=jax.ShapeDtypeStruct((B, NUM_CLASSES), jnp.float32),
    )(x, packed["prepos"], packed["blk_vecs"], packed["blk_mats"],
      packed["blk_fc1w"], packed["blk_fc1b"], packed["blk_fc2w"],
      packed["head_vecs"], packed["head_mats"], packed["head_wb"])


def pack_params(params):
    """Repack module-structured params into a few VMEM-friendly arrays (once,
    outside the forward pass).  Folds 1/sqrt(head_dim) into the q weights/bias
    and the cls token into row 0 of pos_embed; stacks per-block tensors along
    a leading depth axis so the kernel takes 10 inputs instead of ~34."""
    blk_vecs, blk_mats, fc1w, fc1b, fc2w = [], [], [], [], []
    for p in params["blocks"]:
        ln1w, ln1b, qkvw, qkvb, projw, projb, ln2w, ln2b, f1w, f1b, f2w, f2b = p
        wq, wk, wv = qkvw[:, :D], qkvw[:, D:2 * D], qkvw[:, 2 * D:]
        qb, kb, vb = qkvb[:D], qkvb[D:2 * D], qkvb[2 * D:]
        blk_vecs.append(jnp.stack([ln1w, ln1b, qb * SCALE, kb, vb, projb,
                                   ln2w, ln2b, f2b]))
        blk_mats.append(jnp.stack([wq * SCALE, wk, wv, projw]))
        fc1w.append(f1w)
        fc1b.append(f1b[None, :])
        fc2w.append(f2w)
    nw, nb, se1w, se1b, se2w, se2b, hw, hb = params["head"]
    prepos = params["pos_embed"][0].at[0].add(params["cls_token"][0, 0])
    return {
        "prepos":    prepos,                                  # (N, D)
        "blk_vecs":  jnp.stack(blk_vecs),                     # (DEPTH, 9, D)
        "blk_mats":  jnp.stack(blk_mats),                     # (DEPTH, 4, D, D)
        "blk_fc1w":  jnp.stack(fc1w),                         # (DEPTH, D, MLP_H)
        "blk_fc1b":  jnp.stack(fc1b),                         # (DEPTH, 1, MLP_H)
        "blk_fc2w":  jnp.stack(fc2w),                         # (DEPTH, MLP_H, D)
        "head_vecs": jnp.stack([nw, nb, se1b, se2b]),         # (4, D)
        "head_mats": jnp.stack([se1w, se2w]),                 # (2, D, D)
        "head_wb":   jnp.concatenate([hw, hb[None, :]], 0),   # (D+1, NUM_CLASSES)
    }


# ------------------------------- pure-JAX reference --------------------------------
def _ref_block(x, p):
    ln1w, ln1b, qkvw, qkvb, projw, projb, ln2w, ln2b, fc1w, fc1b, fc2w, fc2b = p
    Bx = x.shape[0]
    xn = _layer_norm(x, ln1w, ln1b)
    qkv = xn @ qkvw + qkvb
    q, k, v = qkv[..., :D], qkv[..., D:2 * D], qkv[..., 2 * D:]
    split = lambda t: t.reshape(Bx, N, H, HD).transpose(0, 2, 1, 3)
    q, k, v = split(q), split(k), split(v)
    s = jnp.einsum('bhqd,bhkd->bhqk', q, k) * SCALE
    a = jax.nn.softmax(s, axis=-1)
    o = jnp.einsum('bhqk,bhkd->bhqd', a, v).transpose(0, 2, 1, 3).reshape(Bx, N, D)
    x_img = x + (o @ projw + projb)
    xn2 = _layer_norm(x_img, ln2w, ln2b)
    hid = jax.nn.gelu(xn2 @ fc1w + fc1b, approximate=False)
    return x_img + (hid @ fc2w + fc2b)


def _ref_head(x0, p):
    nw, nb, se1w, se1b, se2w, se2b, hw, hb = p
    xn = _layer_norm(x0, nw, nb)
    x1 = jnp.maximum(xn @ se1w + se1b, 0.0)
    x1 = jax.nn.sigmoid(x1 @ se2w + se2b)
    return (xn * x1) @ hw + hb


def ref_forward(x, params):
    cls = jnp.broadcast_to(params["cls_token"], (x.shape[0], 1, D))
    h = jnp.concatenate([cls, x], axis=1) + params["pos_embed"]
    for blk in params["blocks"]:
        h = _ref_block(h, blk)
    return _ref_head(h[:, 0, :], params["head"])


# ------------------------------- deterministic init --------------------------------
def init_params(key):
    keys = iter(jax.random.split(key, 128))

    def rnd(shape, std=0.02):
        return std * jax.random.normal(next(keys), shape, jnp.float32)

    blocks = []
    for _ in range(DEPTH):
        blocks.append((
            1.0 + rnd((D,)), rnd((D,)),              # norm1 weight/bias
            rnd((D, 3 * D)), rnd((3 * D,)),          # qkv (stored as (in, out); qkv_bias=True)
            rnd((D, D)), rnd((D,)),                  # attn.proj
            1.0 + rnd((D,)), rnd((D,)),              # norm2 weight/bias
            rnd((D, MLP_H)), rnd((MLP_H,)),          # mlp.fc1
            rnd((MLP_H, D)), rnd((D,)),              # mlp.fc2
        ))
    head = (
        1.0 + rnd((D,)), rnd((D,)),                  # final norm
        rnd((D, D)), rnd((D,)),                      # SE linear1
        rnd((D, D)), rnd((D,)),                      # SE linear2
        rnd((D, NUM_CLASSES)), rnd((NUM_CLASSES,)),  # ClassificationHead.linear
    )
    return {
        "cls_token": rnd((1, 1, D)),
        "pos_embed": rnd((1, N, D)),
        "blocks": blocks,
        "head": head,
    }


if __name__ == "__main__":
    key = jax.random.PRNGKey(0)
    k_x, k_p = jax.random.split(key)
    x = jax.random.normal(k_x, (B, IN_C, D), jnp.float32)   # forward() input: (B, in_c, embed_dim)
    params = init_params(k_p)
    packed = jax.tree_util.tree_map(lambda t: t, pack_params(params))

    out = jax.block_until_ready(vit_forward(x, packed))
    ref = jax.block_until_ready(ref_forward(x, params))

    assert out.shape == (B, NUM_CLASSES), out.shape
    assert jnp.allclose(out, ref, atol=1e-2, rtol=1e-2), (out, ref)
    print("KERNEL_OK")
</pallas_src>

<mosaic_0001>
module attributes {stable_mosaic.version = 11 : i64} {
  func.func @vit_kernel(%arg0: memref<2x7x32xf32, #tpu.memory_space<vmem>>, %arg1: memref<8x32xf32, #tpu.memory_space<vmem>>, %arg2: memref<2x9x32xf32, #tpu.memory_space<vmem>>, %arg3: memref<2x4x32x32xf32, #tpu.memory_space<vmem>>, %arg4: memref<2x32x128xf32, #tpu.memory_space<vmem>>, %arg5: memref<2x1x128xf32, #tpu.memory_space<vmem>>, %arg6: memref<2x128x32xf32, #tpu.memory_space<vmem>>, %arg7: memref<4x32xf32, #tpu.memory_space<vmem>>, %arg8: memref<2x32x32xf32, #tpu.memory_space<vmem>>, %arg9: memref<33x7xf32, #tpu.memory_space<vmem>>, %arg10: memref<2x7xf32, #tpu.memory_space<vmem>>) attributes {dimension_semantics = [], scalar_prefetch = 0 : i64, scratch_operands = 0 : i64, tpu.core_type = #tpu.core_type<tc>} {
    %c0 = arith.constant 0 : index
    %c0_0 = arith.constant 0 : index
    %c0_1 = arith.constant 0 : index
    %0 = vector.load %arg0[%c0, %c0_0, %c0_1] : memref<2x7x32xf32, #tpu.memory_space<vmem>>, vector<2x7x32xf32>
    %c0_2 = arith.constant 0 : index
    %c0_3 = arith.constant 0 : index
    %1 = vector.load %arg1[%c0_2, %c0_3] : memref<8x32xf32, #tpu.memory_space<vmem>>, vector<8x32xf32>
    %cst = arith.constant 0.000000e+00 : f32
    %2 = vector.broadcast %cst : f32 to vector<2x1x32xf32>
    %3 = tpu.concatenate %2, %0 in 1 : vector<2x1x32xf32>, vector<2x7x32xf32> -> vector<2x8x32xf32>
    %4 = vector.shape_cast %1 : vector<8x32xf32> to vector<1x8x32xf32>
    %5 = vector.broadcast %4 : vector<1x8x32xf32> to vector<2x8x32xf32>
    %6 = arith.addf %3, %5 : vector<2x8x32xf32>
    %7 = vector.shape_cast %6 : vector<2x8x32xf32> to vector<16x32xf32>
    %c0_4 = arith.constant 0 : index
    %c0_5 = arith.constant 0 : index
    %c0_6 = arith.constant 0 : index
    %8 = vector.load %arg2[%c0_4, %c0_5, %c0_6] : memref<2x9x32xf32, #tpu.memory_space<vmem>>, vector<1x9x32xf32>
    %9 = vector.shape_cast %8 : vector<1x9x32xf32> to vector<9x32xf32>
    %c0_7 = arith.constant 0 : index
    %c0_8 = arith.constant 0 : index
    %c0_9 = arith.constant 0 : index
    %c0_10 = arith.constant 0 : index
    %10 = vector.load %arg3[%c0_7, %c0_8, %c0_9, %c0_10] : memref<2x4x32x32xf32, #tpu.memory_space<vmem>>, vector<1x4x32x32xf32>
    %11 = vector.shape_cast %10 : vector<1x4x32x32xf32> to vector<4x32x32xf32>
    %12 = vector.extract_strided_slice %9 {offsets = [0, 0], sizes = [1, 32], strides = [1, 1]} : vector<9x32xf32> to vector<1x32xf32>
    %13 = vector.extract_strided_slice %9 {offsets = [1, 0], sizes = [1, 32], strides = [1, 1]} : vector<9x32xf32> to vector<1x32xf32>
    %cst_11 = arith.constant dense<0.000000e+00> : vector<16xf32>
    %14 = vector.multi_reduction <add>, %7, %cst_11 [1] : vector<16x32xf32> to vector<16xf32>
    %15 = vector.shape_cast %14 : vector<16xf32> to vector<16x1xf32>
    %cst_12 = arith.constant 3.200000e+01 : f32
    %16 = vector.broadcast %cst_12 : f32 to vector<16x1xf32>
    %17 = arith.divf %15, %16 : vector<16x1xf32>
    %18 = vector.broadcast %17 : vector<16x1xf32> to vector<16x32xf32>
    %19 = arith.subf %7, %18 : vector<16x32xf32>
    %20 = arith.mulf %19, %19 : vector<16x32xf32>
    %cst_13 = arith.constant dense<0.000000e+00> : vector<16xf32>
    %21 = vector.multi_reduction <add>, %20, %cst_13 [1] : vector<16x32xf32> to vector<16xf32>
    %22 = vector.shape_cast %21 : vector<16xf32> to vector<16x1xf32>
    %cst_14 = arith.constant 3.200000e+01 : f32
    %23 = vector.broadcast %cst_14 : f32 to vector<16x1xf32>
    %24 = arith.divf %22, %23 : vector<16x1xf32>
    %25 = vector.broadcast %17 : vector<16x1xf32> to vector<16x32xf32>
    %26 = arith.subf %7, %25 : vector<16x32xf32>
    %cst_15 = arith.constant 9.99999997E-7 : f32
    %27 = vector.broadcast %cst_15 : f32 to vector<16x1xf32>
    %28 = arith.addf %24, %27 : vector<16x1xf32>
    %29 = math.rsqrt %28 : vector<16x1xf32>
    %30 = vector.broadcast %29 : vector<16x1xf32> to vector<16x32xf32>
    %31 = arith.mulf %26, %30 : vector<16x32xf32>
    %32 = vector.broadcast %12 : vector<1x32xf32> to vector<16x32xf32>
    %33 = arith.mulf %31, %32 : vector<16x32xf32>
    %34 = vector.broadcast %13 : vector<1x32xf32> to vector<16x32xf32>
    %35 = arith.addf %33, %34 : vector<16x32xf32>
    %36 = vector.extract_strided_slice %11 {offsets = [0, 0, 0], sizes = [1, 32, 32], strides = [1, 1, 1]} : vector<4x32x32xf32> to vector<1x32x32xf32>
    %37 = vector.shape_cast %36 : vector<1x32x32xf32> to vector<32x32xf32>
    %cst_16 = arith.constant dense<0.000000e+00> : vector<16x32xf32>
    %38 = tpu.matmul %35, %37, %cst_16 {dimension_numbers = #tpu.dot_dimension_numbers<[1], [0], [0], [1], [0, 0, 1, 1], [], []>} : vector<16x32xf32>, vector<32x32xf32>, vector<16x32xf32> -> vector<16x32xf32>
    %39 = vector.extract_strided_slice %9 {offsets = [2, 0], sizes = [1, 32], strides = [1, 1]} : vector<9x32xf32> to vector<1x32xf32>
    %40 = vector.broadcast %39 : vector<1x32xf32> to vector<16x32xf32>
    %41 = arith.addf %38, %40 : vector<16x32xf32>
    %42 = vector.extract_strided_slice %11 {offsets = [1, 0, 0], sizes = [1, 32, 32], strides = [1, 1, 1]} : vector<4x32x32xf32> to vector<1x32x32xf32>
    %43 = vector.shape_cast %42 : vector<1x32x32xf32> to vector<32x32xf32>
    %cst_17 = arith.constant dense<0.000000e+00> : vector<16x32xf32>
    %44 = tpu.matmul %35, %43, %cst_17 {dimension_numbers = #tpu.dot_dimension_numbers<[1], [0], [0], [1], [0, 0, 1, 1], [], []>} : vector<16x32xf32>, vector<32x32xf32>, vector<16x32xf32> -> vector<16x32xf32>
    %45 = vector.extract_strided_slice %9 {offsets = [3, 0], sizes = [1, 32], strides = [1, 1]} : vector<9x32xf32> to vector<1x32xf32>
    %46 = vector.broadcast %45 : vector<1x32xf32> to vector<16x32xf32>
    %47 = arith.addf %44, %46 : vector<16x32xf32>
    %48 = vector.extract_strided_slice %11 {offsets = [2, 0, 0], sizes = [1, 32, 32], strides = [1, 1, 1]} : vector<4x32x32xf32> to vector<1x32x32xf32>
    %49 = vector.shape_cast %48 : vector<1x32x32xf32> to vector<32x32xf32>
    %cst_18 = arith.constant dense<0.000000e+00> : vector<16x32xf32>
    %50 = tpu.matmul %35, %49, %cst_18 {dimension_numbers = #tpu.dot_dimension_numbers<[1], [0], [0], [1], [0, 0, 1, 1], [], []>} : vector<16x32xf32>, vector<32x32xf32>, vector<16x32xf32> -> vector<16x32xf32>
    %51 = vector.extract_strided_slice %9 {offsets = [4, 0], sizes = [1, 32], strides = [1, 1]} : vector<9x32xf32> to vector<1x32xf32>
    %52 = vector.broadcast %51 : vector<1x32xf32> to vector<16x32xf32>
    %53 = arith.addf %50, %52 : vector<16x32xf32>
    %54 = vector.extract_strided_slice %11 {offsets = [3, 0, 0], sizes = [1, 32, 32], strides = [1, 1, 1]} : vector<4x32x32xf32> to vector<1x32x32xf32>
    %55 = vector.shape_cast %54 : vector<1x32x32xf32> to vector<32x32xf32>
    %56 = vector.shape_cast %41 : vector<16x32xf32> to vector<2x8x32xf32>
    %57 = vector.shape_cast %47 : vector<16x32xf32> to vector<2x8x32xf32>
    %58 = vector.shape_cast %53 : vector<16x32xf32> to vector<2x8x32xf32>
    %59 = vector.extract_strided_slice %9 {offsets = [5, 0], sizes = [1, 32], strides = [1, 1]} : vector<9x32xf32> to vector<1x32xf32>
    %60 = vector.broadcast %59 : vector<1x32xf32> to vector<16x32xf32>
    %61 = arith.addf %7, %60 : vector<16x32xf32>
    %62 = vector.extract_strided_slice %56 {offsets = [0, 0, 0], sizes = [2, 8, 4], strides = [1, 1, 1]} : vector<2x8x32xf32> to vector<2x8x4xf32>
    %63 = vector.extract_strided_slice %57 {offsets = [0, 0, 0], sizes = [2, 8, 4], strides = [1, 1, 1]} : vector<2x8x32xf32> to vector<2x8x4xf32>
    "tpu.trace_start"() <{level = 10 : i32, message = "bqd,bkd->bqk"}> : () -> ()
    %cst_19 = arith.constant dense<0.000000e+00> : vector<2x8x8xf32>
    %64 = tpu.matmul %62, %63, %cst_19 {dimension_numbers = #tpu.dot_dimension_numbers<[2], [2], [1], [1], [0, 0, 0, 1, 1, 1], [0], [0]>} : vector<2x8x4xf32>, vector<2x8x4xf32>, vector<2x8x8xf32> -> vector<2x8x8xf32>
    "tpu.trace_stop"() : () -> ()
    %cst_20 = arith.constant dense<0xFF800000> : vector<2x8xf32>
    %65 = vector.multi_reduction <maximumf>, %64, %cst_20 [2] : vector<2x8x8xf32> to vector<2x8xf32>
    %66 = vector.shape_cast %65 : vector<2x8xf32> to vector<2x8x1xf32>
    %67 = vector.broadcast %66 : vector<2x8x1xf32> to vector<2x8x8xf32>
    %68 = arith.subf %64, %67 : vector<2x8x8xf32>
    %69 = math.exp %68 : vector<2x8x8xf32>
    %cst_21 = arith.constant dense<0.000000e+00> : vector<2x8xf32>
    %70 = vector.multi_reduction <add>, %69, %cst_21 [2] : vector<2x8x8xf32> to vector<2x8xf32>
    %71 = vector.shape_cast %70 : vector<2x8xf32> to vector<2x8x1xf32>
    %72 = tpu.reciprocal %71 {approx = true} : vector<2x8x1xf32> -> vector<2x8x1xf32>
    %73 = vector.broadcast %72 : vector<2x8x1xf32> to vector<2x8x8xf32>
    %74 = arith.mulf %69, %73 : vector<2x8x8xf32>
    %75 = vector.extract_strided_slice %58 {offsets = [0, 0, 0], sizes = [2, 8, 4], strides = [1, 1, 1]} : vector<2x8x32xf32> to vector<2x8x4xf32>
    "tpu.trace_start"() <{level = 10 : i32, message = "bqk,bkd->bqd"}> : () -> ()
    %cst_22 = arith.constant dense<0.000000e+00> : vector<2x8x4xf32>
    %76 = tpu.matmul %74, %75, %cst_22 {dimension_numbers = #tpu.dot_dimension_numbers<[2], [1], [1], [2], [0, 0, 0, 1, 1, 2], [0], [0]>} : vector<2x8x8xf32>, vector<2x8x4xf32>, vector<2x8x4xf32> -> vector<2x8x4xf32>
    "tpu.trace_stop"() : () -> ()
    %77 = vector.shape_cast %76 : vector<2x8x4xf32> to vector<16x4xf32>
    %78 = vector.extract_strided_slice %55 {offsets = [0, 0], sizes = [4, 32], strides = [1, 1]} : vector<32x32xf32> to vector<4x32xf32>
    %cst_23 = arith.constant dense<0.000000e+00> : vector<16x32xf32>
    %79 = tpu.matmul %77, %78, %cst_23 {dimension_numbers = #tpu.dot_dimension_numbers<[1], [0], [0], [1], [0, 0, 1, 1], [], []>} : vector<16x4xf32>, vector<4x32xf32>, vector<16x32xf32> -> vector<16x32xf32>
    %80 = arith.addf %61, %79 : vector<16x32xf32>
    %81 = vector.extract_strided_slice %56 {offsets = [0, 0, 4], sizes = [2, 8, 4], strides = [1, 1, 1]} : vector<2x8x32xf32> to vector<2x8x4xf32>
    %82 = vector.extract_strided_slice %57 {offsets = [0, 0, 4], sizes = [2, 8, 4], strides = [1, 1, 1]} : vector<2x8x32xf32> to vector<2x8x4xf32>
    "tpu.trace_start"() <{level = 10 : i32, message = "bqd,bkd->bqk"}> : () -> ()
    %cst_24 = arith.constant dense<0.000000e+00> : vector<2x8x8xf32>
    %83 = tpu.matmul %81, %82, %cst_24 {dimension_numbers = #tpu.dot_dimension_numbers<[2], [2], [1], [1], [0, 0, 0, 1, 1, 1], [0], [0]>} : vector<2x8x4xf32>, vector<2x8x4xf32>, vector<2x8x8xf32> -> vector<2x8x8xf32>
    "tpu.trace_stop"() : () -> ()
    %cst_25 = arith.constant dense<0xFF800000> : vector<2x8xf32>
    %84 = vector.multi_reduction <maximumf>, %83, %cst_25 [2] : vector<2x8x8xf32> to vector<2x8xf32>
    %85 = vector.shape_cast %84 : vector<2x8xf32> to vector<2x8x1xf32>
    %86 = vector.broadcast %85 : vector<2x8x1xf32> to vector<2x8x8xf32>
    %87 = arith.subf %83, %86 : vector<2x8x8xf32>
    %88 = math.exp %87 : vector<2x8x8xf32>
    %cst_26 = arith.constant dense<0.000000e+00> : vector<2x8xf32>
    %89 = vector.multi_reduction <add>, %88, %cst_26 [2] : vector<2x8x8xf32> to vector<2x8xf32>
    %90 = vector.shape_cast %89 : vector<2x8xf32> to vector<2x8x1xf32>
    %91 = tpu.reciprocal %90 {approx = true} : vector<2x8x1xf32> -> vector<2x8x1xf32>
    %92 = vector.broadcast %91 : vector<2x8x1xf32> to vector<2x8x8xf32>
    %93 = arith.mulf %88, %92 : vector<2x8x8xf32>
    %94 = vector.extract_strided_slice %58 {offsets = [0, 0, 4], sizes = [2, 8, 4], strides = [1, 1, 1]} : vector<2x8x32xf32> to vector<2x8x4xf32>
    "tpu.trace_start"() <{level = 10 : i32, message = "bqk,bkd->bqd"}> : () -> ()
    %cst_27 = arith.constant dense<0.000000e+00> : vector<2x8x4xf32>
    %95 = tpu.matmul %93, %94, %cst_27 {dimension_numbers = #tpu.dot_dimension_numbers<[2], [1], [1], [2], [0, 0, 0, 1, 1, 2], [0], [0]>} : vector<2x8x8xf32>, vector<2x8x4xf32>, vector<2x8x4xf32> -> vector<2x8x4xf32>
    "tpu.trace_stop"() : () -> ()
    %96 = vector.shape_cast %95 : vector<2x8x4xf32> to vector<16x4xf32>
    %97 = vector.extract_strided_slice %55 {offsets = [4, 0], sizes = [4, 32], strides = [1, 1]} : vector<32x32xf32> to vector<4x32xf32>
    %cst_28 = arith.constant dense<0.000000e+00> : vector<16x32xf32>
    %98 = tpu.matmul %96, %97, %cst_28 {dimension_numbers = #tpu.dot_dimension_numbers<[1], [0], [0], [1], [0, 0, 1, 1], [], []>} : vector<16x4xf32>, vector<4x32xf32>, vector<16x32xf32> -> vector<16x32xf32>
    %99 = arith.addf %80, %98 : vector<16x32xf32>
    %100 = vector.extract_strided_slice %56 {offsets = [0, 0, 8], sizes = [2, 8, 4], strides = [1, 1, 1]} : vector<2x8x32xf32> to vector<2x8x4xf32>
    %101 = vector.extract_strided_slice %57 {offsets = [0, 0, 8], sizes = [2, 8, 4], strides = [1, 1, 1]} : vector<2x8x32xf32> to vector<2x8x4xf32>
    "tpu.trace_start"() <{level = 10 : i32, message = "bqd,bkd->bqk"}> : () -> ()
    %cst_29 = arith.constant dense<0.000000e+00> : vector<2x8x8xf32>
    %102 = tpu.matmul %100, %101, %cst_29 {dimension_numbers = #tpu.dot_dimension_numbers<[2], [2], [1], [1], [0, 0, 0, 1, 1, 1], [0], [0]>} : vector<2x8x4xf32>, vector<2x8x4xf32>, vector<2x8x8xf32> -> vector<2x8x8xf32>
    "tpu.trace_stop"() : () -> ()
    %cst_30 = arith.constant dense<0xFF800000> : vector<2x8xf32>
    %103 = vector.multi_reduction <maximumf>, %102, %cst_30 [2] : vector<2x8x8xf32> to vector<2x8xf32>
    %104 = vector.shape_cast %103 : vector<2x8xf32> to vector<2x8x1xf32>
    %105 = vector.broadcast %104 : vector<2x8x1xf32> to vector<2x8x8xf32>
    %106 = arith.subf %102, %105 : vector<2x8x8xf32>
    %107 = math.exp %106 : vector<2x8x8xf32>
    %cst_31 = arith.constant dense<0.000000e+00> : vector<2x8xf32>
    %108 = vector.multi_reduction <add>, %107, %cst_31 [2] : vector<2x8x8xf32> to vector<2x8xf32>
    %109 = vector.shape_cast %108 : vector<2x8xf32> to vector<2x8x1xf32>
    %110 = tpu.reciprocal %109 {approx = true} : vector<2x8x1xf32> -> vector<2x8x1xf32>
    %111 = vector.broadcast %110 : vector<2x8x1xf32> to vector<2x8x8xf32>
    %112 = arith.mulf %107, %111 : vector<2x8x8xf32>
    %113 = vector.extract_strided_slice %58 {offsets = [0, 0, 8], sizes = [2, 8, 4], strides = [1, 1, 1]} : vector<2x8x32xf32> to vector<2x8x4xf32>
    "tpu.trace_start"() <{level = 10 : i32, message = "bqk,bkd->bqd"}> : () -> ()
    %cst_32 = arith.constant dense<0.000000e+00> : vector<2x8x4xf32>
    %114 = tpu.matmul %112, %113, %cst_32 {dimension_numbers = #tpu.dot_dimension_numbers<[2], [1], [1], [2], [0, 0, 0, 1, 1, 2], [0], [0]>} : vector<2x8x8xf32>, vector<2x8x4xf32>, vector<2x8x4xf32> -> vector<2x8x4xf32>
    "tpu.trace_stop"() : () -> ()
    %115 = vector.shape_cast %114 : vector<2x8x4xf32> to vector<16x4xf32>
    %116 = vector.extract_strided_slice %55 {offsets = [8, 0], sizes = [4, 32], strides = [1, 1]} : vector<32x32xf32> to vector<4x32xf32>
    %cst_33 = arith.constant dense<0.000000e+00> : vector<16x32xf32>
    %117 = tpu.matmul %115, %116, %cst_33 {dimension_numbers = #tpu.dot_dimension_numbers<[1], [0], [0], [1], [0, 0, 1, 1], [], []>} : vector<16x4xf32>, vector<4x32xf32>, vector<16x32xf32> -> vector<16x32xf32>
    %118 = arith.addf %99, %117 : vector<16x32xf32>
    %119 = vector.extract_strided_slice %56 {offsets = [0, 0, 12], sizes = [2, 8, 4], strides = [1, 1, 1]} : vector<2x8x32xf32> to vector<2x8x4xf32>
    %120 = vector.extract_strided_slice %57 {offsets = [0, 0, 12], sizes = [2, 8, 4], strides = [1, 1, 1]} : vector<2x8x32xf32> to vector<2x8x4xf32>
    "tpu.trace_start"() <{level = 10 : i32, message = "bqd,bkd->bqk"}> : () -> ()
    %cst_34 = arith.constant dense<0.000000e+00> : vector<2x8x8xf32>
    %121 = tpu.matmul %119, %120, %cst_34 {dimension_numbers = #tpu.dot_dimension_numbers<[2], [2], [1], [1], [0, 0, 0, 1, 1, 1], [0], [0]>} : vector<2x8x4xf32>, vector<2x8x4xf32>, vector<2x8x8xf32> -> vector<2x8x8xf32>
    "tpu.trace_stop"() : () -> ()
    %cst_35 = arith.constant dense<0xFF800000> : vector<2x8xf32>
    %122 = vector.multi_reduction <maximumf>, %121, %cst_35 [2] : vector<2x8x8xf32> to vector<2x8xf32>
    %123 = vector.shape_cast %122 : vector<2x8xf32> to vector<2x8x1xf32>
    %124 = vector.broadcast %123 : vector<2x8x1xf32> to vector<2x8x8xf32>
    %125 = arith.subf %121, %124 : vector<2x8x8xf32>
    %126 = math.exp %125 : vector<2x8x8xf32>
    %cst_36 = arith.constant dense<0.000000e+00> : vector<2x8xf32>
    %127 = vector.multi_reduction <add>, %126, %cst_36 [2] : vector<2x8x8xf32> to vector<2x8xf32>
    %128 = vector.shape_cast %127 : vector<2x8xf32> to vector<2x8x1xf32>
    %129 = tpu.reciprocal %128 {approx = true} : vector<2x8x1xf32> -> vector<2x8x1xf32>
    %130 = vector.broadcast %129 : vector<2x8x1xf32> to vector<2x8x8xf32>
    %131 = arith.mulf %126, %130 : vector<2x8x8xf32>
    %132 = vector.extract_strided_slice %58 {offsets = [0, 0, 12], sizes = [2, 8, 4], strides = [1, 1, 1]} : vector<2x8x32xf32> to vector<2x8x4xf32>
    "tpu.trace_start"() <{level = 10 : i32, message = "bqk,bkd->bqd"}> : () -> ()
    %cst_37 = arith.constant dense<0.000000e+00> : vector<2x8x4xf32>
    %133 = tpu.matmul %131, %132, %cst_37 {dimension_numbers = #tpu.dot_dimension_numbers<[2], [1], [1], [2], [0, 0, 0, 1, 1, 2], [0], [0]>} : vector<2x8x8xf32>, vector<2x8x4xf32>, vector<2x8x4xf32> -> vector<2x8x4xf32>
    "tpu.trace_stop"() : () -> ()
    %134 = vector.shape_cast %133 : vector<2x8x4xf32> to vector<16x4xf32>
    %135 = vector.extract_strided_slice %55 {offsets = [12, 0], sizes = [4, 32], strides = [1, 1]} : vector<32x32xf32> to vector<4x32xf32>
    %cst_38 = arith.constant dense<0.000000e+00> : vector<16x32xf32>
    %136 = tpu.matmul %134, %135, %cst_38 {dimension_numbers = #tpu.dot_dimension_numbers<[1], [0], [0], [1], [0, 0, 1, 1], [], []>} : vector<16x4xf32>, vector<4x32xf32>, vector<16x32xf32> -> vector<16x32xf32>
    %137 = arith.addf %118, %136 : vector<16x32xf32>
    %138 = vector.extract_strided_slice %56 {offsets = [0, 0, 16], sizes = [2, 8, 4], strides = [1, 1, 1]} : vector<2x8x32xf32> to vector<2x8x4xf32>
    %139 = vector.extract_strided_slice %57 {offsets = [0, 0, 16], sizes = [2, 8, 4], strides = [1, 1, 1]} : vector<2x8x32xf32> to vector<2x8x4xf32>
    "tpu.trace_start"() <{level = 10 : i32, message = "bqd,bkd->bqk"}> : () -> ()
    %cst_39 = arith.constant dense<0.000000e+00> : vector<2x8x8xf32>
    %140 = tpu.matmul %138, %139, %cst_39 {dimension_numbers = #tpu.dot_dimension_numbers<[2], [2], [1], [1], [0, 0, 0, 1, 1, 1], [0], [0]>} : vector<2x8x4xf32>, vector<2x8x4xf32>, vector<2x8x8xf32> -> vector<2x8x8xf32>
    "tpu.trace_stop"() : () -> ()
    %cst_40 = arith.constant dense<0xFF800000> : vector<2x8xf32>
    %141 = vector.multi_reduction <maximumf>, %140, %cst_40 [2] : vector<2x8x8xf32> to vector<2x8xf32>
    %142 = vector.shape_cast %141 : vector<2x8xf32> to vector<2x8x1xf32>
    %143 = vector.broadcast %142 : vector<2x8x1xf32> to vector<2x8x8xf32>
    %144 = arith.subf %140, %143 : vector<2x8x8xf32>
    %145 = math.exp %144 : vector<2x8x8xf32>
    %cst_41 = arith.constant dense<0.000000e+00> : vector<2x8xf32>
    %146 = vector.multi_reduction <add>, %145, %cst_41 [2] : vector<2x8x8xf32> to vector<2x8xf32>
    %147 = vector.shape_cast %146 : vector<2x8xf32> to vector<2x8x1xf32>
    %148 = tpu.reciprocal %147 {approx = true} : vector<2x8x1xf32> -> vector<2x8x1xf32>
    %149 = vector.broadcast %148 : vector<2x8x1xf32> to vector<2x8x8xf32>
    %150 = arith.mulf %145, %149 : vector<2x8x8xf32>
    %151 = vector.extract_strided_slice %58 {offsets = [0, 0, 16], sizes = [2, 8, 4], strides = [1, 1, 1]} : vector<2x8x32xf32> to vector<2x8x4xf32>
    "tpu.trace_start"() <{level = 10 : i32, message = "bqk,bkd->bqd"}> : () -> ()
    %cst_42 = arith.constant dense<0.000000e+00> : vector<2x8x4xf32>
    %152 = tpu.matmul %150, %151, %cst_42 {dimension_numbers = #tpu.dot_dimension_numbers<[2], [1], [1], [2], [0, 0, 0, 1, 1, 2], [0], [0]>} : vector<2x8x8xf32>, vector<2x8x4xf32>, vector<2x8x4xf32> -> vector<2x8x4xf32>
    "tpu.trace_stop"() : () -> ()
    %153 = vector.shape_cast %152 : vector<2x8x4xf32> to vector<16x4xf32>
    %154 = vector.extract_strided_slice %55 {offsets = [16, 0], sizes = [4, 32], strides = [1, 1]} : vector<32x32xf32> to vector<4x32xf32>
    %cst_43 = arith.constant dense<0.000000e+00> : vector<16x32xf32>
    %155 = tpu.matmul %153, %154, %cst_43 {dimension_numbers = #tpu.dot_dimension_numbers<[1], [0], [0], [1], [0, 0, 1, 1], [], []>} : vector<16x4xf32>, vector<4x32xf32>, vector<16x32xf32> -> vector<16x32xf32>
    %156 = arith.addf %137, %155 : vector<16x32xf32>
    %157 = vector.extract_strided_slice %56 {offsets = [0, 0, 20], sizes = [2, 8, 4], strides = [1, 1, 1]} : vector<2x8x32xf32> to vector<2x8x4xf32>
    %158 = vector.extract_strided_slice %57 {offsets = [0, 0, 20], sizes = [2, 8, 4], strides = [1, 1, 1]} : vector<2x8x32xf32> to vector<2x8x4xf32>
    "tpu.trace_start"() <{level = 10 : i32, message = "bqd,bkd->bqk"}> : () -> ()
    %cst_44 = arith.constant dense<0.000000e+00> : vector<2x8x8xf32>
    %159 = tpu.matmul %157, %158, %cst_44 {dimension_numbers = #tpu.dot_dimension_numbers<[2], [2], [1], [1], [0, 0, 0, 1, 1, 1], [0], [0]>} : vector<2x8x4xf32>, vector<2x8x4xf32>, vector<2x8x8xf32> -> vector<2x8x8xf32>
    "tpu.trace_stop"() : () -> ()
    %cst_45 = arith.constant dense<0xFF800000> : vector<2x8xf32>
    %160 = vector.multi_reduction <maximumf>, %159, %cst_45 [2] : vector<2x8x8xf32> to vector<2x8xf32>
    %161 = vector.shape_cast %160 : vector<2x8xf32> to vector<2x8x1xf32>
    %162 = vector.broadcast %161 : vector<2x8x1xf32> to vector<2x8x8xf32>
    %163 = arith.subf %159, %162 : vector<2x8x8xf32>
    %164 = math.exp %163 : vector<2x8x8xf32>
    %cst_46 = arith.constant dense<0.000000e+00> : vector<2x8xf32>
    %165 = vector.multi_reduction <add>, %164, %cst_46 [2] : vector<2x8x8xf32> to vector<2x8xf32>
    %166 = vector.shape_cast %165 : vector<2x8xf32> to vector<2x8x1xf32>
    %167 = tpu.reciprocal %166 {approx = true} : vector<2x8x1xf32> -> vector<2x8x1xf32>
    %168 = vector.broadcast %167 : vector<2x8x1xf32> to vector<2x8x8xf32>
    %169 = arith.mulf %164, %168 : vector<2x8x8xf32>
    %170 = vector.extract_strided_slice %58 {offsets = [0, 0, 20], sizes = [2, 8, 4], strides = [1, 1, 1]} : vector<2x8x32xf32> to vector<2x8x4xf32>
    "tpu.trace_start"() <{level = 10 : i32, message = "bqk,bkd->bqd"}> : () -> ()
    %cst_47 = arith.constant dense<0.000000e+00> : vector<2x8x4xf32>
    %171 = tpu.matmul %169, %170, %cst_47 {dimension_numbers = #tpu.dot_dimension_numbers<[2], [1], [1], [2], [0, 0, 0, 1, 1, 2], [0], [0]>} : vector<2x8x8xf32>, vector<2x8x4xf32>, vector<2x8x4xf32> -> vector<2x8x4xf32>
    "tpu.trace_stop"() : () -> ()
    %172 = vector.shape_cast %171 : vector<2x8x4xf32> to vector<16x4xf32>
    %173 = vector.extract_strided_slice %55 {offsets = [20, 0], sizes = [4, 32], strides = [1, 1]} : vector<32x32xf32> to vector<4x32xf32>
    %cst_48 = arith.constant dense<0.000000e+00> : vector<16x32xf32>
    %174 = tpu.matmul %172, %173, %cst_48 {dimension_numbers = #tpu.dot_dimension_numbers<[1], [0], [0], [1], [0, 0, 1, 1], [], []>} : vector<16x4xf32>, vector<4x32xf32>, vector<16x32xf32> -> vector<16x32xf32>
    %175 = arith.addf %156, %174 : vector<16x32xf32>
    %176 = vector.extract_strided_slice %56 {offsets = [0, 0, 24], sizes = [2, 8, 4], strides = [1, 1, 1]} : vector<2x8x32xf32> to vector<2x8x4xf32>
    %177 = vector.extract_strided_slice %57 {offsets = [0, 0, 24], sizes = [2, 8, 4], strides = [1, 1, 1]} : vector<2x8x32xf32> to vector<2x8x4xf32>
    "tpu.trace_start"() <{level = 10 : i32, message = "bqd,bkd->bqk"}> : () -> ()
    %cst_49 = arith.constant dense<0.000000e+00> : vector<2x8x8xf32>
    %178 = tpu.matmul %176, %177, %cst_49 {dimension_numbers = #tpu.dot_dimension_numbers<[2], [2], [1], [1], [0, 0, 0, 1, 1, 1], [0], [0]>} : vector<2x8x4xf32>, vector<2x8x4xf32>, vector<2x8x8xf32> -> vector<2x8x8xf32>
    "tpu.trace_stop"() : () -> ()
    %cst_50 = arith.constant dense<0xFF800000> : vector<2x8xf32>
    %179 = vector.multi_reduction <maximumf>, %178, %cst_50 [2] : vector<2x8x8xf32> to vector<2x8xf32>
    %180 = vector.shape_cast %179 : vector<2x8xf32> to vector<2x8x1xf32>
    %181 = vector.broadcast %180 : vector<2x8x1xf32> to vector<2x8x8xf32>
    %182 = arith.subf %178, %181 : vector<2x8x8xf32>
    %183 = math.exp %182 : vector<2x8x8xf32>
    %cst_51 = arith.constant dense<0.000000e+00> : vector<2x8xf32>
    %184 = vector.multi_reduction <add>, %183, %cst_51 [2] : vector<2x8x8xf32> to vector<2x8xf32>
    %185 = vector.shape_cast %184 : vector<2x8xf32> to vector<2x8x1xf32>
    %186 = tpu.reciprocal %185 {approx = true} : vector<2x8x1xf32> -> vector<2x8x1xf32>
    %187 = vector.broadcast %186 : vector<2x8x1xf32> to vector<2x8x8xf32>
    %188 = arith.mulf %183, %187 : vector<2x8x8xf32>
    %189 = vector.extract_strided_slice %58 {offsets = [0, 0, 24], sizes = [2, 8, 4], strides = [1, 1, 1]} : vector<2x8x32xf32> to vector<2x8x4xf32>
    "tpu.trace_start"() <{level = 10 : i32, message = "bqk,bkd->bqd"}> : () -> ()
    %cst_52 = arith.constant dense<0.000000e+00> : vector<2x8x4xf32>
    %190 = tpu.matmul %188, %189, %cst_52 {dimension_numbers = #tpu.dot_dimension_numbers<[2], [1], [1], [2], [0, 0, 0, 1, 1, 2], [0], [0]>} : vector<2x8x8xf32>, vector<2x8x4xf32>, vector<2x8x4xf32> -> vector<2x8x4xf32>
    "tpu.trace_stop"() : () -> ()
    %191 = vector.shape_cast %190 : vector<2x8x4xf32> to vector<16x4xf32>
    %192 = vector.extract_strided_slice %55 {offsets = [24, 0], sizes = [4, 32], strides = [1, 1]} : vector<32x32xf32> to vector<4x32xf32>
    %cst_53 = arith.constant dense<0.000000e+00> : vector<16x32xf32>
    %193 = tpu.matmul %191, %192, %cst_53 {dimension_numbers = #tpu.dot_dimension_numbers<[1], [0], [0], [1], [0, 0, 1, 1], [], []>} : vector<16x4xf32>, vector<4x32xf32>, vector<16x32xf32> -> vector<16x32xf32>
    %194 = arith.addf %175, %193 : vector<16x32xf32>
    %195 = vector.extract_strided_slice %56 {offsets = [0, 0, 28], sizes = [2, 8, 4], strides = [1, 1, 1]} : vector<2x8x32xf32> to vector<2x8x4xf32>
    %196 = vector.extract_strided_slice %57 {offsets = [0, 0, 28], sizes = [2, 8, 4], strides = [1, 1, 1]} : vector<2x8x32xf32> to vector<2x8x4xf32>
    "tpu.trace_start"() <{level = 10 : i32, message = "bqd,bkd->bqk"}> : () -> ()
    %cst_54 = arith.constant dense<0.000000e+00> : vector<2x8x8xf32>
    %197 = tpu.matmul %195, %196, %cst_54 {dimension_numbers = #tpu.dot_dimension_numbers<[2], [2], [1], [1], [0, 0, 0, 1, 1, 1], [0], [0]>} : vector<2x8x4xf32>, vector<2x8x4xf32>, vector<2x8x8xf32> -> vector<2x8x8xf32>
    "tpu.trace_stop"() : () -> ()
    %cst_55 = arith.constant dense<0xFF800000> : vector<2x8xf32>
    %198 = vector.multi_reduction <maximumf>, %197, %cst_55 [2] : vector<2x8x8xf32> to vector<2x8xf32>
    %199 = vector.shape_cast %198 : vector<2x8xf32> to vector<2x8x1xf32>
    %200 = vector.broadcast %199 : vector<2x8x1xf32> to vector<2x8x8xf32>
    %201 = arith.subf %197, %200 : vector<2x8x8xf32>
    %202 = math.exp %201 : vector<2x8x8xf32>
    %cst_56 = arith.constant dense<0.000000e+00> : vector<2x8xf32>
    %203 = vector.multi_reduction <add>, %202, %cst_56 [2] : vector<2x8x8xf32> to vector<2x8xf32>
    %204 = vector.shape_cast %203 : vector<2x8xf32> to vector<2x8x1xf32>
    %205 = tpu.reciprocal %204 {approx = true} : vector<2x8x1xf32> -> vector<2x8x1xf32>
    %206 = vector.broadcast %205 : vector<2x8x1xf32> to vector<2x8x8xf32>
    %207 = arith.mulf %202, %206 : vector<2x8x8xf32>
    %208 = vector.extract_strided_slice %58 {offsets = [0, 0, 28], sizes = [2, 8, 4], strides = [1, 1, 1]} : vector<2x8x32xf32> to vector<2x8x4xf32>
    "tpu.trace_start"() <{level = 10 : i32, message = "bqk,bkd->bqd"}> : () -> ()
    %cst_57 = arith.constant dense<0.000000e+00> : vector<2x8x4xf32>
    %209 = tpu.matmul %207, %208, %cst_57 {dimension_numbers = #tpu.dot_dimension_numbers<[2], [1], [1], [2], [0, 0, 0, 1, 1, 2], [0], [0]>} : vector<2x8x8xf32>, vector<2x8x4xf32>, vector<2x8x4xf32> -> vector<2x8x4xf32>
    "tpu.trace_stop"() : () -> ()
    %210 = vector.shape_cast %209 : vector<2x8x4xf32> to vector<16x4xf32>
    %211 = vector.extract_strided_slice %55 {offsets = [28, 0], sizes = [4, 32], strides = [1, 1]} : vector<32x32xf32> to vector<4x32xf32>
    %cst_58 = arith.constant dense<0.000000e+00> : vector<16x32xf32>
    %212 = tpu.matmul %210, %211, %cst_58 {dimension_numbers = #tpu.dot_dimension_numbers<[1], [0], [0], [1], [0, 0, 1, 1], [], []>} : vector<16x4xf32>, vector<4x32xf32>, vector<16x32xf32> -> vector<16x32xf32>
    %213 = arith.addf %194, %212 : vector<16x32xf32>
    %214 = vector.extract_strided_slice %9 {offsets = [6, 0], sizes = [1, 32], strides = [1, 1]} : vector<9x32xf32> to vector<1x32xf32>
    %215 = vector.extract_strided_slice %9 {offsets = [7, 0], sizes = [1, 32], strides = [1, 1]} : vector<9x32xf32> to vector<1x32xf32>
    %cst_59 = arith.constant dense<0.000000e+00> : vector<16xf32>
    %216 = vector.multi_reduction <add>, %213, %cst_59 [1] : vector<16x32xf32> to vector<16xf32>
    %217 = vector.shape_cast %216 : vector<16xf32> to vector<16x1xf32>
    %cst_60 = arith.constant 3.200000e+01 : f32
    %218 = vector.broadcast %cst_60 : f32 to vector<16x1xf32>
    %219 = arith.divf %217, %218 : vector<16x1xf32>
    %220 = vector.broadcast %219 : vector<16x1xf32> to vector<16x32xf32>
    %221 = arith.subf %213, %220 : vector<16x32xf32>
    %222 = arith.mulf %221, %221 : vector<16x32xf32>
    %cst_61 = arith.constant dense<0.000000e+00> : vector<16xf32>
    %223 = vector.multi_reduction <add>, %222, %cst_61 [1] : vector<16x32xf32> to vector<16xf32>
    %224 = vector.shape_cast %223 : vector<16xf32> to vector<16x1xf32>
    %cst_62 = arith.constant 3.200000e+01 : f32
    %225 = vector.broadcast %cst_62 : f32 to vector<16x1xf32>
    %226 = arith.divf %224, %225 : vector<16x1xf32>
    %227 = vector.broadcast %219 : vector<16x1xf32> to vector<16x32xf32>
    %228 = arith.subf %213, %227 : vector<16x32xf32>
    %cst_63 = arith.constant 9.99999997E-7 : f32
    %229 = vector.broadcast %cst_63 : f32 to vector<16x1xf32>
    %230 = arith.addf %226, %229 : vector<16x1xf32>
    %231 = math.rsqrt %230 : vector<16x1xf32>
    %232 = vector.broadcast %231 : vector<16x1xf32> to vector<16x32xf32>
    %233 = arith.mulf %228, %232 : vector<16x32xf32>
    %234 = vector.broadcast %214 : vector<1x32xf32> to vector<16x32xf32>
    %235 = arith.mulf %233, %234 : vector<16x32xf32>
    %236 = vector.broadcast %215 : vector<1x32xf32> to vector<16x32xf32>
    %237 = arith.addf %235, %236 : vector<16x32xf32>
    %c0_64 = arith.constant 0 : index
    %c0_65 = arith.constant 0 : index
    %c0_66 = arith.constant 0 : index
    %238 = vector.load %arg4[%c0_64, %c0_65, %c0_66] : memref<2x32x128xf32, #tpu.memory_space<vmem>>, vector<1x32x128xf32>
    %239 = vector.shape_cast %238 : vector<1x32x128xf32> to vector<32x128xf32>
    %cst_67 = arith.constant dense<0.000000e+00> : vector<16x128xf32>
    %240 = tpu.matmul %237, %239, %cst_67 {dimension_numbers = #tpu.dot_dimension_numbers<[1], [0], [0], [1], [0, 0, 1, 1], [], []>} : vector<16x32xf32>, vector<32x128xf32>, vector<16x128xf32> -> vector<16x128xf32>
    %c0_68 = arith.constant 0 : index
    %c0_69 = arith.constant 0 : index
    %c0_70 = arith.constant 0 : index
    %241 = vector.load %arg5[%c0_68, %c0_69, %c0_70] : memref<2x1x128xf32, #tpu.memory_space<vmem>>, vector<1x1x128xf32>
    %242 = vector.shape_cast %241 : vector<1x1x128xf32> to vector<1x128xf32>
    %243 = vector.broadcast %242 : vector<1x128xf32> to vector<16x128xf32>
    %244 = arith.addf %240, %243 : vector<16x128xf32>
    %cst_71 = arith.constant 5.000000e-01 : f32
    %245 = vector.broadcast %cst_71 : f32 to vector<16x128xf32>
    %246 = arith.mulf %245, %244 : vector<16x128xf32>
    %cst_72 = arith.constant 4.471500e-02 : f32
    %247 = vector.broadcast %cst_72 : f32 to vector<16x128xf32>
    %248 = arith.mulf %247, %244 : vector<16x128xf32>
    %249 = arith.mulf %248, %244 : vector<16x128xf32>
    %250 = arith.mulf %249, %244 : vector<16x128xf32>
    %251 = arith.addf %244, %250 : vector<16x128xf32>
    %cst_73 = arith.constant 0.797884583 : f32
    %252 = vector.broadcast %cst_73 : f32 to vector<16x128xf32>
    %253 = arith.mulf %252, %251 : vector<16x128xf32>
    %254 = math.tanh %253 : vector<16x128xf32>
    %cst_74 = arith.constant 1.000000e+00 : f32
    %255 = vector.broadcast %cst_74 : f32 to vector<16x128xf32>
    %256 = arith.addf %255, %254 : vector<16x128xf32>
    %257 = arith.mulf %246, %256 : vector<16x128xf32>
    %c0_75 = arith.constant 0 : index
    %c0_76 = arith.constant 0 : index
    %c0_77 = arith.constant 0 : index
    %258 = vector.load %arg6[%c0_75, %c0_76, %c0_77] : memref<2x128x32xf32, #tpu.memory_space<vmem>>, vector<1x128x32xf32>
    %259 = vector.shape_cast %258 : vector<1x128x32xf32> to vector<128x32xf32>
    %cst_78 = arith.constant dense<0.000000e+00> : vector<16x32xf32>
    %260 = tpu.matmul %257, %259, %cst_78 {dimension_numbers = #tpu.dot_dimension_numbers<[1], [0], [0], [1], [0, 0, 1, 1], [], []>} : vector<16x128xf32>, vector<128x32xf32>, vector<16x32xf32> -> vector<16x32xf32>
    %261 = vector.extract_strided_slice %9 {offsets = [8, 0], sizes = [1, 32], strides = [1, 1]} : vector<9x32xf32> to vector<1x32xf32>
    %262 = vector.broadcast %261 : vector<1x32xf32> to vector<16x32xf32>
    %263 = arith.addf %260, %262 : vector<16x32xf32>
    %264 = arith.addf %213, %263 : vector<16x32xf32>
    %c1 = arith.constant 1 : index
    %c0_79 = arith.constant 0 : index
    %c0_80 = arith.constant 0 : index
    %265 = vector.load %arg2[%c1, %c0_79, %c0_80] : memref<2x9x32xf32, #tpu.memory_space<vmem>>, vector<1x9x32xf32>
    %266 = vector.shape_cast %265 : vector<1x9x32xf32> to vector<9x32xf32>
    %c1_81 = arith.constant 1 : index
    %c0_82 = arith.constant 0 : index
    %c0_83 = arith.constant 0 : index
    %c0_84 = arith.constant 0 : index
    %267 = vector.load %arg3[%c1_81, %c0_82, %c0_83, %c0_84] : memref<2x4x32x32xf32, #tpu.memory_space<vmem>>, vector<1x4x32x32xf32>
    %268 = vector.shape_cast %267 : vector<1x4x32x32xf32> to vector<4x32x32xf32>
    %269 = vector.extract_strided_slice %266 {offsets = [0, 0], sizes = [1, 32], strides = [1, 1]} : vector<9x32xf32> to vector<1x32xf32>
    %270 = vector.extract_strided_slice %266 {offsets = [1, 0], sizes = [1, 32], strides = [1, 1]} : vector<9x32xf32> to vector<1x32xf32>
    %cst_85 = arith.constant dense<0.000000e+00> : vector<16xf32>
    %271 = vector.multi_reduction <add>, %264, %cst_85 [1] : vector<16x32xf32> to vector<16xf32>
    %272 = vector.shape_cast %271 : vector<16xf32> to vector<16x1xf32>
    %cst_86 = arith.constant 3.200000e+01 : f32
    %273 = vector.broadcast %cst_86 : f32 to vector<16x1xf32>
    %274 = arith.divf %272, %273 : vector<16x1xf32>
    %275 = vector.broadcast %274 : vector<16x1xf32> to vector<16x32xf32>
    %276 = arith.subf %264, %275 : vector<16x32xf32>
    %277 = arith.mulf %276, %276 : vector<16x32xf32>
    %cst_87 = arith.constant dense<0.000000e+00> : vector<16xf32>
    %278 = vector.multi_reduction <add>, %277, %cst_87 [1] : vector<16x32xf32> to vector<16xf32>
    %279 = vector.shape_cast %278 : vector<16xf32> to vector<16x1xf32>
    %cst_88 = arith.constant 3.200000e+01 : f32
    %280 = vector.broadcast %cst_88 : f32 to vector<16x1xf32>
    %281 = arith.divf %279, %280 : vector<16x1xf32>
    %282 = vector.broadcast %274 : vector<16x1xf32> to vector<16x32xf32>
    %283 = arith.subf %264, %282 : vector<16x32xf32>
    %cst_89 = arith.constant 9.99999997E-7 : f32
    %284 = vector.broadcast %cst_89 : f32 to vector<16x1xf32>
    %285 = arith.addf %281, %284 : vector<16x1xf32>
    %286 = math.rsqrt %285 : vector<16x1xf32>
    %287 = vector.broadcast %286 : vector<16x1xf32> to vector<16x32xf32>
    %288 = arith.mulf %283, %287 : vector<16x32xf32>
    %289 = vector.broadcast %269 : vector<1x32xf32> to vector<16x32xf32>
    %290 = arith.mulf %288, %289 : vector<16x32xf32>
    %291 = vector.broadcast %270 : vector<1x32xf32> to vector<16x32xf32>
    %292 = arith.addf %290, %291 : vector<16x32xf32>
    %293 = vector.extract_strided_slice %268 {offsets = [0, 0, 0], sizes = [1, 32, 32], strides = [1, 1, 1]} : vector<4x32x32xf32> to vector<1x32x32xf32>
    %294 = vector.shape_cast %293 : vector<1x32x32xf32> to vector<32x32xf32>
    %cst_90 = arith.constant dense<0.000000e+00> : vector<16x32xf32>
    %295 = tpu.matmul %292, %294, %cst_90 {dimension_numbers = #tpu.dot_dimension_numbers<[1], [0], [0], [1], [0, 0, 1, 1], [], []>} : vector<16x32xf32>, vector<32x32xf32>, vector<16x32xf32> -> vector<16x32xf32>
    %296 = vector.extract_strided_slice %266 {offsets = [2, 0], sizes = [1, 32], strides = [1, 1]} : vector<9x32xf32> to vector<1x32xf32>
    %297 = vector.broadcast %296 : vector<1x32xf32> to vector<16x32xf32>
    %298 = arith.addf %295, %297 : vector<16x32xf32>
    %299 = vector.extract_strided_slice %268 {offsets = [1, 0, 0], sizes = [1, 32, 32], strides = [1, 1, 1]} : vector<4x32x32xf32> to vector<1x32x32xf32>
    %300 = vector.shape_cast %299 : vector<1x32x32xf32> to vector<32x32xf32>
    %cst_91 = arith.constant dense<0.000000e+00> : vector<16x32xf32>
    %301 = tpu.matmul %292, %300, %cst_91 {dimension_numbers = #tpu.dot_dimension_numbers<[1], [0], [0], [1], [0, 0, 1, 1], [], []>} : vector<16x32xf32>, vector<32x32xf32>, vector<16x32xf32> -> vector<16x32xf32>
    %302 = vector.extract_strided_slice %266 {offsets = [3, 0], sizes = [1, 32], strides = [1, 1]} : vector<9x32xf32> to vector<1x32xf32>
    %303 = vector.broadcast %302 : vector<1x32xf32> to vector<16x32xf32>
    %304 = arith.addf %301, %303 : vector<16x32xf32>
    %305 = vector.extract_strided_slice %268 {offsets = [2, 0, 0], sizes = [1, 32, 32], strides = [1, 1, 1]} : vector<4x32x32xf32> to vector<1x32x32xf32>
    %306 = vector.shape_cast %305 : vector<1x32x32xf32> to vector<32x32xf32>
    %cst_92 = arith.constant dense<0.000000e+00> : vector<16x32xf32>
    %307 = tpu.matmul %292, %306, %cst_92 {dimension_numbers = #tpu.dot_dimension_numbers<[1], [0], [0], [1], [0, 0, 1, 1], [], []>} : vector<16x32xf32>, vector<32x32xf32>, vector<16x32xf32> -> vector<16x32xf32>
    %308 = vector.extract_strided_slice %266 {offsets = [4, 0], sizes = [1, 32], strides = [1, 1]} : vector<9x32xf32> to vector<1x32xf32>
    %309 = vector.broadcast %308 : vector<1x32xf32> to vector<16x32xf32>
    %310 = arith.addf %307, %309 : vector<16x32xf32>
    %311 = vector.extract_strided_slice %268 {offsets = [3, 0, 0], sizes = [1, 32, 32], strides = [1, 1, 1]} : vector<4x32x32xf32> to vector<1x32x32xf32>
    %312 = vector.shape_cast %311 : vector<1x32x32xf32> to vector<32x32xf32>
    %313 = vector.shape_cast %298 : vector<16x32xf32> to vector<2x8x32xf32>
    %314 = vector.shape_cast %304 : vector<16x32xf32> to vector<2x8x32xf32>
    %315 = vector.shape_cast %310 : vector<16x32xf32> to vector<2x8x32xf32>
    %316 = vector.extract_strided_slice %266 {offsets = [5, 0], sizes = [1, 32], strides = [1, 1]} : vector<9x32xf32> to vector<1x32xf32>
    %317 = vector.broadcast %316 : vector<1x32xf32> to vector<16x32xf32>
    %318 = arith.addf %264, %317 : vector<16x32xf32>
    %319 = vector.extract_strided_slice %313 {offsets = [0, 0, 0], sizes = [2, 8, 4], strides = [1, 1, 1]} : vector<2x8x32xf32> to vector<2x8x4xf32>
    %320 = vector.extract_strided_slice %314 {offsets = [0, 0, 0], sizes = [2, 8, 4], strides = [1, 1, 1]} : vector<2x8x32xf32> to vector<2x8x4xf32>
    "tpu.trace_start"() <{level = 10 : i32, message = "bqd,bkd->bqk"}> : () -> ()
    %cst_93 = arith.constant dense<0.000000e+00> : vector<2x8x8xf32>
    %321 = tpu.matmul %319, %320, %cst_93 {dimension_numbers = #tpu.dot_dimension_numbers<[2], [2], [1], [1], [0, 0, 0, 1, 1, 1], [0], [0]>} : vector<2x8x4xf32>, vector<2x8x4xf32>, vector<2x8x8xf32> -> vector<2x8x8xf32>
    "tpu.trace_stop"() : () -> ()
    %cst_94 = arith.constant dense<0xFF800000> : vector<2x8xf32>
    %322 = vector.multi_reduction <maximumf>, %321, %cst_94 [2] : vector<2x8x8xf32> to vector<2x8xf32>
    %323 = vector.shape_cast %322 : vector<2x8xf32> to vector<2x8x1xf32>
    %324 = vector.broadcast %323 : vector<2x8x1xf32> to vector<2x8x8xf32>
    %325 = arith.subf %321, %324 : vector<2x8x8xf32>
    %326 = math.exp %325 : vector<2x8x8xf32>
    %cst_95 = arith.constant dense<0.000000e+00> : vector<2x8xf32>
    %327 = vector.multi_reduction <add>, %326, %cst_95 [2] : vector<2x8x8xf32> to vector<2x8xf32>
    %328 = vector.shape_cast %327 : vector<2x8xf32> to vector<2x8x1xf32>
    %329 = tpu.reciprocal %328 {approx = true} : vector<2x8x1xf32> -> vector<2x8x1xf32>
    %330 = vector.broadcast %329 : vector<2x8x1xf32> to vector<2x8x8xf32>
    %331 = arith.mulf %326, %330 : vector<2x8x8xf32>
    %332 = vector.extract_strided_slice %315 {offsets = [0, 0, 0], sizes = [2, 8, 4], strides = [1, 1, 1]} : vector<2x8x32xf32> to vector<2x8x4xf32>
    "tpu.trace_start"() <{level = 10 : i32, message = "bqk,bkd->bqd"}> : () -> ()
    %cst_96 = arith.constant dense<0.000000e+00> : vector<2x8x4xf32>
    %333 = tpu.matmul %331, %332, %cst_96 {dimension_numbers = #tpu.dot_dimension_numbers<[2], [1], [1], [2], [0, 0, 0, 1, 1, 2], [0], [0]>} : vector<2x8x8xf32>, vector<2x8x4xf32>, vector<2x8x4xf32> -> vector<2x8x4xf32>
    "tpu.trace_stop"() : () -> ()
    %334 = vector.shape_cast %333 : vector<2x8x4xf32> to vector<16x4xf32>
    %335 = vector.extract_strided_slice %312 {offsets = [0, 0], sizes = [4, 32], strides = [1, 1]} : vector<32x32xf32> to vector<4x32xf32>
    %cst_97 = arith.constant dense<0.000000e+00> : vector<16x32xf32>
    %336 = tpu.matmul %334, %335, %cst_97 {dimension_numbers = #tpu.dot_dimension_numbers<[1], [0], [0], [1], [0, 0, 1, 1], [], []>} : vector<16x4xf32>, vector<4x32xf32>, vector<16x32xf32> -> vector<16x32xf32>
    %337 = arith.addf %318, %336 : vector<16x32xf32>
    %338 = vector.extract_strided_slice %313 {offsets = [0, 0, 4], sizes = [2, 8, 4], strides = [1, 1, 1]} : vector<2x8x32xf32> to vector<2x8x4xf32>
    %339 = vector.extract_strided_slice %314 {offsets = [0, 0, 4], sizes = [2, 8, 4], strides = [1, 1, 1]} : vector<2x8x32xf32> to vector<2x8x4xf32>
    "tpu.trace_start"() <{level = 10 : i32, message = "bqd,bkd->bqk"}> : () -> ()
    %cst_98 = arith.constant dense<0.000000e+00> : vector<2x8x8xf32>
    %340 = tpu.matmul %338, %339, %cst_98 {dimension_numbers = #tpu.dot_dimension_numbers<[2], [2], [1], [1], [0, 0, 0, 1, 1, 1], [0], [0]>} : vector<2x8x4xf32>, vector<2x8x4xf32>, vector<2x8x8xf32> -> vector<2x8x8xf32>
    "tpu.trace_stop"() : () -> ()
    %cst_99 = arith.constant dense<0xFF800000> : vector<2x8xf32>
    %341 = vector.multi_reduction <maximumf>, %340, %cst_99 [2] : vector<2x8x8xf32> to vector<2x8xf32>
    %342 = vector.shape_cast %341 : vector<2x8xf32> to vector<2x8x1xf32>
    %343 = vector.broadcast %342 : vector<2x8x1xf32> to vector<2x8x8xf32>
    %344 = arith.subf %340, %343 : vector<2x8x8xf32>
    %345 = math.exp %344 : vector<2x8x8xf32>
    %cst_100 = arith.constant dense<0.000000e+00> : vector<2x8xf32>
    %346 = vector.multi_reduction <add>, %345, %cst_100 [2] : vector<2x8x8xf32> to vector<2x8xf32>
    %347 = vector.shape_cast %346 : vector<2x8xf32> to vector<2x8x1xf32>
    %348 = tpu.reciprocal %347 {approx = true} : vector<2x8x1xf32> -> vector<2x8x1xf32>
    %349 = vector.broadcast %348 : vector<2x8x1xf32> to vector<2x8x8xf32>
    %350 = arith.mulf %345, %349 : vector<2x8x8xf32>
    %351 = vector.extract_strided_slice %315 {offsets = [0, 0, 4], sizes = [2, 8, 4], strides = [1, 1, 1]} : vector<2x8x32xf32> to vector<2x8x4xf32>
    "tpu.trace_start"() <{level = 10 : i32, message = "bqk,bkd->bqd"}> : () -> ()
    %cst_101 = arith.constant dense<0.000000e+00> : vector<2x8x4xf32>
    %352 = tpu.matmul %350, %351, %cst_101 {dimension_numbers = #tpu.dot_dimension_numbers<[2], [1], [1], [2], [0, 0, 0, 1, 1, 2], [0], [0]>} : vector<2x8x8xf32>, vector<2x8x4xf32>, vector<2x8x4xf32> -> vector<2x8x4xf32>
    "tpu.trace_stop"() : () -> ()
    %353 = vector.shape_cast %352 : vector<2x8x4xf32> to vector<16x4xf32>
    %354 = vector.extract_strided_slice %312 {offsets = [4, 0], sizes = [4, 32], strides = [1, 1]} : vector<32x32xf32> to vector<4x32xf32>
    %cst_102 = arith.constant dense<0.000000e+00> : vector<16x32xf32>
    %355 = tpu.matmul %353, %354, %cst_102 {dimension_numbers = #tpu.dot_dimension_numbers<[1], [0], [0], [1], [0, 0, 1, 1], [], []>} : vector<16x4xf32>, vector<4x32xf32>, vector<16x32xf32> -> vector<16x32xf32>
    %356 = arith.addf %337, %355 : vector<16x32xf32>
    %357 = vector.extract_strided_slice %313 {offsets = [0, 0, 8], sizes = [2, 8, 4], strides = [1, 1, 1]} : vector<2x8x32xf32> to vector<2x8x4xf32>
    %358 = vector.extract_strided_slice %314 {offsets = [0, 0, 8], sizes = [2, 8, 4], strides = [1, 1, 1]} : vector<2x8x32xf32> to vector<2x8x4xf32>
    "tpu.trace_start"() <{level = 10 : i32, message = "bqd,bkd->bqk"}> : () -> ()
    %cst_103 = arith.constant dense<0.000000e+00> : vector<2x8x8xf32>
    %359 = tpu.matmul %357, %358, %cst_103 {dimension_numbers = #tpu.dot_dimension_numbers<[2], [2], [1], [1], [0, 0, 0, 1, 1, 1], [0], [0]>} : vector<2x8x4xf32>, vector<2x8x4xf32>, vector<2x8x8xf32> -> vector<2x8x8xf32>
    "tpu.trace_stop"() : () -> ()
    %cst_104 = arith.constant dense<0xFF800000> : vector<2x8xf32>
    %360 = vector.multi_reduction <maximumf>, %359, %cst_104 [2] : vector<2x8x8xf32> to vector<2x8xf32>
    %361 = vector.shape_cast %360 : vector<2x8xf32> to vector<2x8x1xf32>
    %362 = vector.broadcast %361 : vector<2x8x1xf32> to vector<2x8x8xf32>
    %363 = arith.subf %359, %362 : vector<2x8x8xf32>
    %364 = math.exp %363 : vector<2x8x8xf32>
    %cst_105 = arith.constant dense<0.000000e+00> : vector<2x8xf32>
    %365 = vector.multi_reduction <add>, %364, %cst_105 [2] : vector<2x8x8xf32> to vector<2x8xf32>
    %366 = vector.shape_cast %365 : vector<2x8xf32> to vector<2x8x1xf32>
    %367 = tpu.reciprocal %366 {approx = true} : vector<2x8x1xf32> -> vector<2x8x1xf32>
    %368 = vector.broadcast %367 : vector<2x8x1xf32> to vector<2x8x8xf32>
    %369 = arith.mulf %364, %368 : vector<2x8x8xf32>
    %370 = vector.extract_strided_slice %315 {offsets = [0, 0, 8], sizes = [2, 8, 4], strides = [1, 1, 1]} : vector<2x8x32xf32> to vector<2x8x4xf32>
    "tpu.trace_start"() <{level = 10 : i32, message = "bqk,bkd->bqd"}> : () -> ()
    %cst_106 = arith.constant dense<0.000000e+00> : vector<2x8x4xf32>
    %371 = tpu.matmul %369, %370, %cst_106 {dimension_numbers = #tpu.dot_dimension_numbers<[2], [1], [1], [2], [0, 0, 0, 1, 1, 2], [0], [0]>} : vector<2x8x8xf32>, vector<2x8x4xf32>, vector<2x8x4xf32> -> vector<2x8x4xf32>
    "tpu.trace_stop"() : () -> ()
    %372 = vector.shape_cast %371 : vector<2x8x4xf32> to vector<16x4xf32>
    %373 = vector.extract_strided_slice %312 {offsets = [8, 0], sizes = [4, 32], strides = [1, 1]} : vector<32x32xf32> to vector<4x32xf32>
    %cst_107 = arith.constant dense<0.000000e+00> : vector<16x32xf32>
    %374 = tpu.matmul %372, %373, %cst_107 {dimension_numbers = #tpu.dot_dimension_numbers<[1], [0], [0], [1], [0, 0, 1, 1], [], []>} : vector<16x4xf32>, vector<4x32xf32>, vector<16x32xf32> -> vector<16x32xf32>
    %375 = arith.addf %356, %374 : vector<16x32xf32>
    %376 = vector.extract_strided_slice %313 {offsets = [0, 0, 12], sizes = [2, 8, 4], strides = [1, 1, 1]} : vector<2x8x32xf32> to vector<2x8x4xf32>
    %377 = vector.extract_strided_slice %314 {offsets = [0, 0, 12], sizes = [2, 8, 4], strides = [1, 1, 1]} : vector<2x8x32xf32> to vector<2x8x4xf32>
    "tpu.trace_start"() <{level = 10 : i32, message = "bqd,bkd->bqk"}> : () -> ()
    %cst_108 = arith.constant dense<0.000000e+00> : vector<2x8x8xf32>
    %378 = tpu.matmul %376, %377, %cst_108 {dimension_numbers = #tpu.dot_dimension_numbers<[2], [2], [1], [1], [0, 0, 0, 1, 1, 1], [0], [0]>} : vector<2x8x4xf32>, vector<2x8x4xf32>, vector<2x8x8xf32> -> vector<2x8x8xf32>
    "tpu.trace_stop"() : () -> ()
    %cst_109 = arith.constant dense<0xFF800000> : vector<2x8xf32>
    %379 = vector.multi_reduction <maximumf>, %378, %cst_109 [2] : vector<2x8x8xf32> to vector<2x8xf32>
    %380 = vector.shape_cast %379 : vector<2x8xf32> to vector<2x8x1xf32>
    %381 = vector.broadcast %380 : vector<2x8x1xf32> to vector<2x8x8xf32>
    %382 = arith.subf %378, %381 : vector<2x8x8xf32>
    %383 = math.exp %382 : vector<2x8x8xf32>
    %cst_110 = arith.constant dense<0.000000e+00> : vector<2x8xf32>
    %384 = vector.multi_reduction <add>, %383, %cst_110 [2] : vector<2x8x8xf32> to vector<2x8xf32>
    %385 = vector.shape_cast %384 : vector<2x8xf32> to vector<2x8x1xf32>
    %386 = tpu.reciprocal %385 {approx = true} : vector<2x8x1xf32> -> vector<2x8x1xf32>
    %387 = vector.broadcast %386 : vector<2x8x1xf32> to vector<2x8x8xf32>
    %388 = arith.mulf %383, %387 : vector<2x8x8xf32>
    %389 = vector.extract_strided_slice %315 {offsets = [0, 0, 12], sizes = [2, 8, 4], strides = [1, 1, 1]} : vector<2x8x32xf32> to vector<2x8x4xf32>
    "tpu.trace_start"() <{level = 10 : i32, message = "bqk,bkd->bqd"}> : () -> ()
    %cst_111 = arith.constant dense<0.000000e+00> : vector<2x8x4xf32>
    %390 = tpu.matmul %388, %389, %cst_111 {dimension_numbers = #tpu.dot_dimension_numbers<[2], [1], [1], [2], [0, 0, 0, 1, 1, 2], [0], [0]>} : vector<2x8x8xf32>, vector<2x8x4xf32>, vector<2x8x4xf32> -> vector<2x8x4xf32>
    "tpu.trace_stop"() : () -> ()
    %391 = vector.shape_cast %390 : vector<2x8x4xf32> to vector<16x4xf32>
    %392 = vector.extract_strided_slice %312 {offsets = [12, 0], sizes = [4, 32], strides = [1, 1]} : vector<32x32xf32> to vector<4x32xf32>
    %cst_112 = arith.constant dense<0.000000e+00> : vector<16x32xf32>
    %393 = tpu.matmul %391, %392, %cst_112 {dimension_numbers = #tpu.dot_dimension_numbers<[1], [0], [0], [1], [0, 0, 1, 1], [], []>} : vector<16x4xf32>, vector<4x32xf32>, vector<16x32xf32> -> vector<16x32xf32>
    %394 = arith.addf %375, %393 : vector<16x32xf32>
    %395 = vector.extract_strided_slice %313 {offsets = [0, 0, 16], sizes = [2, 8, 4], strides = [1, 1, 1]} : vector<2x8x32xf32> to vector<2x8x4xf32>
    %396 = vector.extract_strided_slice %314 {offsets = [0, 0, 16], sizes = [2, 8, 4], strides = [1, 1, 1]} : vector<2x8x32xf32> to vector<2x8x4xf32>
    "tpu.trace_start"() <{level = 10 : i32, message = "bqd,bkd->bqk"}> : () -> ()
    %cst_113 = arith.constant dense<0.000000e+00> : vector<2x8x8xf32>
    %397 = tpu.matmul %395, %396, %cst_113 {dimension_numbers = #tpu.dot_dimension_numbers<[2], [2], [1], [1], [0, 0, 0, 1, 1, 1], [0], [0]>} : vector<2x8x4xf32>, vector<2x8x4xf32>, vector<2x8x8xf32> -> vector<2x8x8xf32>
    "tpu.trace_stop"() : () -> ()
    %cst_114 = arith.constant dense<0xFF800000> : vector<2x8xf32>
    %398 = vector.multi_reduction <maximumf>, %397, %cst_114 [2] : vector<2x8x8xf32> to vector<2x8xf32>
    %399 = vector.shape_cast %398 : vector<2x8xf32> to vector<2x8x1xf32>
    %400 = vector.broadcast %399 : vector<2x8x1xf32> to vector<2x8x8xf32>
    %401 = arith.subf %397, %400 : vector<2x8x8xf32>
    %402 = math.exp %401 : vector<2x8x8xf32>
    %cst_115 = arith.constant dense<0.000000e+00> : vector<2x8xf32>
    %403 = vector.multi_reduction <add>, %402, %cst_115 [2] : vector<2x8x8xf32> to vector<2x8xf32>
    %404 = vector.shape_cast %403 : vector<2x8xf32> to vector<2x8x1xf32>
    %405 = tpu.reciprocal %404 {approx = true} : vector<2x8x1xf32> -> vector<2x8x1xf32>
    %406 = vector.broadcast %405 : vector<2x8x1xf32> to vector<2x8x8xf32>
    %407 = arith.mulf %402, %406 : vector<2x8x8xf32>
    %408 = vector.extract_strided_slice %315 {offsets = [0, 0, 16], sizes = [2, 8, 4], strides = [1, 1, 1]} : vector<2x8x32xf32> to vector<2x8x4xf32>
    "tpu.trace_start"() <{level = 10 : i32, message = "bqk,bkd->bqd"}> : () -> ()
    %cst_116 = arith.constant dense<0.000000e+00> : vector<2x8x4xf32>
    %409 = tpu.matmul %407, %408, %cst_116 {dimension_numbers = #tpu.dot_dimension_numbers<[2], [1], [1], [2], [0, 0, 0, 1, 1, 2], [0], [0]>} : vector<2x8x8xf32>, vector<2x8x4xf32>, vector<2x8x4xf32> -> vector<2x8x4xf32>
    "tpu.trace_stop"() : () -> ()
    %410 = vector.shape_cast %409 : vector<2x8x4xf32> to vector<16x4xf32>
    %411 = vector.extract_strided_slice %312 {offsets = [16, 0], sizes = [4, 32], strides = [1, 1]} : vector<32x32xf32> to vector<4x32xf32>
    %cst_117 = arith.constant dense<0.000000e+00> : vector<16x32xf32>
    %412 = tpu.matmul %410, %411, %cst_117 {dimension_numbers = #tpu.dot_dimension_numbers<[1], [0], [0], [1], [0, 0, 1, 1], [], []>} : vector<16x4xf32>, vector<4x32xf32>, vector<16x32xf32> -> vector<16x32xf32>
    %413 = arith.addf %394, %412 : vector<16x32xf32>
    %414 = vector.extract_strided_slice %313 {offsets = [0, 0, 20], sizes = [2, 8, 4], strides = [1, 1, 1]} : vector<2x8x32xf32> to vector<2x8x4xf32>
    %415 = vector.extract_strided_slice %314 {offsets = [0, 0, 20], sizes = [2, 8, 4], strides = [1, 1, 1]} : vector<2x8x32xf32> to vector<2x8x4xf32>
    "tpu.trace_start"() <{level = 10 : i32, message = "bqd,bkd->bqk"}> : () -> ()
    %cst_118 = arith.constant dense<0.000000e+00> : vector<2x8x8xf32>
    %416 = tpu.matmul %414, %415, %cst_118 {dimension_numbers = #tpu.dot_dimension_numbers<[2], [2], [1], [1], [0, 0, 0, 1, 1, 1], [0], [0]>} : vector<2x8x4xf32>, vector<2x8x4xf32>, vector<2x8x8xf32> -> vector<2x8x8xf32>
    "tpu.trace_stop"() : () -> ()
    %cst_119 = arith.constant dense<0xFF800000> : vector<2x8xf32>
    %417 = vector.multi_reduction <maximumf>, %416, %cst_119 [2] : vector<2x8x8xf32> to vector<2x8xf32>
    %418 = vector.shape_cast %417 : vector<2x8xf32> to vector<2x8x1xf32>
    %419 = vector.broadcast %418 : vector<2x8x1xf32> to vector<2x8x8xf32>
    %420 = arith.subf %416, %419 : vector<2x8x8xf32>
    %421 = math.exp %420 : vector<2x8x8xf32>
    %cst_120 = arith.constant dense<0.000000e+00> : vector<2x8xf32>
    %422 = vector.multi_reduction <add>, %421, %cst_120 [2] : vector<2x8x8xf32> to vector<2x8xf32>
    %423 = vector.shape_cast %422 : vector<2x8xf32> to vector<2x8x1xf32>
    %424 = tpu.reciprocal %423 {approx = true} : vector<2x8x1xf32> -> vector<2x8x1xf32>
    %425 = vector.broadcast %424 : vector<2x8x1xf32> to vector<2x8x8xf32>
    %426 = arith.mulf %421, %425 : vector<2x8x8xf32>
    %427 = vector.extract_strided_slice %315 {offsets = [0, 0, 20], sizes = [2, 8, 4], strides = [1, 1, 1]} : vector<2x8x32xf32> to vector<2x8x4xf32>
    "tpu.trace_start"() <{level = 10 : i32, message = "bqk,bkd->bqd"}> : () -> ()
    %cst_121 = arith.constant dense<0.000000e+00> : vector<2x8x4xf32>
    %428 = tpu.matmul %426, %427, %cst_121 {dimension_numbers = #tpu.dot_dimension_numbers<[2], [1], [1], [2], [0, 0, 0, 1, 1, 2], [0], [0]>} : vector<2x8x8xf32>, vector<2x8x4xf32>, vector<2x8x4xf32> -> vector<2x8x4xf32>
    "tpu.trace_stop"() : () -> ()
    %429 = vector.shape_cast %428 : vector<2x8x4xf32> to vector<16x4xf32>
    %430 = vector.extract_strided_slice %312 {offsets = [20, 0], sizes = [4, 32], strides = [1, 1]} : vector<32x32xf32> to vector<4x32xf32>
    %cst_122 = arith.constant dense<0.000000e+00> : vector<16x32xf32>
    %431 = tpu.matmul %429, %430, %cst_122 {dimension_numbers = #tpu.dot_dimension_numbers<[1], [0], [0], [1], [0, 0, 1, 1], [], []>} : vector<16x4xf32>, vector<4x32xf32>, vector<16x32xf32> -> vector<16x32xf32>
    %432 = arith.addf %413, %431 : vector<16x32xf32>
    %433 = vector.extract_strided_slice %313 {offsets = [0, 0, 24], sizes = [2, 8, 4], strides = [1, 1, 1]} : vector<2x8x32xf32> to vector<2x8x4xf32>
    %434 = vector.extract_strided_slice %314 {offsets = [0, 0, 24], sizes = [2, 8, 4], strides = [1, 1, 1]} : vector<2x8x32xf32> to vector<2x8x4xf32>
    "tpu.trace_start"() <{level = 10 : i32, message = "bqd,bkd->bqk"}> : () -> ()
    %cst_123 = arith.constant dense<0.000000e+00> : vector<2x8x8xf32>
    %435 = tpu.matmul %433, %434, %cst_123 {dimension_numbers = #tpu.dot_dimension_numbers<[2], [2], [1], [1], [0, 0, 0, 1, 1, 1], [0], [0]>} : vector<2x8x4xf32>, vector<2x8x4xf32>, vector<2x8x8xf32> -> vector<2x8x8xf32>
    "tpu.trace_stop"() : () -> ()
    %cst_124 = arith.constant dense<0xFF800000> : vector<2x8xf32>
    %436 = vector.multi_reduction <maximumf>, %435, %cst_124 [2] : vector<2x8x8xf32> to vector<2x8xf32>
    %437 = vector.shape_cast %436 : vector<2x8xf32> to vector<2x8x1xf32>
    %438 = vector.broadcast %437 : vector<2x8x1xf32> to vector<2x8x8xf32>
    %439 = arith.subf %435, %438 : vector<2x8x8xf32>
    %440 = math.exp %439 : vector<2x8x8xf32>
    %cst_125 = arith.constant dense<0.000000e+00> : vector<2x8xf32>
    %441 = vector.multi_reduction <add>, %440, %cst_125 [2] : vector<2x8x8xf32> to vector<2x8xf32>
    %442 = vector.shape_cast %441 : vector<2x8xf32> to vector<2x8x1xf32>
    %443 = tpu.reciprocal %442 {approx = true} : vector<2x8x1xf32> -> vector<2x8x1xf32>
    %444 = vector.broadcast %443 : vector<2x8x1xf32> to vector<2x8x8xf32>
    %445 = arith.mulf %440, %444 : vector<2x8x8xf32>
    %446 = vector.extract_strided_slice %315 {offsets = [0, 0, 24], sizes = [2, 8, 4], strides = [1, 1, 1]} : vector<2x8x32xf32> to vector<2x8x4xf32>
    "tpu.trace_start"() <{level = 10 : i32, message = "bqk,bkd->bqd"}> : () -> ()
    %cst_126 = arith.constant dense<0.000000e+00> : vector<2x8x4xf32>
    %447 = tpu.matmul %445, %446, %cst_126 {dimension_numbers = #tpu.dot_dimension_numbers<[2], [1], [1], [2], [0, 0, 0, 1, 1, 2], [0], [0]>} : vector<2x8x8xf32>, vector<2x8x4xf32>, vector<2x8x4xf32> -> vector<2x8x4xf32>
    "tpu.trace_stop"() : () -> ()
    %448 = vector.shape_cast %447 : vector<2x8x4xf32> to vector<16x4xf32>
    %449 = vector.extract_strided_slice %312 {offsets = [24, 0], sizes = [4, 32], strides = [1, 1]} : vector<32x32xf32> to vector<4x32xf32>
    %cst_127 = arith.constant dense<0.000000e+00> : vector<16x32xf32>
    %450 = tpu.matmul %448, %449, %cst_127 {dimension_numbers = #tpu.dot_dimension_numbers<[1], [0], [0], [1], [0, 0, 1, 1], [], []>} : vector<16x4xf32>, vector<4x32xf32>, vector<16x32xf32> -> vector<16x32xf32>
    %451 = arith.addf %432, %450 : vector<16x32xf32>
    %452 = vector.extract_strided_slice %313 {offsets = [0, 0, 28], sizes = [2, 8, 4], strides = [1, 1, 1]} : vector<2x8x32xf32> to vector<2x8x4xf32>
    %453 = vector.extract_strided_slice %314 {offsets = [0, 0, 28], sizes = [2, 8, 4], strides = [1, 1, 1]} : vector<2x8x32xf32> to vector<2x8x4xf32>
    "tpu.trace_start"() <{level = 10 : i32, message = "bqd,bkd->bqk"}> : () -> ()
    %cst_128 = arith.constant dense<0.000000e+00> : vector<2x8x8xf32>
    %454 = tpu.matmul %452, %453, %cst_128 {dimension_numbers = #tpu.dot_dimension_numbers<[2], [2], [1], [1], [0, 0, 0, 1, 1, 1], [0], [0]>} : vector<2x8x4xf32>, vector<2x8x4xf32>, vector<2x8x8xf32> -> vector<2x8x8xf32>
    "tpu.trace_stop"() : () -> ()
    %cst_129 = arith.constant dense<0xFF800000> : vector<2x8xf32>
    %455 = vector.multi_reduction <maximumf>, %454, %cst_129 [2] : vector<2x8x8xf32> to vector<2x8xf32>
    %456 = vector.shape_cast %455 : vector<2x8xf32> to vector<2x8x1xf32>
    %457 = vector.broadcast %456 : vector<2x8x1xf32> to vector<2x8x8xf32>
    %458 = arith.subf %454, %457 : vector<2x8x8xf32>
    %459 = math.exp %458 : vector<2x8x8xf32>
    %cst_130 = arith.constant dense<0.000000e+00> : vector<2x8xf32>
    %460 = vector.multi_reduction <add>, %459, %cst_130 [2] : vector<2x8x8xf32> to vector<2x8xf32>
    %461 = vector.shape_cast %460 : vector<2x8xf32> to vector<2x8x1xf32>
    %462 = tpu.reciprocal %461 {approx = true} : vector<2x8x1xf32> -> vector<2x8x1xf32>
    %463 = vector.broadcast %462 : vector<2x8x1xf32> to vector<2x8x8xf32>
    %464 = arith.mulf %459, %463 : vector<2x8x8xf32>
    %465 = vector.extract_strided_slice %315 {offsets = [0, 0, 28], sizes = [2, 8, 4], strides = [1, 1, 1]} : vector<2x8x32xf32> to vector<2x8x4xf32>
    "tpu.trace_start"() <{level = 10 : i32, message = "bqk,bkd->bqd"}> : () -> ()
    %cst_131 = arith.constant dense<0.000000e+00> : vector<2x8x4xf32>
    %466 = tpu.matmul %464, %465, %cst_131 {dimension_numbers = #tpu.dot_dimension_numbers<[2], [1], [1], [2], [0, 0, 0, 1, 1, 2], [0], [0]>} : vector<2x8x8xf32>, vector<2x8x4xf32>, vector<2x8x4xf32> -> vector<2x8x4xf32>
    "tpu.trace_stop"() : () -> ()
    %467 = vector.shape_cast %466 : vector<2x8x4xf32> to vector<16x4xf32>
    %468 = vector.extract_strided_slice %312 {offsets = [28, 0], sizes = [4, 32], strides = [1, 1]} : vector<32x32xf32> to vector<4x32xf32>
    %cst_132 = arith.constant dense<0.000000e+00> : vector<16x32xf32>
    %469 = tpu.matmul %467, %468, %cst_132 {dimension_numbers = #tpu.dot_dimension_numbers<[1], [0], [0], [1], [0, 0, 1, 1], [], []>} : vector<16x4xf32>, vector<4x32xf32>, vector<16x32xf32> -> vector<16x32xf32>
    %470 = arith.addf %451, %469 : vector<16x32xf32>
    %471 = vector.extract_strided_slice %266 {offsets = [6, 0], sizes = [1, 32], strides = [1, 1]} : vector<9x32xf32> to vector<1x32xf32>
    %472 = vector.extract_strided_slice %266 {offsets = [7, 0], sizes = [1, 32], strides = [1, 1]} : vector<9x32xf32> to vector<1x32xf32>
    %cst_133 = arith.constant dense<0.000000e+00> : vector<16xf32>
    %473 = vector.multi_reduction <add>, %470, %cst_133 [1] : vector<16x32xf32> to vector<16xf32>
    %474 = vector.shape_cast %473 : vector<16xf32> to vector<16x1xf32>
    %cst_134 = arith.constant 3.200000e+01 : f32
    %475 = vector.broadcast %cst_134 : f32 to vector<16x1xf32>
    %476 = arith.divf %474, %475 : vector<16x1xf32>
    %477 = vector.broadcast %476 : vector<16x1xf32> to vector<16x32xf32>
    %478 = arith.subf %470, %477 : vector<16x32xf32>
    %479 = arith.mulf %478, %478 : vector<16x32xf32>
    %cst_135 = arith.constant dense<0.000000e+00> : vector<16xf32>
    %480 = vector.multi_reduction <add>, %479, %cst_135 [1] : vector<16x32xf32> to vector<16xf32>
    %481 = vector.shape_cast %480 : vector<16xf32> to vector<16x1xf32>
    %cst_136 = arith.constant 3.200000e+01 : f32
    %482 = vector.broadcast %cst_136 : f32 to vector<16x1xf32>
    %483 = arith.divf %481, %482 : vector<16x1xf32>
    %484 = vector.broadcast %476 : vector<16x1xf32> to vector<16x32xf32>
    %485 = arith.subf %470, %484 : vector<16x32xf32>
    %cst_137 = arith.constant 9.99999997E-7 : f32
    %486 = vector.broadcast %cst_137 : f32 to vector<16x1xf32>
    %487 = arith.addf %483, %486 : vector<16x1xf32>
    %488 = math.rsqrt %487 : vector<16x1xf32>
    %489 = vector.broadcast %488 : vector<16x1xf32> to vector<16x32xf32>
    %490 = arith.mulf %485, %489 : vector<16x32xf32>
    %491 = vector.broadcast %471 : vector<1x32xf32> to vector<16x32xf32>
    %492 = arith.mulf %490, %491 : vector<16x32xf32>
    %493 = vector.broadcast %472 : vector<1x32xf32> to vector<16x32xf32>
    %494 = arith.addf %492, %493 : vector<16x32xf32>
    %c1_138 = arith.constant 1 : index
    %c0_139 = arith.constant 0 : index
    %c0_140 = arith.constant 0 : index
    %495 = vector.load %arg4[%c1_138, %c0_139, %c0_140] : memref<2x32x128xf32, #tpu.memory_space<vmem>>, vector<1x32x128xf32>
    %496 = vector.shape_cast %495 : vector<1x32x128xf32> to vector<32x128xf32>
    %cst_141 = arith.constant dense<0.000000e+00> : vector<16x128xf32>
    %497 = tpu.matmul %494, %496, %cst_141 {dimension_numbers = #tpu.dot_dimension_numbers<[1], [0], [0], [1], [0, 0, 1, 1], [], []>} : vector<16x32xf32>, vector<32x128xf32>, vector<16x128xf32> -> vector<16x128xf32>
    %c1_142 = arith.constant 1 : index
    %c0_143 = arith.constant 0 : index
    %c0_144 = arith.constant 0 : index
    %498 = vector.load %arg5[%c1_142, %c0_143, %c0_144] : memref<2x1x128xf32, #tpu.memory_space<vmem>>, vector<1x1x128xf32>
    %499 = vector.shape_cast %498 : vector<1x1x128xf32> to vector<1x128xf32>
    %500 = vector.broadcast %499 : vector<1x128xf32> to vector<16x128xf32>
    %501 = arith.addf %497, %500 : vector<16x128xf32>
    %cst_145 = arith.constant 5.000000e-01 : f32
    %502 = vector.broadcast %cst_145 : f32 to vector<16x128xf32>
    %503 = arith.mulf %502, %501 : vector<16x128xf32>
    %cst_146 = arith.constant 4.471500e-02 : f32
    %504 = vector.broadcast %cst_146 : f32 to vector<16x128xf32>
    %505 = arith.mulf %504, %501 : vector<16x128xf32>
    %506 = arith.mulf %505, %501 : vector<16x128xf32>
    %507 = arith.mulf %506, %501 : vector<16x128xf32>
    %508 = arith.addf %501, %507 : vector<16x128xf32>
    %cst_147 = arith.constant 0.797884583 : f32
    %509 = vector.broadcast %cst_147 : f32 to vector<16x128xf32>
    %510 = arith.mulf %509, %508 : vector<16x128xf32>
    %511 = math.tanh %510 : vector<16x128xf32>
    %cst_148 = arith.constant 1.000000e+00 : f32
    %512 = vector.broadcast %cst_148 : f32 to vector<16x128xf32>
    %513 = arith.addf %512, %511 : vector<16x128xf32>
    %514 = arith.mulf %503, %513 : vector<16x128xf32>
    %c1_149 = arith.constant 1 : index
    %c0_150 = arith.constant 0 : index
    %c0_151 = arith.constant 0 : index
    %515 = vector.load %arg6[%c1_149, %c0_150, %c0_151] : memref<2x128x32xf32, #tpu.memory_space<vmem>>, vector<1x128x32xf32>
    %516 = vector.shape_cast %515 : vector<1x128x32xf32> to vector<128x32xf32>
    %cst_152 = arith.constant dense<0.000000e+00> : vector<16x32xf32>
    %517 = tpu.matmul %514, %516, %cst_152 {dimension_numbers = #tpu.dot_dimension_numbers<[1], [0], [0], [1], [0, 0, 1, 1], [], []>} : vector<16x128xf32>, vector<128x32xf32>, vector<16x32xf32> -> vector<16x32xf32>
    %518 = vector.extract_strided_slice %266 {offsets = [8, 0], sizes = [1, 32], strides = [1, 1]} : vector<9x32xf32> to vector<1x32xf32>
    %519 = vector.broadcast %518 : vector<1x32xf32> to vector<16x32xf32>
    %520 = arith.addf %517, %519 : vector<16x32xf32>
    %521 = arith.addf %470, %520 : vector<16x32xf32>
    %522 = vector.shape_cast %521 : vector<16x32xf32> to vector<2x8x32xf32>
    %523 = vector.extract_strided_slice %522 {offsets = [0, 0, 0], sizes = [2, 1, 32], strides = [1, 1, 1]} : vector<2x8x32xf32> to vector<2x1x32xf32>
    %524 = vector.shape_cast %523 : vector<2x1x32xf32> to vector<2x32xf32>
    %c0_153 = arith.constant 0 : index
    %c0_154 = arith.constant 0 : index
    %525 = vector.load %arg7[%c0_153, %c0_154] : memref<4x32xf32, #tpu.memory_space<vmem>>, vector<4x32xf32>
    %c0_155 = arith.constant 0 : index
    %c0_156 = arith.constant 0 : index
    %c0_157 = arith.constant 0 : index
    %526 = vector.load %arg8[%c0_155, %c0_156, %c0_157] : memref<2x32x32xf32, #tpu.memory_space<vmem>>, vector<2x32x32xf32>
    %527 = vector.extract_strided_slice %525 {offsets = [0, 0], sizes = [1, 32], strides = [1, 1]} : vector<4x32xf32> to vector<1x32xf32>
    %528 = vector.extract_strided_slice %525 {offsets = [1, 0], sizes = [1, 32], strides = [1, 1]} : vector<4x32xf32> to vector<1x32xf32>
    %cst_158 = arith.constant dense<0.000000e+00> : vector<2xf32>
    %529 = vector.multi_reduction <add>, %524, %cst_158 [1] : vector<2x32xf32> to vector<2xf32>
    %530 = vector.shape_cast %529 : vector<2xf32> to vector<2x1xf32>
    %cst_159 = arith.constant 3.200000e+01 : f32
    %531 = vector.broadcast %cst_159 : f32 to vector<2x1xf32>
    %532 = arith.divf %530, %531 : vector<2x1xf32>
    %533 = vector.broadcast %532 : vector<2x1xf32> to vector<2x32xf32>
    %534 = arith.subf %524, %533 : vector<2x32xf32>
    %535 = arith.mulf %534, %534 : vector<2x32xf32>
    %cst_160 = arith.constant dense<0.000000e+00> : vector<2xf32>
    %536 = vector.multi_reduction <add>, %535, %cst_160 [1] : vector<2x32xf32> to vector<2xf32>
    %537 = vector.shape_cast %536 : vector<2xf32> to vector<2x1xf32>
    %cst_161 = arith.constant 3.200000e+01 : f32
    %538 = vector.broadcast %cst_161 : f32 to vector<2x1xf32>
    %539 = arith.divf %537, %538 : vector<2x1xf32>
    %540 = vector.broadcast %532 : vector<2x1xf32> to vector<2x32xf32>
    %541 = arith.subf %524, %540 : vector<2x32xf32>
    %cst_162 = arith.constant 9.99999997E-7 : f32
    %542 = vector.broadcast %cst_162 : f32 to vector<2x1xf32>
    %543 = arith.addf %539, %542 : vector<2x1xf32>
    %544 = math.rsqrt %543 : vector<2x1xf32>
    %545 = vector.broadcast %544 : vector<2x1xf32> to vector<2x32xf32>
    %546 = arith.mulf %541, %545 : vector<2x32xf32>
    %547 = vector.broadcast %527 : vector<1x32xf32> to vector<2x32xf32>
    %548 = arith.mulf %546, %547 : vector<2x32xf32>
    %549 = vector.broadcast %528 : vector<1x32xf32> to vector<2x32xf32>
    %550 = arith.addf %548, %549 : vector<2x32xf32>
    %551 = vector.extract_strided_slice %526 {offsets = [0, 0, 0], sizes = [1, 32, 32], strides = [1, 1, 1]} : vector<2x32x32xf32> to vector<1x32x32xf32>
    %552 = vector.shape_cast %551 : vector<1x32x32xf32> to vector<32x32xf32>
    %cst_163 = arith.constant dense<0.000000e+00> : vector<2x32xf32>
    %553 = tpu.matmul %550, %552, %cst_163 {dimension_numbers = #tpu.dot_dimension_numbers<[1], [0], [0], [1], [0, 0, 1, 1], [], []>} : vector<2x32xf32>, vector<32x32xf32>, vector<2x32xf32> -> vector<2x32xf32>
    %554 = vector.extract_strided_slice %525 {offsets = [2, 0], sizes = [1, 32], strides = [1, 1]} : vector<4x32xf32> to vector<1x32xf32>
    %555 = vector.broadcast %554 : vector<1x32xf32> to vector<2x32xf32>
    %556 = arith.addf %553, %555 : vector<2x32xf32>
    %cst_164 = arith.constant 0.000000e+00 : f32
    %557 = vector.broadcast %cst_164 : f32 to vector<2x32xf32>
    %558 = arith.maximumf %556, %557 : vector<2x32xf32>
    %559 = vector.extract_strided_slice %526 {offsets = [1, 0, 0], sizes = [1, 32, 32], strides = [1, 1, 1]} : vector<2x32x32xf32> to vector<1x32x32xf32>
    %560 = vector.shape_cast %559 : vector<1x32x32xf32> to vector<32x32xf32>
    %cst_165 = arith.constant dense<0.000000e+00> : vector<2x32xf32>
    %561 = tpu.matmul %558, %560, %cst_165 {dimension_numbers = #tpu.dot_dimension_numbers<[1], [0], [0], [1], [0, 0, 1, 1], [], []>} : vector<2x32xf32>, vector<32x32xf32>, vector<2x32xf32> -> vector<2x32xf32>
    %562 = vector.extract_strided_slice %525 {offsets = [3, 0], sizes = [1, 32], strides = [1, 1]} : vector<4x32xf32> to vector<1x32xf32>
    %563 = vector.broadcast %562 : vector<1x32xf32> to vector<2x32xf32>
    %564 = arith.addf %561, %563 : vector<2x32xf32>
    %cst_166 = arith.constant 0.000000e+00 : f32
    %565 = vector.broadcast %cst_166 : f32 to vector<2x32xf32>
    %566 = arith.subf %565, %564 : vector<2x32xf32>
    %567 = math.exp %566 : vector<2x32xf32>
    %cst_167 = arith.constant 1.000000e+00 : f32
    %568 = vector.broadcast %cst_167 : f32 to vector<2x32xf32>
    %569 = arith.addf %568, %567 : vector<2x32xf32>
    %cst_168 = arith.constant 1.000000e+00 : f32
    %570 = vector.broadcast %cst_168 : f32 to vector<2x32xf32>
    %571 = arith.divf %570, %569 : vector<2x32xf32>
    %572 = arith.mulf %550, %571 : vector<2x32xf32>
    %c0_169 = arith.constant 0 : index
    %c0_170 = arith.constant 0 : index
    %573 = vector.load %arg9[%c0_169, %c0_170] : memref<33x7xf32, #tpu.memory_space<vmem>>, vector<33x7xf32>
    %574 = vector.extract_strided_slice %573 {offsets = [0, 0], sizes = [32, 7], strides = [1, 1]} : vector<33x7xf32> to vector<32x7xf32>
    %cst_171 = arith.constant dense<0.000000e+00> : vector<2x7xf32>
    %575 = tpu.matmul %572, %574, %cst_171 {dimension_numbers = #tpu.dot_dimension_numbers<[1], [0], [0], [1], [0, 0, 1, 1], [], []>} : vector<2x32xf32>, vector<32x7xf32>, vector<2x7xf32> -> vector<2x7xf32>
    %576 = vector.extract_strided_slice %573 {offsets = [32, 0], sizes = [1, 7], strides = [1, 1]} : vector<33x7xf32> to vector<1x7xf32>
    %577 = vector.broadcast %576 : vector<1x7xf32> to vector<2x7xf32>
    %578 = arith.addf %575, %577 : vector<2x7xf32>
    %c0_172 = arith.constant 0 : index
    %c0_173 = arith.constant 0 : index
    %579 = vector.load %arg10[%c0_172, %c0_173] : memref<2x7xf32, #tpu.memory_space<vmem>>, vector<2x7xf32>
    tpu.vector_store %arg10[%c0_172, %c0_173], %578 {strides = array<i32>} : memref<2x7xf32, #tpu.memory_space<vmem>>, vector<2x7xf32>,
    return
  }
}

</mosaic_0001>

<bundles_post_ra>
// kernel: vit_forward.1
= control target key start
LH: loop header
LB: loop body
LE: loop exit
PB: predicated region body
PF: predicated region fallthrough
CT: control target
= control target key end

     0   :  { %vm45_vm0 = vcmask 1040384   ;;  %s10628_s0 = inlined_call_operand.vmem [shape: f32[2,7,32], index: 0, kind: input, shape index: {}]   ;;  %s10629_s1 = inlined_call_operand.vmem [shape: f32[8,32], index: 1, kind: input, shape index: {}]   ;;  %s10630_s2 = inlined_call_operand.vmem [shape: f32[2,9,32], index: 2, kind: input, shape index: {}]   ;;  %s10631_s3 = inlined_call_operand.vmem [shape: f32[2,4,32,32], index: 3, kind: input, shape index: {}]   ;;  %s10632_s4 = inlined_call_operand.vmem [shape: f32[2,32,128], index: 4, kind: input, shape index: {}]   ;;  %s10633_s5 = inlined_call_operand.vmem [shape: f32[2,1,128], index: 5, kind: input, shape index: {}]   ;;  %s10634_s6 = inlined_call_operand.vmem [shape: f32[2,128,32], index: 6, kind: input, shape index: {}]   ;;  %s10635_s7 = inlined_call_operand.vmem [shape: f32[4,32], index: 7, kind: input, shape index: {}]   ;;  %s10636_s8 = inlined_call_operand.vmem [shape: f32[2,32,32], index: 8, kind: input, shape index: {}]   ;;  %s10637_s9 = inlined_call_operand.vmem [shape: f32[33,7], index: 9, kind: input, shape index: {}]   ;;  %s10638_s10 = inlined_call_operand.hbm [shape: f32[2,7], index: 10, kind: output, shape index: {}]  }
   0x1   :  { %v36_v0 = vld [vmem:[%s10628_s0] sm:$0x7f]  ;;  %v37_v3 = vld [vmem:[%s10628_s0 + $0x8] sm:$0x7f] }
   0x2   :  { %v38_v1 = vld [vmem:[%s10629_s1] sm:$0xff]  ;;  %v41_v2 = vrot.slane %v36_v0, 7 }
   0x3   :  { %15 = vsyncpa [#allocation3], 0  ;;  %v42_v4 = vrot.slane %v37_v3, 7  ;;  %vm68_vm1 = vcmask 261120   ;;  %v55_v21 = vld [vmem:[%s10631_s3 + $0x18] sm:$0xff]  ;;  %v54_v23 = vld [vmem:[%s10631_s3 + $0x10] sm:$0xff]  ;;  %v96_v35 = vlaneseq }
   0x4   :  { %v46_v5 = vsel %vm45_vm0, 0.0, %v41_v2  ;;  %v59_v22 = vld [vmem:[%s10631_s3 + $0x38] sm:$0xff]  ;;  %8610 = vmatprep.subr.mxu0 %v55_v21  ;;  %v58_v24 = vld [vmem:[%s10631_s3 + $0x30] sm:$0xff]  ;;  %v53_v25 = vld [vmem:[%s10631_s3 + $0x8] sm:$0xff]  ;;  %v9393_v54 = vmov 0.0   ;;  %vm9394_vm2 = vmmov 0  }
   0x5   :  { %v9467_v6 = vadd.f32 %v46_v5, %v38_v1  ;;  %v47_v7 = vsel %vm45_vm0, 0.0, %v42_v4  ;;  %8621 = vmatprep.subr.mxu1 %v59_v22  ;;  %8611 = vmatpush3.msra.mxu0 %v55_v21  ;;  %v57_v26 = vld [vmem:[%s10631_s3 + $0x28] sm:$0xff]  ;;  %v52_v27 = vld [vmem:[%s10631_s3] sm:$0xff]  ;;  %v63_v29 = vld [vmem:[%s10631_s3 + $0x58] sm:$0xff]  ;;  %v9506_v37 = vshrl.u32 %v96_v35, 7  ;;  %vm357_vm3 = vcmask 31744  }
   0x6   :  { %v9469_v8 = vadd.f32 %v47_v7, %v38_v1  ;;  %8622 = vmatpush3.msra.mxu1 %v59_v22  ;;  %8612 = vmatprep.subr.mxu0 %v54_v23  ;;  %v56_v28 = vld [vmem:[%s10631_s3 + $0x20] sm:$0xff]  ;;  %v62_v51 = vld [vmem:[%s10631_s3 + $0x50] sm:$0xff]  ;;  %v61_v52 = vld [vmem:[%s10631_s3 + $0x48] sm:$0xff]  ;;  %vm510_vm4 = vcmask 64512   ;;  %s9395_s21 = smov 124   ;;  %vm685_vm5 = vcmask 1043456  }
   0x7   :  { %v69_v9 = vsel %vm68_vm1, %v9467_v6, 0.0  ;;  %8623 = vmatprep.subr.mxu1 %v58_v24  ;;  %8613 = vmatpush3.msra.mxu0 %v54_v23  ;;  %v9509_v38 = vsub.s32 0, %v9506_v37  ;;  %v9514_v39 = vld [vmem:[%s10630_s2] sm:$0xff]  ;;  %v9517_v40 = vsub.s32 1, %v9506_v37  ;;  %v9545_v55 = vsub.s32 3, %v9506_v37  ;;  %s9396_s24 = smov 120  }
   0x8   :  { %70 = vadd.xlane.f32.xlu0 %v69_v9  ;;  %v72_v10 = vsel %vm68_vm1, %v9469_v8, 0.0  ;;  %8624 = vmatpush3.msra.mxu1 %v58_v24  ;;  %v60_v53 = vld [vmem:[%s10631_s3 + $0x40] sm:$0xff]  ;;  %v9548_v56 = vsub.s32 2, %v9506_v37  ;;  %v274_v63 = vsub.s32 4, %v9506_v37  ;;  %s9397_s25 = smov 116   ;;  %s9398_s28 = smov 112  }
   0x9   :  { %8614 = vmatprep.subr.mxu0 %v53_v25  ;;  %8625 = vmatprep.subr.mxu1 %v57_v26  ;;  %v99_v41 = vrot.slane %v9514_v39, %v9509_v38  ;;  %v105_v44 = vrot.slane %v9514_v39, %v9517_v40  ;;  %v196_v59 = vrot.slane %v9514_v39, %v9545_v55  ;;  %s9399_s29 = smov 108   ;;  %s9400_s12 = smov 104   ;;  %vm7812_vm6 = vcmask 1041409  }
   0xa   :  { %8615 = vmatpush3.msra.mxu0 %v53_v25  ;;  %8626 = vmatpush3.msra.mxu1 %v57_v26  ;;  %v111_v0 = vrot.slane %v9514_v39, %v9548_v56  ;;  %v275_v3 = vrot.slane %v9514_v39, %v274_v63  ;;  %s9401_s13 = smov 100   ;;  %vm7815_vm7 = vcmask 254976   ;;  %vm8112_vm8 = vcmask 50176  }
   0xb   :  { %8616 = vmatprep.subr.mxu0 %v52_v27  ;;  %8627 = vmatprep.subr.mxu1 %v56_v28 }
   0xc   :  { %73 = vadd.xlane.f32.xlu0 %v72_v10  ;;  %8617 = vmatpush3.msra.mxu0 %v52_v27 }
   0xd   :  { %8628 = vmatpush3.msra.mxu1 %v56_v28  ;;  %8632 = vmatprep.subr.mxu0 %v63_v29 }
   0xe   :  { %8643 = vmatprep.subr.mxu1 %v9393_v54 }
  0x91   :  { %v71_v11 = vpop.xlane.xlu0 %70 }
  0x92   :  { %v76_v12 = vmul.f32 0.03125, %v71_v11 }
  0x94   :  { %v78_v13 = vsub.f32 %v9467_v6, %v76_v12 }
  0x95   :  { %v74_v14 = vpop.xlane.xlu0 %73 }
  0x96   :  { %v77_v15 = vmul.f32 0.03125, %v74_v14  ;;  %v80_v16 = vmul.f32 %v78_v13, %v78_v13 }
  0x98   :  { %v79_v17 = vsub.f32 %v9469_v8, %v77_v15  ;;  %v82_v18 = vsel %vm68_vm1, %v80_v16, 0.0 }
  0x99   :  { %83 = vadd.xlane.f32.xlu1 %v82_v18 }
  0x9a   :  { %v81_v19 = vmul.f32 %v79_v17, %v79_v17 }
  0x9c   :  { %v85_v20 = vsel %vm68_vm1, %v81_v19, 0.0 }
  0x9d   :  { %86 = vadd.xlane.f32.xlu1 %v85_v20 }
 0x122   :  { %v84_v30 = vpop.xlane.xlu1 %83 }
 0x123   :  { %v88_v31 = vmul.f32 0.03125, %v84_v30 }
 0x125   :  { %v90_v32 = vadd.f32 1e-06, %v88_v31 }
 0x126   :  { %v87_v33 = vpop.xlane.xlu1 %86 }
 0x127   :  { %9211 = vrsqrt.f32 %v90_v32  ;;  %v89_v34 = vmul.f32 0.03125, %v87_v33 }
 0x129   :  { %v91_v36 = vadd.f32 1e-06, %v89_v34 }
 0x12b   :  { %9213 = vrsqrt.f32 %v91_v36  ;;  %v9611_v36 = vld [vmem:[%s10631_s3 + $0x60] sm:$0xff] }
 0x134   :  { %v9212_v42 = vpop.eup %9211 }
 0x135   :  { %v94_v43 = vmul.f32 %v9212_v42, %v78_v13 }
 0x137   :  { %v100_v45 = vmul.f32 %v99_v41, %v94_v43 }
 0x138   :  { %v9214_v46 = vpop.eup %9213 }
 0x139   :  { %v106_v47 = vadd.f32 %v105_v44, %v100_v45  ;;  %v95_v48 = vmul.f32 %v9214_v46, %v79_v17 }
 0x13b   :  { %8618 = vmatprep.mubr.msk.f32.mxu0 %vm68_vm1, %v106_v47  ;;  %8629 = vmatprep.mubr.msk.f32.mxu1 %vm68_vm1, %v106_v47  ;;  %v101_v49 = vmul.f32 %v99_v41, %v95_v48 }
 0x13d   :  { %v107_v50 = vadd.f32 %v105_v44, %v101_v49 }
 0x13f   :  { %8619 = vmatmul.mubr.msk.f32.vlgmr.msra.gmra.mxu0 %vm68_vm1, %v107_v50  ;;  %8630 = vmatmul.mubr.msk.f32.vlgmr.msra.gmra.mxu1 %vm68_vm1, %v107_v50 }
 0x140   :  { %8633 = vmatpush3.msra.mxu0 %v63_v29  ;;  %8640 = vmatprep.mubr.msk.f32.mxu0 %vm68_vm1, %v106_v47 }
 0x141   :  { %8634 = vmatprep.subr.mxu0 %v62_v51  ;;  %8645 = vmatprep.mubr.msk.f32.mxu1 %vm9394_vm2, %v9393_v54 }
 0x142   :  { %8635 = vmatpush3.msra.mxu0 %v62_v51 }
 0x143   :  { %8636 = vmatprep.subr.mxu0 %v61_v52 }
 0x144   :  { %8637 = vmatpush3.msra.mxu0 %v61_v52 }
 0x145   :  { %8638 = vmatprep.subr.mxu0 %v60_v53 }
 0x146   :  { %8639 = vmatpush3.msra.mxu0 %v60_v53 }
 0x147   :  { %8641 = vmatmul.mubr.msk.f32.vlgmr.msra.gmra.mxu0 %vm68_vm1, %v107_v50  ;;  %8653 = vmatprep.subr.mxu0 %v9393_v54 }
 0x148   :  { %8655 = vmatprep.mubr.msk.f32.mxu0 %vm9394_vm2, %v9393_v54 }
 0x1ff   :  { %v8620_v57 = vpop.f32.mrf.mxu0  ;;  %v8631_v58 = vpop.f32.mrf.mxu1 }
 0x200   :  { %v9562_v2 = vadd.f32 %v8631_v58, %v196_v59  ;;  %v9573_v5 = vadd.f32 %v8620_v57, %v111_v0 }
 0x201   :  { %v263_v60 = vpop.f32.mrf.mxu1  ;;  %v184_v61 = vpop.f32.mrf.mxu0 }
 0x202   :  { %v9552_v62 = vadd.f32 %v263_v60, %v196_v59  ;;  %v9559_v1 = vadd.f32 %v184_v61, %v111_v0 }
 0x204   :  { %8644 = vmatpush3.xpose.msk.msra.mxu1 %vm357_vm3, %v9552_v62 }
 0x205   :  { %8648 = vmatprep.subr.mxu1 %v9393_v54 }
 0x207   :  { %v8642_v4 = vpop.f32.mrf.mxu0  ;;  %8646 = vmatmul.mubr.msk.f32.vlgmr.msra.gmra.mxu1 %vm357_vm3, %v9559_v1 }
 0x208   :  { %8649 = vmatpush3.xpose.msk.msra.mxu1 %vm357_vm3, %v9562_v2  ;;  %8650 = vmatprep.mubr.msk.f32.mxu1 %vm9394_vm2, %v9393_v54  ;;  %v9576_v9 = vadd.f32 %v8642_v4, %v275_v3 }
 0x209   :  { %v342_v7 = vpop.f32.mrf.mxu0  ;;  %8658 = vmatprep.subr.mxu1 %v9393_v54 }
 0x20a   :  { %v9578_v10 = vadd.f32 %v342_v7, %v275_v3 }
 0x20b   :  { %8651 = vmatmul.mubr.msk.f32.vlgmr.msra.gmra.mxu1 %vm357_vm3, %v9573_v5 }
 0x20c   :  { %8654 = vmatpush3.msra.mxu0 %v9578_v10  ;;  %8659 = vmatpush3.msra.mxu1 %v9576_v9 }
 0x20d   :  { %8660 = vmatprep.mubr.msk.f32.mxu1 %vm9394_vm2, %v9393_v54  ;;  %8668 = vmatprep.subr.mxu1 %v9393_v54 }
 0x20e   :  { %8663 = vmatprep.subr.msk.mxu0 %vm685_vm5, %v9611_v36 }
 0x2c7   :  { %v430_v11 = vpop.f32.mrf.mxu1 }
 0x2c8   :  { %v511_v12 = vsel %vm510_vm4, %v430_v11, -inf }
 0x2c9   :  { %512 = vmax.xlane.f32.xlu0 %v511_v12  ;;  %v8647_v13 = vpop.f32.mrf.mxu1 }
 0x2cb   :  { %v506_v14 = vpop.f32.mrf.mxu1 }
 0x2cc   :  { %v514_v15 = vsel %vm510_vm4, %v506_v14, -inf }
 0x2cd   :  { %515 = vmax.xlane.f32.xlu1 %v514_v15  ;;  %v8652_v16 = vpop.f32.mrf.mxu1 }
 0x2ce   :  { %v1098_v16 = vrot.slane %v9611_v36, 4 }
 0x352   :  { %v513_v17 = vpop.xlane.xlu0 %512 }
 0x353   :  { %v517_v18 = vsub.f32 %v430_v11, %v513_v17 }
 0x355   :  { %v519_v19 = vmul.f32 1.442695, %v517_v18 }
 0x356   :  { %v516_v20 = vpop.xlane.xlu1 %515 }
 0x357   :  { %9215 = vpow2.f32 %v519_v19  ;;  %v518_v21 = vsub.f32 %v506_v14, %v516_v20 }
 0x359   :  { %v521_v22 = vmul.f32 1.442695, %v518_v21 }
 0x35b   :  { %9217 = vpow2.f32 %v521_v22 }
 0x364   :  { %v9216_v23 = vpop.eup %9215 }
 0x365   :  { %v523_v24 = vsel %vm510_vm4, %v9216_v23, 0.0 }
 0x366   :  { %524 = vadd.xlane.f32.xlu0 %v523_v24 }
 0x368   :  { %v9218_v25 = vpop.eup %9217 }
 0x369   :  { %v526_v26 = vsel %vm510_vm4, %v9218_v25, 0.0 }
 0x36a   :  { %527 = vadd.xlane.f32.xlu1 %v526_v26 }
 0x37b   :  { %846 = vrot.lane.b32.xlu1 %v9562_v2, %s9395_s21 }
 0x37c   :  { %768 = vrot.lane.b32.xlu0 %v9552_v62, %s9395_s21 }
 0x37f   :  { %766 = vrot.lane.b32.xlu1 %v9559_v1, %s9395_s21 }
 0x383   :  { %844 = vrot.lane.b32.xlu1 %v9573_v5, %s9395_s21 }
 0x3ef   :  { %v525_v27 = vpop.xlane.xlu0 %524 }
 0x3f0   :  { %9219 = vrcp.f32 %v525_v27 }
 0x3f3   :  { %v528_v28 = vpop.xlane.xlu1 %527  ;;  %v769_v34 = vpop.permute.xlu0 %768 }
 0x3f4   :  { %9221 = vrcp.f32 %v528_v28 }
 0x3f7   :  { %v847_v32 = vpop.permute.xlu1 %846 }
 0x3fb   :  { %v767_v35 = vpop.permute.xlu1 %766 }
 0x3fd   :  { %v9220_v29 = vpop.eup %9219 }
 0x3fe   :  { %v531_v30 = vmul.f32 %v9220_v29, %v9216_v23 }
 0x3ff   :  { %v845_v45 = vpop.permute.xlu1 %844 }
 0x400   :  { %8656 = vmatmul.mubr.msk.f32.vlgmr.msra.gmra.mxu0 %vm510_vm4, %v531_v30 }
 0x401   :  { %v9222_v31 = vpop.eup %9221  ;;  %8664 = vmatpush3.msk.msra.mxu0 %vm685_vm5, %v9611_v36 }
 0x402   :  { %v532_v33 = vmul.f32 %v9222_v31, %v9218_v25  ;;  %8673 = vmatprep.subr.mxu0 %v9393_v54 }
 0x404   :  { %8661 = vmatmul.mubr.msk.f32.vlgmr.msra.gmra.mxu1 %vm510_vm4, %v532_v33 }
 0x405   :  { %8669 = vmatpush3.xpose.msk.msra.mxu1 %vm357_vm3, %v769_v34  ;;  %8670 = vmatprep.mubr.msk.f32.mxu1 %vm9394_vm2, %v9393_v54 }
 0x406   :  { %8678 = vmatprep.subr.mxu1 %v9393_v54 }
 0x408   :  { %8671 = vmatmul.mubr.msk.f32.vlgmr.msra.gmra.mxu1 %vm357_vm3, %v767_v35 }
 0x409   :  { %8680 = vmatprep.mubr.msk.f32.mxu1 %vm9394_vm2, %v9393_v54 }
 0x4c0   :  { %v602_v41 = vpop.f32.mrf.mxu0 }
 0x4c1   :  { %8665 = vmatprep.mubr.msk.f32.mxu0 %vm357_vm3, %v602_v41  ;;  %v353_v41 = vsub.s32 5, %v9506_v37 }
 0x4c2   :  { %v8657_v42 = vpop.f32.mrf.mxu0 }
 0x4c3   :  { %v354_v42 = vrot.slane %v9514_v39, %v353_v41 }
 0x4c4   :  { %v675_v43 = vpop.f32.mrf.mxu1 }
 0x4c5   :  { %8666 = vmatmul.mubr.msk.f32.vlgmr.msra.gmra.mxu0 %vm357_vm3, %v675_v43  ;;  %v356_v43 = vadd.f32 %v354_v42, %v9469_v8 }
 0x4c6   :  { %8674 = vmatpush3.xpose.msk.msra.mxu0 %vm357_vm3, %v847_v32  ;;  %v8662_v44 = vpop.f32.mrf.mxu1  ;;  %8675 = vmatprep.mubr.msk.f32.mxu0 %vm9394_vm2, %v9393_v54 }
 0x4c7   :  { %8683 = vmatprep.subr.mxu0 %v9393_v54  ;;  %v355_v44 = vadd.f32 %v354_v42, %v9467_v6 }
 0x4c8   :  { %v840_v46 = vpop.f32.mrf.mxu1 }
 0x4c9   :  { %8676 = vmatmul.mubr.msk.f32.vlgmr.msra.gmra.mxu0 %vm357_vm3, %v845_v45  ;;  %v922_v47 = vsel %vm510_vm4, %v840_v46, -inf }
 0x4ca   :  { %923 = vmax.xlane.f32.xlu0 %v922_v47  ;;  %v8672_v48 = vpop.f32.mrf.mxu1  ;;  %8685 = vmatprep.mubr.msk.f32.mxu0 %vm9394_vm2, %v9393_v54 }
 0x553   :  { %v924_v49 = vpop.xlane.xlu0 %923 }
 0x554   :  { %v928_v50 = vsub.f32 %v840_v46, %v924_v49 }
 0x556   :  { %v930_v51 = vmul.f32 1.442695, %v928_v50 }
 0x558   :  { %9223 = vpow2.f32 %v930_v51 }
 0x565   :  { %v9224_v52 = vpop.eup %9223 }
 0x566   :  { %v934_v53 = vsel %vm510_vm4, %v9224_v52, 0.0 }
 0x567   :  { %935 = vadd.xlane.f32.xlu0 %v934_v53 }
 0x585   :  { %v9629_v57 = vpop.f32.mrf.mxu0 }
 0x586   :  { %v765_v45 = vadd.f32 %v9629_v57, %v356_v43 }
 0x587   :  { %v9631_v58 = vpop.f32.mrf.mxu0 }
 0x588   :  { %v764_v47 = vadd.f32 %v9631_v58, %v355_v44 }
 0x589   :  { %v918_v59 = vpop.f32.mrf.mxu0 }
 0x58a   :  { %v925_v60 = vsel %vm510_vm4, %v918_v59, -inf }
 0x58b   :  { %926 = vmax.xlane.f32.xlu1 %v925_v60  ;;  %v8677_v61 = vpop.f32.mrf.mxu0 }
 0x59c   :  { %1022 = vrot.lane.b32.xlu1 %v9576_v9, %s9395_s21 }
 0x5a0   :  { %1186 = vrot.lane.b32.xlu1 %v9552_v62, %s9396_s24 }
 0x5a4   :  { %1264 = vrot.lane.b32.xlu1 %v9562_v2, %s9396_s24 }
 0x5a8   :  { %1262 = vrot.lane.b32.xlu1 %v9573_v5, %s9396_s24 }
 0x5f0   :  { %v936_v13 = vpop.xlane.xlu0 %935 }
 0x614   :  { %v927_v0 = vpop.xlane.xlu1 %926 }
 0x615   :  { %v929_v3 = vsub.f32 %v918_v59, %v927_v0 }
 0x617   :  { %v932_v4 = vmul.f32 1.442695, %v929_v3 }
 0x618   :  { %v1023_v7 = vpop.permute.xlu1 %1022 }
 0x619   :  { %9225 = vpow2.f32 %v932_v4  ;;  %8684 = vmatpush3.msra.mxu0 %v1023_v7 }
 0x61a   :  { %8693 = vmatprep.subr.mxu0 %v9393_v54  ;;  %9227 = vrcp.f32 %v936_v13 }
 0x61c   :  { %v1187_v21 = vpop.permute.xlu1 %1186 }
 0x620   :  { %v1265_v25 = vpop.permute.xlu1 %1264 }
 0x624   :  { %v1263_v28 = vpop.permute.xlu1 %1262 }
 0x626   :  { %v9226_v11 = vpop.eup %9225 }
 0x627   :  { %v937_v12 = vsel %vm510_vm4, %v9226_v11, 0.0  ;;  %v9228_v15 = vpop.eup %9227 }
 0x628   :  { %938 = vadd.xlane.f32.xlu0 %v937_v12  ;;  %v942_v18 = vmul.f32 %v9228_v15, %v9224_v52 }
 0x63e   :  { %945 = vrot.lane.b32.xlu0 %v9578_v10, %s9395_s21 }
 0x642   :  { %1184 = vrot.lane.b32.xlu0 %v9559_v1, %s9396_s24 }
 0x6b1   :  { %v939_v14 = vpop.xlane.xlu0 %938 }
 0x6b2   :  { %9229 = vrcp.f32 %v939_v14  ;;  %v9711_v14 = vld [vmem:[%s10631_s3 + $0x68] sm:$0xff] }
 0x6b5   :  { %v946_v17 = vpop.permute.xlu0 %945 }
 0x6b6   :  { %8679 = vmatpush3.msra.mxu1 %v946_v17 }
 0x6b7   :  { %8681 = vmatmul.mubr.msk.f32.vlgmr.msra.gmra.mxu1 %vm510_vm4, %v942_v18  ;;  %8688 = vmatprep.subr.msk.mxu1 %vm685_vm5, %v1098_v16 }
 0x6b8   :  { %8689 = vmatpush3.msk.msra.mxu1 %vm685_vm5, %v1098_v16 }
 0x6b9   :  { %8698 = vmatprep.subr.mxu1 %v9393_v54  ;;  %v1185_v22 = vpop.permute.xlu0 %1184 }
 0x6bf   :  { %v9230_v19 = vpop.eup %9229 }
 0x6c0   :  { %v943_v20 = vmul.f32 %v9230_v19, %v9226_v11 }
 0x6c2   :  { %8686 = vmatmul.mubr.msk.f32.vlgmr.msra.gmra.mxu0 %vm510_vm4, %v943_v20 }
 0x6c3   :  { %8694 = vmatpush3.xpose.msk.msra.mxu0 %vm357_vm3, %v1187_v21  ;;  %8695 = vmatprep.mubr.msk.f32.mxu0 %vm9394_vm2, %v9393_v54 }
 0x6c4   :  { %8703 = vmatprep.subr.mxu0 %v9393_v54 }
 0x6c6   :  { %8696 = vmatmul.mubr.msk.f32.vlgmr.msra.gmra.mxu0 %vm357_vm3, %v1185_v22 }
 0x6c7   :  { %8705 = vmatprep.mubr.msk.f32.mxu0 %vm9394_vm2, %v9393_v54 }
 0x777   :  { %v1017_v23 = vpop.f32.mrf.mxu1 }
 0x778   :  { %8690 = vmatprep.mubr.msk.f32.mxu1 %vm357_vm3, %v1017_v23 }
 0x779   :  { %v8682_v24 = vpop.f32.mrf.mxu1 }
 0x782   :  { %v1094_v26 = vpop.f32.mrf.mxu0 }
 0x783   :  { %8691 = vmatmul.mubr.msk.f32.vlgmr.msra.gmra.mxu1 %vm357_vm3, %v1094_v26 }
 0x784   :  { %8699 = vmatpush3.xpose.msk.msra.mxu1 %vm357_vm3, %v1265_v25  ;;  %v8687_v27 = vpop.f32.mrf.mxu0  ;;  %8700 = vmatprep.mubr.msk.f32.mxu1 %vm9394_vm2, %v9393_v54 }
 0x785   :  { %8708 = vmatprep.subr.mxu1 %v9393_v54 }
 0x786   :  { %v1258_v29 = vpop.f32.mrf.mxu0 }
 0x787   :  { %8701 = vmatmul.mubr.msk.f32.vlgmr.msra.gmra.mxu1 %vm357_vm3, %v1263_v28  ;;  %v1340_v30 = vsel %vm510_vm4, %v1258_v29, -inf }
 0x788   :  { %1341 = vmax.xlane.f32.xlu0 %v1340_v30  ;;  %v8697_v31 = vpop.f32.mrf.mxu0  ;;  %8710 = vmatprep.mubr.msk.f32.mxu1 %vm9394_vm2, %v9393_v54 }
 0x811   :  { %v1342_v32 = vpop.xlane.xlu0 %1341 }
 0x812   :  { %v1346_v33 = vsub.f32 %v1258_v29, %v1342_v32 }
 0x814   :  { %v1348_v34 = vmul.f32 1.442695, %v1346_v33 }
 0x816   :  { %9231 = vpow2.f32 %v1348_v34 }
 0x823   :  { %v9232_v35 = vpop.eup %9231 }
 0x824   :  { %v1352_v36 = vsel %vm510_vm4, %v9232_v35, 0.0 }
 0x825   :  { %1353 = vadd.xlane.f32.xlu0 %v1352_v36 }
 0x843   :  { %v8692_v46 = vpop.f32.mrf.mxu1 }
 0x844   :  { %v9680_v48 = vadd.f32 %v8692_v46, %v765_v45 }
 0x845   :  { %v1173_v49 = vpop.f32.mrf.mxu1 }
 0x846   :  { %v9682_v50 = vadd.f32 %v1173_v49, %v764_v47 }
 0x847   :  { %v1336_v51 = vpop.f32.mrf.mxu1 }
 0x848   :  { %v1343_v52 = vsel %vm510_vm4, %v1336_v51, -inf }
 0x849   :  { %1344 = vmax.xlane.f32.xlu1 %v1343_v52  ;;  %v8702_v53 = vpop.f32.mrf.mxu1 }
 0x85a   :  { %1438 = vrot.lane.b32.xlu1 %v9576_v9, %s9396_s24 }
 0x85e   :  { %1602 = vrot.lane.b32.xlu1 %v9552_v62, %s9397_s25 }
 0x862   :  { %1680 = vrot.lane.b32.xlu1 %v9562_v2, %s9397_s25 }
 0x866   :  { %1678 = vrot.lane.b32.xlu1 %v9573_v5, %s9397_s25 }
 0x8ae   :  { %v1354_v60 = vpop.xlane.xlu0 %1353 }
 0x8d2   :  { %v1345_v6 = vpop.xlane.xlu1 %1344 }
 0x8d3   :  { %v1347_v8 = vsub.f32 %v1336_v51, %v1345_v6 }
 0x8d5   :  { %v1350_v39 = vmul.f32 1.442695, %v1347_v8 }
 0x8d6   :  { %v1439_v57 = vpop.permute.xlu1 %1438 }
 0x8d7   :  { %9233 = vpow2.f32 %v1350_v39  ;;  %8709 = vmatpush3.msra.mxu1 %v1439_v57 }
 0x8d8   :  { %8718 = vmatprep.subr.mxu1 %v9393_v54  ;;  %9235 = vrcp.f32 %v1354_v60 }
 0x8da   :  { %v1603_v12 = vpop.permute.xlu1 %1602 }
 0x8de   :  { %v1681_v17 = vpop.permute.xlu1 %1680 }
 0x8e2   :  { %v1679_v20 = vpop.permute.xlu1 %1678 }
 0x8e4   :  { %v9234_v58 = vpop.eup %9233 }
 0x8e5   :  { %v1355_v59 = vsel %vm510_vm4, %v9234_v58, 0.0  ;;  %v9236_v0 = vpop.eup %9235 }
 0x8e6   :  { %1356 = vadd.xlane.f32.xlu0 %v1355_v59  ;;  %v1360_v4 = vmul.f32 %v9236_v0, %v9232_v35 }
 0x8fc   :  { %1362 = vrot.lane.b32.xlu0 %v9578_v10, %s9396_s24 }
 0x900   :  { %1600 = vrot.lane.b32.xlu0 %v9559_v1, %s9397_s25 }
 0x96f   :  { %v1357_v61 = vpop.xlane.xlu0 %1356 }
 0x970   :  { %9237 = vrcp.f32 %v1357_v61 }
 0x973   :  { %v1363_v3 = vpop.permute.xlu0 %1362 }
 0x974   :  { %8704 = vmatpush3.msra.mxu0 %v1363_v3 }
 0x975   :  { %8706 = vmatmul.mubr.msk.f32.vlgmr.msra.gmra.mxu0 %vm510_vm4, %v1360_v4  ;;  %8713 = vmatprep.subr.msk.mxu0 %vm685_vm5, %v9711_v14 }
 0x976   :  { %8714 = vmatpush3.msk.msra.mxu0 %vm685_vm5, %v9711_v14 }
 0x977   :  { %v1601_v13 = vpop.permute.xlu0 %1600  ;;  %8723 = vmatprep.subr.mxu0 %v9393_v54 }
 0x97d   :  { %v9238_v7 = vpop.eup %9237 }
 0x97e   :  { %v1361_v11 = vmul.f32 %v9238_v7, %v9234_v58 }
 0x980   :  { %8711 = vmatmul.mubr.msk.f32.vlgmr.msra.gmra.mxu1 %vm510_vm4, %v1361_v11 }
 0x981   :  { %8719 = vmatpush3.xpose.msk.msra.mxu1 %vm357_vm3, %v1603_v12  ;;  %8720 = vmatprep.mubr.msk.f32.mxu1 %vm9394_vm2, %v9393_v54 }
 0x982   :  { %8728 = vmatprep.subr.mxu1 %v9393_v54 }
 0x984   :  { %8721 = vmatmul.mubr.msk.f32.vlgmr.msra.gmra.mxu1 %vm357_vm3, %v1601_v13 }
 0x985   :  { %8730 = vmatprep.mubr.msk.f32.mxu1 %vm9394_vm2, %v9393_v54 }
 0xa35   :  { %v1434_v15 = vpop.f32.mrf.mxu0 }
 0xa36   :  { %8715 = vmatprep.mubr.msk.f32.mxu0 %vm357_vm3, %v1434_v15 }
 0xa37   :  { %v8707_v16 = vpop.f32.mrf.mxu0 }
 0xa40   :  { %v1510_v18 = vpop.f32.mrf.mxu1 }
 0xa41   :  { %8716 = vmatmul.mubr.msk.f32.vlgmr.msra.gmra.mxu0 %vm357_vm3, %v1510_v18 }
 0xa42   :  { %8724 = vmatpush3.xpose.msk.msra.mxu0 %vm357_vm3, %v1681_v17  ;;  %v8712_v19 = vpop.f32.mrf.mxu1  ;;  %8725 = vmatprep.mubr.msk.f32.mxu0 %vm9394_vm2, %v9393_v54 }
 0xa43   :  { %8733 = vmatprep.subr.mxu0 %v9393_v54 }
 0xa44   :  { %v1674_v21 = vpop.f32.mrf.mxu1 }
 0xa45   :  { %8726 = vmatmul.mubr.msk.f32.vlgmr.msra.gmra.mxu0 %vm357_vm3, %v1679_v20  ;;  %v1756_v22 = vsel %vm510_vm4, %v1674_v21, -inf }
 0xa46   :  { %1757 = vmax.xlane.f32.xlu0 %v1756_v22  ;;  %v8722_v23 = vpop.f32.mrf.mxu1  ;;  %8735 = vmatprep.mubr.msk.f32.mxu0 %vm9394_vm2, %v9393_v54 }
 0xacf   :  { %v1758_v24 = vpop.xlane.xlu0 %1757 }
 0xad0   :  { %v1762_v25 = vsub.f32 %v1674_v21, %v1758_v24 }
 0xad2   :  { %v1764_v26 = vmul.f32 1.442695, %v1762_v25 }
 0xad4   :  { %9239 = vpow2.f32 %v1764_v26 }
 0xae1   :  { %v9240_v27 = vpop.eup %9239 }
 0xae2   :  { %v1768_v28 = vsel %vm510_vm4, %v9240_v27, 0.0 }
 0xae3   :  { %1769 = vadd.xlane.f32.xlu0 %v1768_v28 }
 0xb01   :  { %v8717_v29 = vpop.f32.mrf.mxu0 }
 0xb02   :  { %v9730_v30 = vadd.f32 %v8717_v29, %v9680_v48 }
 0xb03   :  { %v1589_v31 = vpop.f32.mrf.mxu0 }
 0xb04   :  { %v9733_v32 = vadd.f32 %v1589_v31, %v9682_v50  ;;  %v1930_v50 = vrot.slane %v9711_v14, 4 }
 0xb05   :  { %v1752_v33 = vpop.f32.mrf.mxu0 }
 0xb06   :  { %v1759_v34 = vsel %vm510_vm4, %v1752_v33, -inf }
 0xb07   :  { %1760 = vmax.xlane.f32.xlu1 %v1759_v34  ;;  %v8727_v35 = vpop.f32.mrf.mxu0 }
 0xb18   :  { %1854 = vrot.lane.b32.xlu1 %v9576_v9, %s9397_s25 }
 0xb1c   :  { %2018 = vrot.lane.b32.xlu1 %v9552_v62, %s9398_s28 }
 0xb20   :  { %2096 = vrot.lane.b32.xlu1 %v9562_v2, %s9398_s28 }
 0xb24   :  { %2094 = vrot.lane.b32.xlu1 %v9573_v5, %s9398_s28 }
 0xb6c   :  { %v1770_v47 = vpop.xlane.xlu0 %1769 }
 0xb90   :  { %v1761_v36 = vpop.xlane.xlu1 %1760 }
 0xb91   :  { %v1763_v42 = vsub.f32 %v1752_v33, %v1761_v36 }
 0xb93   :  { %v1766_v43 = vmul.f32 1.442695, %v1763_v42 }
 0xb94   :  { %v1855_v44 = vpop.permute.xlu1 %1854 }
 0xb95   :  { %9241 = vpow2.f32 %v1766_v43  ;;  %8734 = vmatpush3.msra.mxu0 %v1855_v44  ;;  %v9807_v43 = vld [vmem:[%s10631_s3 + $0x70] sm:$0xff] }
 0xb96   :  { %8743 = vmatprep.subr.mxu0 %v9393_v54  ;;  %9243 = vrcp.f32 %v1770_v47 }
 0xb98   :  { %v2019_v8 = vpop.permute.xlu1 %2018 }
 0xb9c   :  { %v2097_v59 = vpop.permute.xlu1 %2096 }
 0xba0   :  { %v2095_v0 = vpop.permute.xlu1 %2094 }
 0xba2   :  { %v9242_v45 = vpop.eup %9241 }
 0xba3   :  { %v1771_v46 = vsel %vm510_vm4, %v9242_v45, 0.0  ;;  %v9244_v49 = vpop.eup %9243 }
 0xba4   :  { %1772 = vadd.xlane.f32.xlu0 %v1771_v46  ;;  %v1776_v52 = vmul.f32 %v9244_v49, %v9240_v27 }
 0xbba   :  { %1778 = vrot.lane.b32.xlu0 %v9578_v10, %s9397_s25 }
 0xbbe   :  { %2016 = vrot.lane.b32.xlu0 %v9559_v1, %s9398_s28 }
 0xc2d   :  { %v1773_v48 = vpop.xlane.xlu0 %1772 }
 0xc2e   :  { %9245 = vrcp.f32 %v1773_v48 }
 0xc31   :  { %v1779_v51 = vpop.permute.xlu0 %1778 }
 0xc32   :  { %8729 = vmatpush3.msra.mxu1 %v1779_v51 }
 0xc33   :  { %8731 = vmatmul.mubr.msk.f32.vlgmr.msra.gmra.mxu1 %vm510_vm4, %v1776_v52  ;;  %8738 = vmatprep.subr.msk.mxu1 %vm685_vm5, %v1930_v50 }
 0xc34   :  { %8739 = vmatpush3.msk.msra.mxu1 %vm685_vm5, %v1930_v50 }
 0xc35   :  { %8748 = vmatprep.subr.mxu1 %v9393_v54  ;;  %v2017_v39 = vpop.permute.xlu0 %2016 }
 0xc3b   :  { %v9246_v53 = vpop.eup %9245 }
 0xc3c   :  { %v1777_v6 = vmul.f32 %v9246_v53, %v9242_v45 }
 0xc3e   :  { %8736 = vmatmul.mubr.msk.f32.vlgmr.msra.gmra.mxu0 %vm510_vm4, %v1777_v6 }
 0xc3f   :  { %8744 = vmatpush3.xpose.msk.msra.mxu0 %vm357_vm3, %v2019_v8  ;;  %8745 = vmatprep.mubr.msk.f32.mxu0 %vm9394_vm2, %v9393_v54 }
 0xc40   :  { %8753 = vmatprep.subr.mxu0 %v9393_v54 }
 0xc42   :  { %8746 = vmatmul.mubr.msk.f32.vlgmr.msra.gmra.mxu0 %vm357_vm3, %v2017_v39 }
 0xc43   :  { %8755 = vmatprep.mubr.msk.f32.mxu0 %vm9394_vm2, %v9393_v54 }
 0xcf3   :  { %v1850_v57 = vpop.f32.mrf.mxu1 }
 0xcf4   :  { %8740 = vmatprep.mubr.msk.f32.mxu1 %vm357_vm3, %v1850_v57 }
 0xcf5   :  { %v8732_v58 = vpop.f32.mrf.mxu1 }
 0xcfe   :  { %v1926_v60 = vpop.f32.mrf.mxu0 }
 0xcff   :  { %8741 = vmatmul.mubr.msk.f32.vlgmr.msra.gmra.mxu1 %vm357_vm3, %v1926_v60 }
 0xd00   :  { %8749 = vmatpush3.xpose.msk.msra.mxu1 %vm357_vm3, %v2097_v59  ;;  %v8737_v61 = vpop.f32.mrf.mxu0  ;;  %8750 = vmatprep.mubr.msk.f32.mxu1 %vm9394_vm2, %v9393_v54 }
 0xd01   :  { %8758 = vmatprep.subr.mxu1 %v9393_v54 }
 0xd02   :  { %v2090_v3 = vpop.f32.mrf.mxu0 }
 0xd03   :  { %8751 = vmatmul.mubr.msk.f32.vlgmr.msra.gmra.mxu1 %vm357_vm3, %v2095_v0  ;;  %v2172_v4 = vsel %vm510_vm4, %v2090_v3, -inf }
 0xd04   :  { %2173 = vmax.xlane.f32.xlu0 %v2172_v4  ;;  %v8747_v7 = vpop.f32.mrf.mxu0  ;;  %8760 = vmatprep.mubr.msk.f32.mxu1 %vm9394_vm2, %v9393_v54 }
 0xd8d   :  { %v2174_v11 = vpop.xlane.xlu0 %2173 }
 0xd8e   :  { %v2178_v12 = vsub.f32 %v2090_v3, %v2174_v11 }
 0xd90   :  { %v2180_v13 = vmul.f32 1.442695, %v2178_v12 }
 0xd92   :  { %9247 = vpow2.f32 %v2180_v13 }
 0xd9f   :  { %v9248_v14 = vpop.eup %9247 }
 0xda0   :  { %v2184_v15 = vsel %vm510_vm4, %v9248_v14, 0.0 }
 0xda1   :  { %2185 = vadd.xlane.f32.xlu0 %v2184_v15 }
 0xdbf   :  { %v8742_v16 = vpop.f32.mrf.mxu1 }
 0xdc0   :  { %v9775_v17 = vadd.f32 %v8742_v16, %v9730_v30 }
 0xdc1   :  { %v2005_v18 = vpop.f32.mrf.mxu1 }
 0xdc2   :  { %v9778_v19 = vadd.f32 %v2005_v18, %v9733_v32 }
 0xdc3   :  { %v2168_v20 = vpop.f32.mrf.mxu1 }
 0xdc4   :  { %v2175_v21 = vsel %vm510_vm4, %v2168_v20, -inf }
 0xdc5   :  { %2176 = vmax.xlane.f32.xlu1 %v2175_v21  ;;  %v8752_v22 = vpop.f32.mrf.mxu1 }
 0xdd6   :  { %2270 = vrot.lane.b32.xlu1 %v9576_v9, %s9398_s28 }
 0xdda   :  { %2434 = vrot.lane.b32.xlu1 %v9552_v62, %s9399_s29 }
 0xdde   :  { %2512 = vrot.lane.b32.xlu1 %v9562_v2, %s9399_s29 }
 0xde2   :  { %2510 = vrot.lane.b32.xlu1 %v9573_v5, %s9399_s29 }
 0xe2a   :  { %v2186_v29 = vpop.xlane.xlu0 %2185 }
 0xe4e   :  { %v2177_v23 = vpop.xlane.xlu1 %2176 }
 0xe4f   :  { %v2179_v24 = vsub.f32 %v2168_v20, %v2177_v23 }
 0xe51   :  { %v2182_v25 = vmul.f32 1.442695, %v2179_v24 }
 0xe52   :  { %v2271_v26 = vpop.permute.xlu1 %2270 }
 0xe53   :  { %9249 = vpow2.f32 %v2182_v25  ;;  %8759 = vmatpush3.msra.mxu1 %v2271_v26 }
 0xe54   :  { %8768 = vmatprep.subr.mxu1 %v9393_v54  ;;  %9251 = vrcp.f32 %v2186_v29 }
 0xe56   :  { %v2435_v36 = vpop.permute.xlu1 %2434 }
 0xe5a   :  { %v2513_v46 = vpop.permute.xlu1 %2512 }
 0xe5e   :  { %v2511_v49 = vpop.permute.xlu1 %2510 }
 0xe60   :  { %v9250_v27 = vpop.eup %9249 }
 0xe61   :  { %v2187_v28 = vsel %vm510_vm4, %v9250_v27, 0.0  ;;  %v9252_v31 = vpop.eup %9251 }
 0xe62   :  { %2188 = vadd.xlane.f32.xlu0 %v2187_v28  ;;  %v2192_v33 = vmul.f32 %v9252_v31, %v9248_v14 }
 0xe78   :  { %2194 = vrot.lane.b32.xlu0 %v9578_v10, %s9398_s28 }
 0xe7c   :  { %2432 = vrot.lane.b32.xlu0 %v9559_v1, %s9399_s29 }
 0xeeb   :  { %v2189_v30 = vpop.xlane.xlu0 %2188 }
 0xeec   :  { %9253 = vrcp.f32 %v2189_v30 }
 0xeef   :  { %v2195_v32 = vpop.permute.xlu0 %2194 }
 0xef0   :  { %8754 = vmatpush3.msra.mxu0 %v2195_v32 }
 0xef1   :  { %8756 = vmatmul.mubr.msk.f32.vlgmr.msra.gmra.mxu0 %vm510_vm4, %v2192_v33  ;;  %8763 = vmatprep.subr.msk.mxu0 %vm685_vm5, %v9807_v43 }
 0xef2   :  { %8764 = vmatpush3.msk.msra.mxu0 %vm685_vm5, %v9807_v43 }
 0xef3   :  { %v2433_v42 = vpop.permute.xlu0 %2432  ;;  %8773 = vmatprep.subr.mxu0 %v9393_v54 }
 0xef9   :  { %v9254_v34 = vpop.eup %9253 }
 0xefa   :  { %v2193_v35 = vmul.f32 %v9254_v34, %v9250_v27 }
 0xefc   :  { %8761 = vmatmul.mubr.msk.f32.vlgmr.msra.gmra.mxu1 %vm510_vm4, %v2193_v35 }
 0xefd   :  { %8769 = vmatpush3.xpose.msk.msra.mxu1 %vm357_vm3, %v2435_v36  ;;  %8770 = vmatprep.mubr.msk.f32.mxu1 %vm9394_vm2, %v9393_v54 }
 0xefe   :  { %8778 = vmatprep.subr.mxu1 %v9393_v54 }
 0xf00   :  { %8771 = vmatmul.mubr.msk.f32.vlgmr.msra.gmra.mxu1 %vm357_vm3, %v2433_v42 }
 0xf01   :  { %8780 = vmatprep.mubr.msk.f32.mxu1 %vm9394_vm2, %v9393_v54 }
 0xfb1   :  { %v2266_v44 = vpop.f32.mrf.mxu0 }
 0xfb2   :  { %8765 = vmatprep.mubr.msk.f32.mxu0 %vm357_vm3, %v2266_v44 }
 0xfb3   :  { %v8757_v45 = vpop.f32.mrf.mxu0 }
 0xfbc   :  { %v2342_v47 = vpop.f32.mrf.mxu1 }
 0xfbd   :  { %8766 = vmatmul.mubr.msk.f32.vlgmr.msra.gmra.mxu0 %vm357_vm3, %v2342_v47 }
 0xfbe   :  { %8774 = vmatpush3.xpose.msk.msra.mxu0 %vm357_vm3, %v2513_v46  ;;  %v8762_v48 = vpop.f32.mrf.mxu1  ;;  %8775 = vmatprep.mubr.msk.f32.mxu0 %vm9394_vm2, %v9393_v54 }
 0xfbf   :  { %8783 = vmatprep.subr.mxu0 %v9393_v54 }
 0xfc0   :  { %v2506_v50 = vpop.f32.mrf.mxu1 }
 0xfc1   :  { %8776 = vmatmul.mubr.msk.f32.vlgmr.msra.gmra.mxu0 %vm357_vm3, %v2511_v49  ;;  %v2588_v51 = vsel %vm510_vm4, %v2506_v50, -inf }
 0xfc2   :  { %2589 = vmax.xlane.f32.xlu0 %v2588_v51  ;;  %v8772_v52 = vpop.f32.mrf.mxu1  ;;  %8785 = vmatprep.mubr.msk.f32.mxu0 %vm9394_vm2, %v9393_v54 }
0x104b   :  { %v2590_v53 = vpop.xlane.xlu0 %2589 }
0x104c   :  { %v2594_v6 = vsub.f32 %v2506_v50, %v2590_v53 }
0x104e   :  { %v2596_v8 = vmul.f32 1.442695, %v2594_v6 }
0x1050   :  { %9255 = vpow2.f32 %v2596_v8 }
0x105d   :  { %v9256_v39 = vpop.eup %9255 }
0x105e   :  { %v2600_v57 = vsel %vm510_vm4, %v9256_v39, 0.0 }
0x105f   :  { %2601 = vadd.xlane.f32.xlu0 %v2600_v57 }
0x107d   :  { %v8767_v58 = vpop.f32.mrf.mxu0 }
0x107e   :  { %v9826_v59 = vadd.f32 %v8767_v58, %v9775_v17 }
0x107f   :  { %v2421_v60 = vpop.f32.mrf.mxu0 }
0x1080   :  { %v9829_v61 = vadd.f32 %v2421_v60, %v9778_v19  ;;  %v2762_v19 = vrot.slane %v9807_v43, 4 }
0x1081   :  { %v2584_v0 = vpop.f32.mrf.mxu0 }
0x1082   :  { %v2591_v3 = vsel %vm510_vm4, %v2584_v0, -inf }
0x1083   :  { %2592 = vmax.xlane.f32.xlu1 %v2591_v3  ;;  %v8777_v4 = vpop.f32.mrf.mxu0  ;;  %v67_v3 = vld [vmem:[%s10631_s3 + $0x78] sm:$0xff] }
0x1094   :  { %2686 = vrot.lane.b32.xlu1 %v9576_v9, %s9399_s29 }
0x1098   :  { %2850 = vrot.lane.b32.xlu1 %v9552_v62, %s9400_s12 }
0x109c   :  { %2928 = vrot.lane.b32.xlu1 %v9562_v2, %s9400_s12 }
0x10a0   :  { %2926 = vrot.lane.b32.xlu1 %v9573_v5, %s9400_s12 }
0x10e8   :  { %v2602_v16 = vpop.xlane.xlu0 %2601 }
0x110c   :  { %v2593_v7 = vpop.xlane.xlu1 %2592 }
0x110d   :  { %v2595_v11 = vsub.f32 %v2584_v0, %v2593_v7 }
0x110f   :  { %v2598_v12 = vmul.f32 1.442695, %v2595_v11 }
0x1110   :  { %v2687_v13 = vpop.permute.xlu1 %2686 }
0x1111   :  { %9257 = vpow2.f32 %v2598_v12  ;;  %8784 = vmatpush3.msra.mxu0 %v2687_v13 }
0x1112   :  { %8793 = vmatprep.subr.mxu0 %v9393_v54  ;;  %9259 = vrcp.f32 %v2602_v16 }
0x1114   :  { %v2851_v24 = vpop.permute.xlu1 %2850 }
0x1118   :  { %v2929_v28 = vpop.permute.xlu1 %2928 }
0x111c   :  { %v2927_v31 = vpop.permute.xlu1 %2926 }
0x111e   :  { %v9258_v14 = vpop.eup %9257 }
0x111f   :  { %v2603_v15 = vsel %vm510_vm4, %v9258_v14, 0.0  ;;  %v9260_v18 = vpop.eup %9259 }
0x1120   :  { %2604 = vadd.xlane.f32.xlu0 %v2603_v15  ;;  %v2608_v21 = vmul.f32 %v9260_v18, %v9256_v39 }
0x1136   :  { %2610 = vrot.lane.b32.xlu0 %v9578_v10, %s9399_s29 }
0x113a   :  { %2848 = vrot.lane.b32.xlu0 %v9559_v1, %s9400_s12 }
0x11a9   :  { %v2605_v17 = vpop.xlane.xlu0 %2604 }
0x11aa   :  { %9261 = vrcp.f32 %v2605_v17 }
0x11ad   :  { %v2611_v20 = vpop.permute.xlu0 %2610 }
0x11ae   :  { %8779 = vmatpush3.msra.mxu1 %v2611_v20 }
0x11af   :  { %8781 = vmatmul.mubr.msk.f32.vlgmr.msra.gmra.mxu1 %vm510_vm4, %v2608_v21  ;;  %8788 = vmatprep.subr.msk.mxu1 %vm685_vm5, %v2762_v19 }
0x11b0   :  { %8789 = vmatpush3.msk.msra.mxu1 %vm685_vm5, %v2762_v19 }
0x11b1   :  { %8798 = vmatprep.subr.mxu1 %v9393_v54  ;;  %v2849_v25 = vpop.permute.xlu0 %2848 }
0x11b7   :  { %v9262_v22 = vpop.eup %9261 }
0x11b8   :  { %v2609_v23 = vmul.f32 %v9262_v22, %v9258_v14 }
0x11ba   :  { %8786 = vmatmul.mubr.msk.f32.vlgmr.msra.gmra.mxu0 %vm510_vm4, %v2609_v23 }
0x11bb   :  { %8794 = vmatpush3.xpose.msk.msra.mxu0 %vm357_vm3, %v2851_v24  ;;  %8795 = vmatprep.mubr.msk.f32.mxu0 %vm9394_vm2, %v9393_v54 }
0x11bc   :  { %8803 = vmatprep.subr.mxu0 %v9393_v54 }
0x11be   :  { %8796 = vmatmul.mubr.msk.f32.vlgmr.msra.gmra.mxu0 %vm357_vm3, %v2849_v25 }
0x11bf   :  { %8805 = vmatprep.mubr.msk.f32.mxu0 %vm9394_vm2, %v9393_v54 }
0x126f   :  { %v2682_v26 = vpop.f32.mrf.mxu1 }
0x1270   :  { %8790 = vmatprep.mubr.msk.f32.mxu1 %vm357_vm3, %v2682_v26 }
0x1271   :  { %v8782_v27 = vpop.f32.mrf.mxu1 }
0x127a   :  { %v2758_v29 = vpop.f32.mrf.mxu0 }
0x127b   :  { %8791 = vmatmul.mubr.msk.f32.vlgmr.msra.gmra.mxu1 %vm357_vm3, %v2758_v29 }
0x127c   :  { %8799 = vmatpush3.xpose.msk.msra.mxu1 %vm357_vm3, %v2929_v28  ;;  %v8787_v30 = vpop.f32.mrf.mxu0  ;;  %8800 = vmatprep.mubr.msk.f32.mxu1 %vm9394_vm2, %v9393_v54 }
0x127d   :  { %8808 = vmatprep.subr.mxu1 %v9393_v54 }
0x127e   :  { %v2922_v32 = vpop.f32.mrf.mxu0 }
0x127f   :  { %8801 = vmatmul.mubr.msk.f32.vlgmr.msra.gmra.mxu1 %vm357_vm3, %v2927_v31  ;;  %v3004_v33 = vsel %vm510_vm4, %v2922_v32, -inf }
0x1280   :  { %3005 = vmax.xlane.f32.xlu0 %v3004_v33  ;;  %v8797_v34 = vpop.f32.mrf.mxu0  ;;  %8810 = vmatprep.mubr.msk.f32.mxu1 %vm9394_vm2, %v9393_v54 }
0x1309   :  { %v3006_v35 = vpop.xlane.xlu0 %3005 }
0x130a   :  { %v3010_v36 = vsub.f32 %v2922_v32, %v3006_v35 }
0x130c   :  { %v3012_v42 = vmul.f32 1.442695, %v3010_v36 }
0x130e   :  { %9263 = vpow2.f32 %v3012_v42 }
0x131b   :  { %v9264_v43 = vpop.eup %9263 }
0x131c   :  { %v3016_v44 = vsel %vm510_vm4, %v9264_v43, 0.0 }
0x131d   :  { %3017 = vadd.xlane.f32.xlu0 %v3016_v44  ;;  %v3594_v44 = vrot.slane %v67_v3, 4 }
0x133b   :  { %v8792_v45 = vpop.f32.mrf.mxu1 }
0x133c   :  { %v9871_v46 = vadd.f32 %v8792_v45, %v9826_v59 }
0x133d   :  { %v2837_v47 = vpop.f32.mrf.mxu1 }
0x133e   :  { %v9874_v48 = vadd.f32 %v2837_v47, %v9829_v61 }
0x133f   :  { %v3000_v49 = vpop.f32.mrf.mxu1 }
0x1340   :  { %v3007_v50 = vsel %vm510_vm4, %v3000_v49, -inf }
0x1341   :  { %3008 = vmax.xlane.f32.xlu1 %v3007_v50  ;;  %v8802_v51 = vpop.f32.mrf.mxu1 }
0x1352   :  { %3102 = vrot.lane.b32.xlu1 %v9576_v9, %s9400_s12 }
0x1356   :  { %3266 = vrot.lane.b32.xlu1 %v9552_v62, %s9401_s13 }
0x135a   :  { %3344 = vrot.lane.b32.xlu1 %v9562_v2, %s9401_s13 }
0x135e   :  { %3342 = vrot.lane.b32.xlu1 %v9573_v5, %s9401_s13 }
0x13a6   :  { %v3018_v62 = vpop.xlane.xlu0 %3017 }
0x13ca   :  { %v3009_v52 = vpop.xlane.xlu1 %3008 }
0x13cb   :  { %v3011_v53 = vsub.f32 %v3000_v49, %v3009_v52 }
0x13cd   :  { %v3014_v6 = vmul.f32 1.442695, %v3011_v53 }
0x13ce   :  { %v3103_v8 = vpop.permute.xlu1 %3102 }
0x13cf   :  { %9265 = vpow2.f32 %v3014_v6  ;;  %8809 = vmatpush3.msra.mxu1 %v3103_v8 }
0x13d0   :  { %8818 = vmatprep.subr.mxu1 %v9393_v54  ;;  %9267 = vrcp.f32 %v3018_v62 }
0x13d2   :  { %v3267_v0 = vpop.permute.xlu1 %3266 }
0x13d6   :  { %v3345_v11 = vpop.permute.xlu1 %3344 }
0x13da   :  { %v3343_v14 = vpop.permute.xlu1 %3342 }
0x13dc   :  { %v9266_v39 = vpop.eup %9265 }
0x13dd   :  { %v3019_v57 = vsel %vm510_vm4, %v9266_v39, 0.0  ;;  %v9268_v5 = vpop.eup %9267 }
0x13de   :  { %3020 = vadd.xlane.f32.xlu0 %v3019_v57  ;;  %v3024_v59 = vmul.f32 %v9268_v5, %v9264_v43 }
0x13f4   :  { %3026 = vrot.lane.b32.xlu0 %v9578_v10, %s9400_s12 }
0x13f8   :  { %3264 = vrot.lane.b32.xlu0 %v9559_v1, %s9401_s13 }
0x1467   :  { %v3021_v2 = vpop.xlane.xlu0 %3020 }
0x1468   :  { %9269 = vrcp.f32 %v3021_v2 }
0x146b   :  { %v3027_v58 = vpop.permute.xlu0 %3026 }
0x146c   :  { %8804 = vmatpush3.msra.mxu0 %v3027_v58 }
0x146d   :  { %8806 = vmatmul.mubr.msk.f32.vlgmr.msra.gmra.mxu0 %vm510_vm4, %v3024_v59  ;;  %8813 = vmatprep.subr.msk.mxu0 %vm685_vm5, %v67_v3 }
0x146e   :  { %8814 = vmatpush3.msk.msra.mxu0 %vm685_vm5, %v67_v3  ;;  %v3721_v3 = vld [vmem:[%s10632_s4 + $0x18] sm:$0xff] }
0x146f   :  { %v3265_v1 = vpop.permute.xlu0 %3264  ;;  %8823 = vmatprep.subr.mxu0 %v9393_v54 }
0x1475   :  { %v9270_v60 = vpop.eup %9269 }
0x1476   :  { %v3025_v61 = vmul.f32 %v9270_v60, %v9266_v39 }
0x1478   :  { %8811 = vmatmul.mubr.msk.f32.vlgmr.msra.gmra.mxu1 %vm510_vm4, %v3025_v61 }
0x1479   :  { %8819 = vmatpush3.xpose.msk.msra.mxu1 %vm357_vm3, %v3267_v0  ;;  %8820 = vmatprep.mubr.msk.f32.mxu1 %vm9394_vm2, %v9393_v54 }
0x147a   :  { %8828 = vmatprep.subr.mxu1 %v9393_v54 }
0x147c   :  { %8821 = vmatmul.mubr.msk.f32.vlgmr.msra.gmra.mxu1 %vm357_vm3, %v3265_v1 }
0x147d   :  { %8830 = vmatprep.mubr.msk.f32.mxu1 %vm9394_vm2, %v9393_v54 }
0x152d   :  { %v3098_v4 = vpop.f32.mrf.mxu0 }
0x152e   :  { %8815 = vmatprep.mubr.msk.f32.mxu0 %vm357_vm3, %v3098_v4  ;;  %v3720_v4 = vld [vmem:[%s10632_s4 + $0x10] sm:$0xff] }
0x152f   :  { %v8807_v7 = vpop.f32.mrf.mxu0 }
0x1530   :  { %v3719_v7 = vld [vmem:[%s10632_s4 + $0x8] sm:$0xff] }
0x1538   :  { %v3174_v12 = vpop.f32.mrf.mxu1 }
0x1539   :  { %8816 = vmatmul.mubr.msk.f32.vlgmr.msra.gmra.mxu0 %vm357_vm3, %v3174_v12 }
0x153a   :  { %8824 = vmatpush3.xpose.msk.msra.mxu0 %vm357_vm3, %v3345_v11  ;;  %v8812_v13 = vpop.f32.mrf.mxu1  ;;  %8825 = vmatprep.mubr.msk.f32.mxu0 %vm9394_vm2, %v9393_v54  ;;  %v3718_v11 = vld [vmem:[%s10632_s4] sm:$0xff] }
0x153b   :  { %8833 = vmatprep.subr.mxu0 %v9393_v54 }
0x153c   :  { %v3338_v15 = vpop.f32.mrf.mxu1 }
0x153d   :  { %8826 = vmatmul.mubr.msk.f32.vlgmr.msra.gmra.mxu0 %vm357_vm3, %v3343_v14  ;;  %v3420_v16 = vsel %vm510_vm4, %v3338_v15, -inf }
0x153e   :  { %3421 = vmax.xlane.f32.xlu0 %v3420_v16  ;;  %v8822_v17 = vpop.f32.mrf.mxu1  ;;  %8835 = vmatprep.mubr.msk.f32.mxu0 %vm9394_vm2, %v9393_v54 }
0x15c7   :  { %v3422_v18 = vpop.xlane.xlu0 %3421 }
0x15c8   :  { %v3426_v19 = vsub.f32 %v3338_v15, %v3422_v18  ;;  %v3708_v18 = vsub.s32 6, %v9506_v37 }
0x15ca   :  { %v3428_v20 = vmul.f32 1.442695, %v3426_v19 }
0x15cc   :  { %9271 = vpow2.f32 %v3428_v20  ;;  %v9369_v20 = vld [vmem:[%s10630_s2] sm:$0xff] }
0x15d9   :  { %v9272_v21 = vpop.eup %9271 }
0x15da   :  { %v3432_v22 = vsel %vm510_vm4, %v9272_v21, 0.0 }
0x15db   :  { %3433 = vadd.xlane.f32.xlu0 %v3432_v22  ;;  %v3714_v22 = vsub.s32 7, %v9506_v37  ;;  %v8328_v37 = vld [vmem:[%s10634_s6 + $0xf0] sm:$0xff] }
0x15f9   :  { %v8817_v23 = vpop.f32.mrf.mxu0 }
0x15fa   :  { %v3263_v24 = vadd.f32 %v8817_v23, %v9871_v46 }
0x15fb   :  { %v3253_v25 = vpop.f32.mrf.mxu0 }
0x15fc   :  { %v3262_v26 = vadd.f32 %v3253_v25, %v9874_v48 }
0x15fd   :  { %v3416_v27 = vpop.f32.mrf.mxu0 }
0x15fe   :  { %v3423_v28 = vsel %vm510_vm4, %v3416_v27, -inf }
0x15ff   :  { %3424 = vmax.xlane.f32.xlu1 %v3423_v28  ;;  %v8827_v29 = vpop.f32.mrf.mxu0 }
0x1610   :  { %3518 = vrot.lane.b32.xlu1 %v9576_v9, %s9401_s13 }
0x1664   :  { %v3434_v36 = vpop.xlane.xlu0 %3433 }
0x1688   :  { %v3425_v30 = vpop.xlane.xlu1 %3424 }
0x1689   :  { %v3427_v31 = vsub.f32 %v3416_v27, %v3425_v30  ;;  %v3715_v27 = vrot.slane %v9369_v20, %v3714_v22 }
0x168b   :  { %v3430_v32 = vmul.f32 1.442695, %v3427_v31  ;;  %v3843_v31 = vld [vmem:[%s10634_s6 + $0x78] sm:$0xff] }
0x168c   :  { %v3519_v33 = vpop.permute.xlu1 %3518 }
0x168d   :  { %9273 = vpow2.f32 %v3430_v32  ;;  %8834 = vmatpush3.msra.mxu0 %v3519_v33  ;;  %v3842_v32 = vld [vmem:[%s10634_s6 + $0x70] sm:$0xff]  ;;  %v3841_v33 = vld [vmem:[%s10634_s6 + $0x68] sm:$0xff] }
0x168e   :  { %9275 = vrcp.f32 %v3434_v36  ;;  %8843 = vmatprep.subr.mxu0 %v3721_v3  ;;  %v3838_v36 = vld [vmem:[%s10634_s6 + $0x50] sm:$0xff] }
0x169a   :  { %v9274_v34 = vpop.eup %9273 }
0x169b   :  { %v3435_v35 = vsel %vm510_vm4, %v9274_v34, 0.0  ;;  %v9276_v43 = vpop.eup %9275 }
0x169c   :  { %3436 = vadd.xlane.f32.xlu0 %v3435_v35  ;;  %v3440_v45 = vmul.f32 %v9276_v43, %v9272_v21  ;;  %v3709_v21 = vrot.slane %v9369_v20, %v3708_v18  ;;  %v3839_v35 = vld [vmem:[%s10634_s6 + $0x58] sm:$0xff]  ;;  %v3836_v43 = vld [vmem:[%s10634_s6 + $0x40] sm:$0xff] }
0x16b2   :  { %3442 = vrot.lane.b32.xlu0 %v9578_v10, %s9401_s13 }
0x1725   :  { %v3437_v42 = vpop.xlane.xlu0 %3436 }
0x1726   :  { %9277 = vrcp.f32 %v3437_v42  ;;  %v3837_v42 = vld [vmem:[%s10634_s6 + $0x48] sm:$0xff] }
0x1729   :  { %v3443_v9 = vpop.permute.xlu0 %3442 }
0x172a   :  { %8829 = vmatpush3.msra.mxu1 %v3443_v9  ;;  %v3834_v9 = vld [vmem:[%s10634_s6 + $0x30] sm:$0xff] }
0x172b   :  { %8831 = vmatmul.mubr.msk.f32.vlgmr.msra.gmra.mxu1 %vm510_vm4, %v3440_v45  ;;  %8838 = vmatprep.subr.msk.mxu1 %vm685_vm5, %v3594_v44  ;;  %v3833_v45 = vld [vmem:[%s10634_s6 + $0x28] sm:$0xff] }
0x172c   :  { %8839 = vmatpush3.msk.msra.mxu1 %vm685_vm5, %v3594_v44  ;;  %v3835_v44 = vld [vmem:[%s10634_s6 + $0x38] sm:$0xff] }
0x172d   :  { %8854 = vmatprep.subr.mxu1 %v3843_v31 }
0x1733   :  { %v9278_v46 = vpop.eup %9277 }
0x1734   :  { %v3441_v47 = vmul.f32 %v9278_v46, %v9274_v34  ;;  %v3840_v34 = vld [vmem:[%s10634_s6 + $0x60] sm:$0xff] }
0x1735   :  { %v3832_v46 = vld [vmem:[%s10634_s6 + $0x20] sm:$0xff] }
0x1736   :  { %8836 = vmatmul.mubr.msk.f32.vlgmr.msra.gmra.mxu0 %vm510_vm4, %v3441_v47  ;;  %v3831_v47 = vld [vmem:[%s10634_s6 + $0x18] sm:$0xff] }
0x1737   :  { %8844 = vmatpush3.msra.mxu0 %v3721_v3 }
0x1738   :  { %8845 = vmatprep.subr.mxu0 %v3720_v4 }
0x1739   :  { %8846 = vmatpush3.msra.mxu0 %v3720_v4 }
0x173a   :  { %8847 = vmatprep.subr.mxu0 %v3719_v7 }
0x173b   :  { %8848 = vmatpush3.msra.mxu0 %v3719_v7 }
0x173c   :  { %8849 = vmatprep.subr.mxu0 %v3718_v11 }
0x173d   :  { %8850 = vmatpush3.msra.mxu0 %v3718_v11 }
0x17eb   :  { %v3514_v10 = vpop.f32.mrf.mxu1 }
0x17ec   :  { %8840 = vmatprep.mubr.msk.f32.mxu1 %vm357_vm3, %v3514_v10  ;;  %v3830_v10 = vld [vmem:[%s10634_s6 + $0x10] sm:$0xff] }
0x17ed   :  { %v8832_v48 = vpop.f32.mrf.mxu1 }
0x17ee   :  { %v3829_v48 = vld [vmem:[%s10634_s6 + $0x8] sm:$0xff] }
0x17f6   :  { %v3590_v49 = vpop.f32.mrf.mxu0 }
0x17f7   :  { %8841 = vmatmul.mubr.msk.f32.vlgmr.msra.gmra.mxu1 %vm357_vm3, %v3590_v49  ;;  %v3828_v49 = vld [vmem:[%s10634_s6] sm:$0xff] }
0x17f8   :  { %v8837_v50 = vpop.f32.mrf.mxu0  ;;  %8855 = vmatpush3.msra.mxu1 %v3843_v31 }
0x17f9   :  { %8856 = vmatprep.subr.mxu1 %v3842_v32  ;;  %v8206_v50 = vld [vmem:[%s10633_s5] ss:$0 sm:$0xff] }
0x17fa   :  { %8857 = vmatpush3.msra.mxu1 %v3842_v32 }
0x17fb   :  { %8858 = vmatprep.subr.mxu1 %v3841_v33 }
0x17fc   :  { %8859 = vmatpush3.msra.mxu1 %v3841_v33 }
0x17fd   :  { %8860 = vmatprep.subr.mxu1 %v3840_v34 }
0x17fe   :  { %8861 = vmatpush3.msra.mxu1 %v3840_v34 }
0x17ff   :  { %8862 = vmatprep.subr.mxu1 %v3839_v35 }
0x1800   :  { %8863 = vmatpush3.msra.mxu1 %v3839_v35  ;;  %v8215_v35 = vld [vmem:[%s10631_s3 + $0x98] sm:$0xff] }
0x1801   :  { %8864 = vmatprep.subr.mxu1 %v3838_v36  ;;  %8889 = vmatprep.subr.mxu0 %v8215_v35 }
0x1802   :  { %8865 = vmatpush3.msra.mxu1 %v3838_v36  ;;  %v8214_v36 = vld [vmem:[%s10631_s3 + $0x90] sm:$0xff] }
0x1803   :  { %8866 = vmatprep.subr.mxu1 %v3837_v42 }
0x1804   :  { %8867 = vmatpush3.msra.mxu1 %v3837_v42  ;;  %v8213_v42 = vld [vmem:[%s10631_s3 + $0x88] sm:$0xff] }
0x1805   :  { %8868 = vmatprep.subr.mxu1 %v3836_v43 }
0x1806   :  { %8869 = vmatpush3.msra.mxu1 %v3836_v43  ;;  %v8212_v43 = vld [vmem:[%s10631_s3 + $0x80] sm:$0xff] }
0x1807   :  { %8870 = vmatprep.subr.mxu1 %v3835_v44 }
0x1808   :  { %8871 = vmatpush3.msra.mxu1 %v3835_v44  ;;  %v8219_v44 = vld [vmem:[%s10631_s3 + $0xb8] sm:$0xff] }
0x1809   :  { %8872 = vmatprep.subr.mxu1 %v3834_v9 }
0x180a   :  { %8873 = vmatpush3.msra.mxu1 %v3834_v9 }
0x180b   :  { %8874 = vmatprep.subr.mxu1 %v3833_v45 }
0x180c   :  { %8875 = vmatpush3.msra.mxu1 %v3833_v45 }
0x180d   :  { %8876 = vmatprep.subr.mxu1 %v3832_v46 }
0x180e   :  { %8877 = vmatpush3.msra.mxu1 %v3832_v46 }
0x180f   :  { %8878 = vmatprep.subr.mxu1 %v3831_v47 }
0x1810   :  { %8879 = vmatpush3.msra.mxu1 %v3831_v47 }
0x1811   :  { %8880 = vmatprep.subr.mxu1 %v3830_v10 }
0x1812   :  { %8881 = vmatpush3.msra.mxu1 %v3830_v10 }
0x1813   :  { %8882 = vmatprep.subr.mxu1 %v3829_v48 }
0x1814   :  { %8883 = vmatpush3.msra.mxu1 %v3829_v48 }
0x1815   :  { %8884 = vmatprep.subr.mxu1 %v3828_v49 }
0x1816   :  { %8885 = vmatpush3.msra.mxu1 %v3828_v49  ;;  %v10055_v49 = vld [vmem:[%s10630_s2 + $0x10] sm:$0xff] }
0x1817   :  { %8927 = vmatprep.subr.mxu1 %v9393_v54 }
0x18b7   :  { %v8842_v51 = vpop.f32.mrf.mxu1 }
0x18b8   :  { %v9931_v52 = vadd.f32 %v8842_v51, %v3263_v24 }
0x18b9   :  { %v3669_v53 = vpop.f32.mrf.mxu1 }
0x18ba   :  { %v9933_v6 = vadd.f32 %v3669_v53, %v3262_v26  ;;  %v3683_v8 = vsel %vm68_vm1, %v9931_v52, 0.0 }
0x18bb   :  { %3684 = vadd.xlane.f32.xlu0 %v3683_v8 }
0x18bc   :  { %v3680_v39 = vsel %vm68_vm1, %v9933_v6, 0.0 }
0x18bd   :  { %3681 = vadd.xlane.f32.xlu1 %v3680_v39 }
0x1944   :  { %v3685_v57 = vpop.xlane.xlu0 %3684 }
0x1945   :  { %v3687_v62 = vmul.f32 0.03125, %v3685_v57 }
0x1946   :  { %v3682_v2 = vpop.xlane.xlu1 %3681 }
0x1947   :  { %v3689_v5 = vsub.f32 %v9931_v52, %v3687_v62  ;;  %v3686_v58 = vmul.f32 0.03125, %v3682_v2 }
0x1949   :  { %v3688_v59 = vsub.f32 %v9933_v6, %v3686_v58  ;;  %v3691_v60 = vmul.f32 %v3689_v5, %v3689_v5 }
0x194b   :  { %v3695_v61 = vsel %vm68_vm1, %v3691_v60, 0.0  ;;  %v3690_v0 = vmul.f32 %v3688_v59, %v3688_v59 }
0x194c   :  { %3696 = vadd.xlane.f32.xlu1 %v3695_v61 }
0x194d   :  { %v3692_v1 = vsel %vm68_vm1, %v3690_v0, 0.0 }
0x194e   :  { %3693 = vadd.xlane.f32.xlu0 %v3692_v1 }
0x19d5   :  { %v3697_v12 = vpop.xlane.xlu1 %3696 }
0x19d6   :  { %v3699_v13 = vmul.f32 0.03125, %v3697_v12 }
0x19d7   :  { %v3694_v14 = vpop.xlane.xlu0 %3693 }
0x19d8   :  { %v3701_v15 = vadd.f32 1e-06, %v3699_v13  ;;  %v3698_v16 = vmul.f32 0.03125, %v3694_v14 }
0x19da   :  { %9279 = vrsqrt.f32 %v3701_v15  ;;  %v3700_v17 = vadd.f32 1e-06, %v3698_v16  ;;  %v8209_v16 = vld [vmem:[%s10630_s2 + $0x8] ss:$0 sm:$0xff] }
0x19dc   :  { %9281 = vrsqrt.f32 %v3700_v17 }
0x19e7   :  { %v9280_v19 = vpop.eup %9279 }
0x19e8   :  { %v3705_v23 = vmul.f32 %v9280_v19, %v3689_v5 }
0x19e9   :  { %v9282_v24 = vpop.eup %9281 }
0x19ea   :  { %v3704_v25 = vmul.f32 %v9282_v24, %v3688_v59  ;;  %v3711_v26 = vmul.f32 %v3709_v21, %v3705_v23 }
0x19ec   :  { %v3710_v28 = vmul.f32 %v3709_v21, %v3704_v25  ;;  %v3717_v30 = vadd.f32 %v3715_v27, %v3711_v26 }
0x19ee   :  { %v3716_v29 = vadd.f32 %v3715_v27, %v3710_v28 }
0x19f0   :  { %8851 = vmatprep.mubr.msk.f32.mxu0 %vm68_vm1, %v3716_v29 }
0x19f1   :  { %8852 = vmatmul.mubr.msk.f32.vlgmr.msra.gmra.mxu0 %vm68_vm1, %v3717_v30 }
0x19f2   :  { %8890 = vmatpush3.msra.mxu0 %v8215_v35 }
0x19f3   :  { %8891 = vmatprep.subr.mxu0 %v8214_v36 }
0x19f4   :  { %8892 = vmatpush3.msra.mxu0 %v8214_v36 }
0x19f5   :  { %8893 = vmatprep.subr.mxu0 %v8213_v42 }
0x19f6   :  { %8894 = vmatpush3.msra.mxu0 %v8213_v42 }
0x19f7   :  { %8895 = vmatprep.subr.mxu0 %v8212_v43 }
0x19f8   :  { %8896 = vmatpush3.msra.mxu0 %v8212_v43 }
0x19f9   :  { %8900 = vmatprep.subr.mxu0 %v8219_v44 }
0x1ab1   :  { %v8853_v51 = vpop.f32.mrf.mxu0 }
0x1ab2   :  { %v3807_v53 = vadd.f32 %v8853_v51, %v8206_v50  ;;  %v3974_v51 = vrot.slane %v10055_v49, %v9509_v38 }
0x1ab3   :  { %v3801_v8 = vpop.f32.mrf.mxu0 }
0x1ab4   :  { %v3813_v39 = vmul.f32 0.044715, %v3807_v53  ;;  %v3802_v57 = vadd.f32 %v8206_v50, %v3801_v8  ;;  %v3811_v13 = vmul.f32 0.5, %v3807_v53 }
0x1ab6   :  { %v3815_v62 = vmul.f32 %v3813_v39, %v3807_v53  ;;  %v3812_v2 = vmul.f32 0.044715, %v3802_v57  ;;  %v3810_v11 = vmul.f32 0.5, %v3802_v57 }
0x1ab8   :  { %v3817_v5 = vmul.f32 %v3815_v62, %v3807_v53  ;;  %v3814_v58 = vmul.f32 %v3812_v2, %v3802_v57  ;;  %v3980_v62 = vrot.slane %v10055_v49, %v9517_v40 }
0x1aba   :  { %v3819_v59 = vadd.f32 %v3817_v5, %v3807_v53  ;;  %v3816_v60 = vmul.f32 %v3814_v58, %v3802_v57 }
0x1abc   :  { %v3818_v61 = vadd.f32 %v3816_v60, %v3802_v57  ;;  %v3821_v0 = vmul.f32 0.7978846, %v3819_v59  ;;  %v8218_v59 = vld [vmem:[%s10631_s3 + $0xb0] sm:$0xff]  ;;  %v8217_v60 = vld [vmem:[%s10631_s3 + $0xa8] sm:$0xff] }
0x1abe   :  { %v3820_v1 = vmul.f32 0.7978846, %v3818_v61  ;;  %9283 = vtanh.f32 %v3821_v0  ;;  %v8216_v61 = vld [vmem:[%s10631_s3 + $0xa0] sm:$0xff]  ;;  %v8223_v0 = vld [vmem:[%s10631_s3 + $0xd8] sm:$0xff] }
0x1ac0   :  { %9285 = vtanh.f32 %v3820_v1  ;;  %v8222_v1 = vld [vmem:[%s10631_s3 + $0xd0] sm:$0xff] }
0x1acb   :  { %v9284_v3 = vpop.eup %9283 }
0x1acc   :  { %v3825_v7 = vadd.f32 1.0, %v9284_v3  ;;  %v8221_v3 = vld [vmem:[%s10631_s3 + $0xc8] sm:$0xff] }
0x1acd   :  { %v9286_v4 = vpop.eup %9285 }
0x1ace   :  { %v3824_v12 = vadd.f32 1.0, %v9286_v4  ;;  %v3827_v15 = vmul.f32 %v3825_v7, %v3811_v13  ;;  %v8220_v4 = vld [vmem:[%s10631_s3 + $0xc0] sm:$0xff]  ;;  %v3986_v13 = vrot.slane %v10055_v49, %v9548_v56 }
0x1ad0   :  { %v3826_v14 = vmul.f32 %v3824_v12, %v3810_v11  ;;  %v4071_v11 = vrot.slane %v10055_v49, %v9545_v55 }
0x1ad2   :  { %8886 = vmatprep.mubr.f32.mxu1 %v3826_v14 }
0x1ad3   :  { %8887 = vmatmul.mubr.f32.vlgmr.msra.gmra.mxu1 %v3827_v15 }
0x1ad4   :  { %8929 = vmatprep.mubr.msk.f32.mxu1 %vm9394_vm2, %v9393_v54 }
0x1b93   :  { %v8888_v17 = vpop.f32.mrf.mxu1 }
0x1b94   :  { %v3920_v19 = vadd.f32 %v8888_v17, %v8209_v16 }
0x1b95   :  { %v3914_v20 = vpop.f32.mrf.mxu1 }
0x1b96   :  { %v10024_v21 = vadd.f32 %v3920_v19, %v9931_v52  ;;  %v3915_v23 = vadd.f32 %v8209_v16, %v3914_v20  ;;  %v4150_v20 = vrot.slane %v10055_v49, %v274_v63 }
0x1b98   :  { %v10027_v24 = vadd.f32 %v3915_v23, %v9933_v6  ;;  %v3948_v25 = vsel %vm68_vm1, %v10024_v21, 0.0 }
0x1b99   :  { %3949 = vadd.xlane.f32.xlu1 %v3948_v25 }
0x1b9a   :  { %v3945_v26 = vsel %vm68_vm1, %v10027_v24, 0.0 }
0x1b9b   :  { %3946 = vadd.xlane.f32.xlu0 %v3945_v26 }
0x1c22   :  { %v3950_v27 = vpop.xlane.xlu1 %3949 }
0x1c23   :  { %v3952_v28 = vmul.f32 0.03125, %v3950_v27 }
0x1c24   :  { %v3947_v29 = vpop.xlane.xlu0 %3946 }
0x1c25   :  { %v3954_v30 = vsub.f32 %v10024_v21, %v3952_v28  ;;  %v3951_v31 = vmul.f32 0.03125, %v3947_v29 }
0x1c27   :  { %v3953_v52 = vsub.f32 %v10027_v24, %v3951_v31  ;;  %v3956_v32 = vmul.f32 %v3954_v30, %v3954_v30 }
0x1c29   :  { %v3960_v6 = vsel %vm68_vm1, %v3956_v32, 0.0  ;;  %v3955_v33 = vmul.f32 %v3953_v52, %v3953_v52 }
0x1c2a   :  { %3961 = vadd.xlane.f32.xlu1 %v3960_v6 }
0x1c2b   :  { %v3957_v34 = vsel %vm68_vm1, %v3955_v33, 0.0 }
0x1c2c   :  { %3958 = vadd.xlane.f32.xlu0 %v3957_v34 }
0x1cb3   :  { %v3962_v9 = vpop.xlane.xlu1 %3961 }
0x1cb4   :  { %v3964_v45 = vmul.f32 0.03125, %v3962_v9 }
0x1cb5   :  { %v3959_v46 = vpop.xlane.xlu0 %3958 }
0x1cb6   :  { %v3966_v47 = vadd.f32 1e-06, %v3964_v45  ;;  %v3963_v10 = vmul.f32 0.03125, %v3959_v46 }
0x1cb8   :  { %9287 = vrsqrt.f32 %v3966_v47  ;;  %v3965_v48 = vadd.f32 1e-06, %v3963_v10 }
0x1cba   :  { %9289 = vrsqrt.f32 %v3965_v48 }
0x1cc5   :  { %v9288_v50 = vpop.eup %9287 }
0x1cc6   :  { %v3970_v53 = vmul.f32 %v9288_v50, %v3954_v30 }
0x1cc7   :  { %v9290_v8 = vpop.eup %9289 }
0x1cc8   :  { %v3969_v39 = vmul.f32 %v9290_v8, %v3953_v52  ;;  %v3976_v57 = vmul.f32 %v3974_v51, %v3970_v53 }
0x1cca   :  { %v3975_v2 = vmul.f32 %v3974_v51, %v3969_v39  ;;  %v3982_v58 = vadd.f32 %v3980_v62, %v3976_v57  ;;  %v8224_v57 = vld [vmem:[%s10631_s3 + $0xe0] sm:$0xff] }
0x1ccc   :  { %v3981_v5 = vadd.f32 %v3980_v62, %v3975_v2 }
0x1cce   :  { %8897 = vmatprep.mubr.msk.f32.mxu0 %vm68_vm1, %v3981_v5 }
0x1ccf   :  { %8898 = vmatmul.mubr.msk.f32.vlgmr.msra.gmra.mxu0 %vm68_vm1, %v3982_v58 }
0x1cd0   :  { %8901 = vmatpush3.msra.mxu0 %v8219_v44  ;;  %8908 = vmatprep.mubr.msk.f32.mxu0 %vm68_vm1, %v3981_v5 }
0x1cd1   :  { %8902 = vmatprep.subr.mxu0 %v8218_v59 }
0x1cd2   :  { %8903 = vmatpush3.msra.mxu0 %v8218_v59 }
0x1cd3   :  { %8904 = vmatprep.subr.mxu0 %v8217_v60 }
0x1cd4   :  { %8905 = vmatpush3.msra.mxu0 %v8217_v60 }
0x1cd5   :  { %8906 = vmatprep.subr.mxu0 %v8216_v61 }
0x1cd6   :  { %8907 = vmatpush3.msra.mxu0 %v8216_v61 }
0x1cd7   :  { %8909 = vmatmul.mubr.msk.f32.vlgmr.msra.gmra.mxu0 %vm68_vm1, %v3982_v58  ;;  %8911 = vmatprep.subr.mxu0 %v8223_v0 }
0x1cd8   :  { %8912 = vmatpush3.msra.mxu0 %v8223_v0  ;;  %8919 = vmatprep.mubr.msk.f32.mxu0 %vm68_vm1, %v3981_v5 }
0x1cd9   :  { %8913 = vmatprep.subr.mxu0 %v8222_v1 }
0x1cda   :  { %8914 = vmatpush3.msra.mxu0 %v8222_v1 }
0x1cdb   :  { %8915 = vmatprep.subr.mxu0 %v8221_v3 }
0x1cdc   :  { %8916 = vmatpush3.msra.mxu0 %v8221_v3 }
0x1cdd   :  { %8917 = vmatprep.subr.mxu0 %v8220_v4 }
0x1cde   :  { %8918 = vmatpush3.msra.mxu0 %v8220_v4 }
0x1cdf   :  { %8920 = vmatmul.mubr.msk.f32.vlgmr.msra.gmra.mxu0 %vm68_vm1, %v3982_v58  ;;  %8922 = vmatprep.subr.mxu0 %v9393_v54 }
0x1ce0   :  { %8924 = vmatprep.mubr.msk.f32.mxu0 %vm9394_vm2, %v9393_v54 }
0x1d8f   :  { %v8899_v7 = vpop.f32.mrf.mxu0 }
0x1d90   :  { %v10101_v19 = vadd.f32 %v8899_v7, %v3986_v13 }
0x1d91   :  { %v4059_v12 = vpop.f32.mrf.mxu0 }
0x1d92   :  { %v10109_v23 = vadd.f32 %v4059_v12, %v3986_v13 }
0x1d97   :  { %v8910_v14 = vpop.f32.mrf.mxu0 }
0x1d98   :  { %v10095_v15 = vadd.f32 %v8910_v14, %v4071_v11 }
0x1d99   :  { %v4138_v16 = vpop.f32.mrf.mxu0 }
0x1d9a   :  { %v10097_v17 = vadd.f32 %v4138_v16, %v4071_v11  ;;  %8928 = vmatpush3.xpose.msk.msra.mxu1 %vm357_vm3, %v10095_v15 }
0x1d9b   :  { %8937 = vmatprep.subr.mxu1 %v9393_v54 }
0x1d9c   :  { %8923 = vmatpush3.xpose.msk.msra.mxu0 %vm357_vm3, %v10097_v17 }
0x1d9d   :  { %8930 = vmatmul.mubr.msk.f32.vlgmr.msra.gmra.mxu1 %vm357_vm3, %v10101_v19  ;;  %8932 = vmatprep.subr.mxu0 %v9393_v54 }
0x1d9e   :  { %8939 = vmatprep.mubr.msk.f32.mxu1 %vm9394_vm2, %v9393_v54 }
0x1d9f   :  { %v8921_v25 = vpop.f32.mrf.mxu0  ;;  %8925 = vmatmul.mubr.msk.f32.vlgmr.msra.gmra.mxu0 %vm357_vm3, %v10109_v23 }
0x1da0   :  { %v10118_v26 = vadd.f32 %v8921_v25, %v4150_v20  ;;  %8934 = vmatprep.mubr.msk.f32.mxu0 %vm9394_vm2, %v9393_v54 }
0x1da1   :  { %v4217_v63 = vpop.f32.mrf.mxu0 }
0x1da2   :  { %v10122_v27 = vadd.f32 %v4217_v63, %v4150_v20  ;;  %8938 = vmatpush3.msra.mxu1 %v10118_v26 }
0x1da3   :  { %8947 = vmatprep.subr.mxu1 %v9393_v54 }
0x1da4   :  { %8933 = vmatpush3.msra.mxu0 %v10122_v27 }
0x1da5   :  { %8942 = vmatprep.subr.msk.mxu0 %vm685_vm5, %v8224_v57 }
0x1e5d   :  { %v4380_v28 = vpop.f32.mrf.mxu1 }
0x1e5e   :  { %v4387_v29 = vsel %vm510_vm4, %v4380_v28, -inf }
0x1e5f   :  { %4388 = vmax.xlane.f32.xlu1 %v4387_v29  ;;  %v4304_v30 = vpop.f32.mrf.mxu0  ;;  %v8931_v31 = vpop.f32.mrf.mxu1 }
0x1e60   :  { %v4384_v52 = vsel %vm510_vm4, %v4304_v30, -inf }
0x1e61   :  { %4385 = vmax.xlane.f32.xlu0 %v4384_v52  ;;  %v8926_v32 = vpop.f32.mrf.mxu0 }
0x1ee8   :  { %v4389_v6 = vpop.xlane.xlu1 %4388 }
0x1ee9   :  { %v4391_v33 = vsub.f32 %v4380_v28, %v4389_v6 }
0x1eea   :  { %v4386_v34 = vpop.xlane.xlu0 %4385 }
0x1eeb   :  { %v4394_v35 = vmul.f32 1.442695, %v4391_v33  ;;  %v4390_v36 = vsub.f32 %v4304_v30, %v4386_v34  ;;  %v4970_v33 = vrot.slane %v8224_v57, 4 }
0x1eed   :  { %9291 = vpow2.f32 %v4394_v35  ;;  %v4392_v42 = vmul.f32 1.442695, %v4390_v36 }
0x1eef   :  { %9293 = vpow2.f32 %v4392_v42 }
0x1efa   :  { %v9292_v43 = vpop.eup %9291 }
0x1efb   :  { %v4399_v44 = vsel %vm510_vm4, %v9292_v43, 0.0 }
0x1efc   :  { %v9294_v9 = vpop.eup %9293  ;;  %4400 = vadd.xlane.f32.xlu1 %v4399_v44 }
0x1efd   :  { %v4396_v45 = vsel %vm510_vm4, %v9294_v9, 0.0 }
0x1efe   :  { %4397 = vadd.xlane.f32.xlu0 %v4396_v45 }
0x1f0d   :  { %4718 = vrot.lane.b32.xlu1 %v10095_v15, %s9395_s21 }
0x1f11   :  { %4638 = vrot.lane.b32.xlu1 %v10109_v23, %s9395_s21 }
0x1f14   :  { %4640 = vrot.lane.b32.xlu0 %v10097_v17, %s9395_s21 }
0x1f15   :  { %4716 = vrot.lane.b32.xlu1 %v10101_v19, %s9395_s21 }
0x1f85   :  { %v4401_v46 = vpop.xlane.xlu1 %4400 }
0x1f86   :  { %9295 = vrcp.f32 %v4401_v46 }
0x1f87   :  { %v4398_v47 = vpop.xlane.xlu0 %4397 }
0x1f88   :  { %9297 = vrcp.f32 %v4398_v47 }
0x1f89   :  { %v4719_v48 = vpop.permute.xlu1 %4718 }
0x1f8b   :  { %v4641_v53 = vpop.permute.xlu0 %4640 }
0x1f8d   :  { %v4639_v39 = vpop.permute.xlu1 %4638 }
0x1f91   :  { %v4717_v0 = vpop.permute.xlu1 %4716 }
0x1f93   :  { %v9296_v10 = vpop.eup %9295 }
0x1f94   :  { %v4405_v50 = vmul.f32 %v9296_v10, %v9292_v43 }
0x1f95   :  { %v9298_v51 = vpop.eup %9297 }
0x1f96   :  { %8940 = vmatmul.mubr.msk.f32.vlgmr.msra.gmra.mxu1 %vm510_vm4, %v4405_v50  ;;  %v4404_v8 = vmul.f32 %v9298_v51, %v9294_v9 }
0x1f97   :  { %8948 = vmatpush3.xpose.msk.msra.mxu1 %vm357_vm3, %v4641_v53  ;;  %8949 = vmatprep.mubr.msk.f32.mxu1 %vm9394_vm2, %v9393_v54 }
0x1f98   :  { %8935 = vmatmul.mubr.msk.f32.vlgmr.msra.gmra.mxu0 %vm510_vm4, %v4404_v8  ;;  %8957 = vmatprep.subr.mxu1 %v9393_v54 }
0x1f99   :  { %8943 = vmatpush3.msk.msra.mxu0 %vm685_vm5, %v8224_v57 }
0x1f9a   :  { %8950 = vmatmul.mubr.msk.f32.vlgmr.msra.gmra.mxu1 %vm357_vm3, %v4639_v39  ;;  %8952 = vmatprep.subr.mxu0 %v9393_v54 }
0x1f9b   :  { %8959 = vmatprep.mubr.msk.f32.mxu1 %vm9394_vm2, %v9393_v54 }
0x2056   :  { %v4548_v62 = vpop.f32.mrf.mxu1 }
0x2058   :  { %v4475_v2 = vpop.f32.mrf.mxu0  ;;  %v8941_v5 = vpop.f32.mrf.mxu1 }
0x2059   :  { %8944 = vmatprep.mubr.msk.f32.mxu0 %vm357_vm3, %v4475_v2  ;;  %v4229_v5 = vrot.slane %v10055_v49, %v353_v41 }
0x205a   :  { %v8936_v58 = vpop.f32.mrf.mxu0  ;;  %8945 = vmatmul.mubr.msk.f32.vlgmr.msra.gmra.mxu0 %vm357_vm3, %v4548_v62  ;;  %v4712_v59 = vpop.f32.mrf.mxu1 }
0x205b   :  { %8953 = vmatpush3.xpose.msk.msra.mxu0 %vm357_vm3, %v4719_v48  ;;  %v4794_v60 = vsel %vm510_vm4, %v4712_v59, -inf  ;;  %8954 = vmatprep.mubr.msk.f32.mxu0 %vm9394_vm2, %v9393_v54  ;;  %v4231_v58 = vadd.f32 %v4229_v5, %v10024_v21 }
0x205c   :  { %4795 = vmax.xlane.f32.xlu0 %v4794_v60  ;;  %v8951_v61 = vpop.f32.mrf.mxu1  ;;  %8962 = vmatprep.subr.mxu0 %v9393_v54  ;;  %v4230_v60 = vadd.f32 %v4229_v5, %v10027_v24 }
0x205e   :  { %8955 = vmatmul.mubr.msk.f32.vlgmr.msra.gmra.mxu0 %vm357_vm3, %v4717_v0 }
0x205f   :  { %8964 = vmatprep.mubr.msk.f32.mxu0 %vm9394_vm2, %v9393_v54 }
0x20e5   :  { %v4796_v1 = vpop.xlane.xlu0 %4795 }
0x20e6   :  { %v4800_v3 = vsub.f32 %v4712_v59, %v4796_v1 }
0x20e8   :  { %v4802_v4 = vmul.f32 1.442695, %v4800_v3 }
0x20ea   :  { %9299 = vpow2.f32 %v4802_v4 }
0x20f7   :  { %v9300_v7 = vpop.eup %9299 }
0x20f8   :  { %v4806_v11 = vsel %vm510_vm4, %v9300_v7, 0.0 }
0x20f9   :  { %4807 = vadd.xlane.f32.xlu0 %v4806_v11 }
0x211a   :  { %v10165_v12 = vpop.f32.mrf.mxu0 }
0x211b   :  { %v4637_v59 = vadd.f32 %v10165_v12, %v4231_v58 }
0x211c   :  { %v10167_v13 = vpop.f32.mrf.mxu0 }
0x211d   :  { %v4636_v0 = vadd.f32 %v10167_v13, %v4230_v60 }
0x211e   :  { %v4790_v14 = vpop.f32.mrf.mxu0 }
0x211f   :  { %v4797_v16 = vsel %vm510_vm4, %v4790_v14, -inf }
0x2120   :  { %4798 = vmax.xlane.f32.xlu1 %v4797_v16  ;;  %v8956_v20 = vpop.f32.mrf.mxu0 }
0x2131   :  { %4894 = vrot.lane.b32.xlu1 %v10118_v26, %s9395_s21 }
0x2135   :  { %5058 = vrot.lane.b32.xlu1 %v10097_v17, %s9396_s24 }
0x2139   :  { %5136 = vrot.lane.b32.xlu1 %v10095_v15, %s9396_s24 }
0x213d   :  { %5134 = vrot.lane.b32.xlu1 %v10101_v19, %s9396_s24 }
0x2182   :  { %v4808_v52 = vpop.xlane.xlu0 %4807 }
0x21a9   :  { %v4799_v25 = vpop.xlane.xlu1 %4798 }
0x21aa   :  { %v4801_v63 = vsub.f32 %v4790_v14, %v4799_v25 }
0x21ac   :  { %v4804_v28 = vmul.f32 1.442695, %v4801_v63 }
0x21ad   :  { %v4895_v29 = vpop.permute.xlu1 %4894 }
0x21ae   :  { %9301 = vpow2.f32 %v4804_v28  ;;  %8963 = vmatpush3.msra.mxu0 %v4895_v29 }
0x21af   :  { %8972 = vmatprep.subr.mxu0 %v9393_v54  ;;  %9303 = vrcp.f32 %v4808_v52 }
0x21b1   :  { %v5059_v43 = vpop.permute.xlu1 %5058 }
0x21b5   :  { %v5137_v46 = vpop.permute.xlu1 %5136 }
0x21b9   :  { %v5135_v48 = vpop.permute.xlu1 %5134 }
0x21bb   :  { %v9302_v30 = vpop.eup %9301 }
0x21bc   :  { %v4809_v31 = vsel %vm510_vm4, %v9302_v30, 0.0  ;;  %v9304_v6 = vpop.eup %9303 }
0x21bd   :  { %4810 = vadd.xlane.f32.xlu0 %v4809_v31  ;;  %v4814_v35 = vmul.f32 %v9304_v6, %v9300_v7 }
0x21d3   :  { %4817 = vrot.lane.b32.xlu0 %v10122_v27, %s9395_s21 }
0x21d7   :  { %5056 = vrot.lane.b32.xlu0 %v10109_v23, %s9396_s24 }
0x2246   :  { %v4811_v32 = vpop.xlane.xlu0 %4810 }
0x2247   :  { %9305 = vrcp.f32 %v4811_v32  ;;  %v10245_v32 = vld [vmem:[%s10631_s3 + $0xe8] sm:$0xff] }
0x224a   :  { %v4818_v34 = vpop.permute.xlu0 %4817 }
0x224b   :  { %8958 = vmatpush3.msra.mxu1 %v4818_v34 }
0x224c   :  { %8960 = vmatmul.mubr.msk.f32.vlgmr.msra.gmra.mxu1 %vm510_vm4, %v4814_v35  ;;  %8967 = vmatprep.subr.msk.mxu1 %vm685_vm5, %v4970_v33 }
0x224d   :  { %8968 = vmatpush3.msk.msra.mxu1 %vm685_vm5, %v4970_v33 }
0x224e   :  { %8977 = vmatprep.subr.mxu1 %v9393_v54  ;;  %v5057_v44 = vpop.permute.xlu0 %5056 }
0x2254   :  { %v9306_v36 = vpop.eup %9305 }
0x2255   :  { %v4815_v42 = vmul.f32 %v9306_v36, %v9302_v30 }
0x2257   :  { %8965 = vmatmul.mubr.msk.f32.vlgmr.msra.gmra.mxu0 %vm510_vm4, %v4815_v42 }
0x2258   :  { %8973 = vmatpush3.xpose.msk.msra.mxu0 %vm357_vm3, %v5059_v43  ;;  %8974 = vmatprep.mubr.msk.f32.mxu0 %vm9394_vm2, %v9393_v54 }
0x2259   :  { %8982 = vmatprep.subr.mxu0 %v9393_v54 }
0x225b   :  { %8975 = vmatmul.mubr.msk.f32.vlgmr.msra.gmra.mxu0 %vm357_vm3, %v5057_v44 }
0x225c   :  { %8984 = vmatprep.mubr.msk.f32.mxu0 %vm9394_vm2, %v9393_v54 }
0x230c   :  { %v4889_v9 = vpop.f32.mrf.mxu1 }
0x230d   :  { %8969 = vmatprep.mubr.msk.f32.mxu1 %vm357_vm3, %v4889_v9 }
0x230e   :  { %v8961_v45 = vpop.f32.mrf.mxu1 }
0x2317   :  { %v4966_v47 = vpop.f32.mrf.mxu0 }
0x2318   :  { %8970 = vmatmul.mubr.msk.f32.vlgmr.msra.gmra.mxu1 %vm357_vm3, %v4966_v47 }
0x2319   :  { %8978 = vmatpush3.xpose.msk.msra.mxu1 %vm357_vm3, %v5137_v46  ;;  %v8966_v10 = vpop.f32.mrf.mxu0  ;;  %8979 = vmatprep.mubr.msk.f32.mxu1 %vm9394_vm2, %v9393_v54 }
0x231a   :  { %8987 = vmatprep.subr.mxu1 %v9393_v54 }
0x231b   :  { %v5130_v50 = vpop.f32.mrf.mxu0 }
0x231c   :  { %8980 = vmatmul.mubr.msk.f32.vlgmr.msra.gmra.mxu1 %vm357_vm3, %v5135_v48  ;;  %v5212_v51 = vsel %vm510_vm4, %v5130_v50, -inf }
0x231d   :  { %5213 = vmax.xlane.f32.xlu0 %v5212_v51  ;;  %v8976_v53 = vpop.f32.mrf.mxu0  ;;  %8989 = vmatprep.mubr.msk.f32.mxu1 %vm9394_vm2, %v9393_v54 }
0x23a6   :  { %v5214_v8 = vpop.xlane.xlu0 %5213 }
0x23a7   :  { %v5218_v39 = vsub.f32 %v5130_v50, %v5214_v8 }
0x23a9   :  { %v5220_v57 = vmul.f32 1.442695, %v5218_v39 }
0x23ab   :  { %9307 = vpow2.f32 %v5220_v57 }
0x23b8   :  { %v9308_v62 = vpop.eup %9307 }
0x23b9   :  { %v5224_v2 = vsel %vm510_vm4, %v9308_v62, 0.0 }
0x23ba   :  { %5225 = vadd.xlane.f32.xlu0 %v5224_v2 }
0x23d8   :  { %v8971_v61 = vpop.f32.mrf.mxu1 }
0x23d9   :  { %v10214_v1 = vadd.f32 %v8971_v61, %v4637_v59 }
0x23da   :  { %v5045_v3 = vpop.f32.mrf.mxu1 }
0x23db   :  { %v10216_v4 = vadd.f32 %v5045_v3, %v4636_v0 }
0x23dc   :  { %v5208_v7 = vpop.f32.mrf.mxu1 }
0x23dd   :  { %v5215_v11 = vsel %vm510_vm4, %v5208_v7, -inf }
0x23de   :  { %5216 = vmax.xlane.f32.xlu1 %v5215_v11  ;;  %v8981_v14 = vpop.f32.mrf.mxu1 }
0x23ef   :  { %5310 = vrot.lane.b32.xlu1 %v10118_v26, %s9396_s24 }
0x23f3   :  { %5474 = vrot.lane.b32.xlu1 %v10097_v17, %s9397_s25 }
0x23f7   :  { %5552 = vrot.lane.b32.xlu1 %v10095_v15, %s9397_s25 }
0x23fb   :  { %5550 = vrot.lane.b32.xlu1 %v10101_v19, %s9397_s25 }
0x2443   :  { %v5226_v16 = vpop.xlane.xlu0 %5225 }
0x2467   :  { %v5217_v41 = vpop.xlane.xlu1 %5216 }
0x2468   :  { %v5219_v21 = vsub.f32 %v5208_v7, %v5217_v41 }
0x246a   :  { %v5222_v24 = vmul.f32 1.442695, %v5219_v21 }
0x246b   :  { %v5311_v49 = vpop.permute.xlu1 %5310 }
0x246c   :  { %9309 = vpow2.f32 %v5222_v24  ;;  %8988 = vmatpush3.msra.mxu1 %v5311_v49 }
0x246d   :  { %8997 = vmatprep.subr.mxu1 %v9393_v54  ;;  %9311 = vrcp.f32 %v5226_v16 }
0x246f   :  { %v5475_v31 = vpop.permute.xlu1 %5474 }
0x2473   :  { %v5553_v34 = vpop.permute.xlu1 %5552 }
0x2477   :  { %v5551_v42 = vpop.permute.xlu1 %5550 }
0x2479   :  { %v9310_v12 = vpop.eup %9309 }
0x247a   :  { %v5227_v13 = vsel %vm510_vm4, %v9310_v12, 0.0  ;;  %v9312_v25 = vpop.eup %9311 }
0x247b   :  { %5228 = vadd.xlane.f32.xlu0 %v5227_v13  ;;  %v5232_v28 = vmul.f32 %v9312_v25, %v9308_v62 }
0x2491   :  { %5234 = vrot.lane.b32.xlu0 %v10122_v27, %s9396_s24 }
0x2495   :  { %5472 = vrot.lane.b32.xlu0 %v10109_v23, %s9397_s25 }
0x2504   :  { %v5229_v20 = vpop.xlane.xlu0 %5228 }
0x2505   :  { %9313 = vrcp.f32 %v5229_v20 }
0x2508   :  { %v5235_v63 = vpop.permute.xlu0 %5234 }
0x2509   :  { %8983 = vmatpush3.msra.mxu0 %v5235_v63 }
0x250a   :  { %8985 = vmatmul.mubr.msk.f32.vlgmr.msra.gmra.mxu0 %vm510_vm4, %v5232_v28  ;;  %8992 = vmatprep.subr.msk.mxu0 %vm685_vm5, %v10245_v32 }
0x250b   :  { %8993 = vmatpush3.msk.msra.mxu0 %vm685_vm5, %v10245_v32 }
0x250c   :  { %v5473_v52 = vpop.permute.xlu0 %5472  ;;  %9002 = vmatprep.subr.mxu0 %v9393_v54 }
0x2512   :  { %v9314_v29 = vpop.eup %9313 }
0x2513   :  { %v5233_v30 = vmul.f32 %v9314_v29, %v9310_v12 }
0x2515   :  { %8990 = vmatmul.mubr.msk.f32.vlgmr.msra.gmra.mxu1 %vm510_vm4, %v5233_v30 }
0x2516   :  { %8998 = vmatpush3.xpose.msk.msra.mxu1 %vm357_vm3, %v5475_v31  ;;  %8999 = vmatprep.mubr.msk.f32.mxu1 %vm9394_vm2, %v9393_v54 }
0x2517   :  { %9007 = vmatprep.subr.mxu1 %v9393_v54 }
0x2519   :  { %9000 = vmatmul.mubr.msk.f32.vlgmr.msra.gmra.mxu1 %vm357_vm3, %v5473_v52 }
0x251a   :  { %9009 = vmatprep.mubr.msk.f32.mxu1 %vm9394_vm2, %v9393_v54 }
0x25ca   :  { %v5306_v6 = vpop.f32.mrf.mxu0 }
0x25cb   :  { %8994 = vmatprep.mubr.msk.f32.mxu0 %vm357_vm3, %v5306_v6 }
0x25cc   :  { %v8986_v33 = vpop.f32.mrf.mxu0 }
0x25d5   :  { %v5382_v35 = vpop.f32.mrf.mxu1 }
0x25d6   :  { %8995 = vmatmul.mubr.msk.f32.vlgmr.msra.gmra.mxu0 %vm357_vm3, %v5382_v35 }
0x25d7   :  { %9003 = vmatpush3.xpose.msk.msra.mxu0 %vm357_vm3, %v5553_v34  ;;  %v8991_v36 = vpop.f32.mrf.mxu1  ;;  %9004 = vmatprep.mubr.msk.f32.mxu0 %vm9394_vm2, %v9393_v54 }
0x25d8   :  { %9012 = vmatprep.subr.mxu0 %v9393_v54 }
0x25d9   :  { %v5546_v43 = vpop.f32.mrf.mxu1 }
0x25da   :  { %9005 = vmatmul.mubr.msk.f32.vlgmr.msra.gmra.mxu0 %vm357_vm3, %v5551_v42  ;;  %v5628_v44 = vsel %vm510_vm4, %v5546_v43, -inf }
0x25db   :  { %5629 = vmax.xlane.f32.xlu0 %v5628_v44  ;;  %v9001_v9 = vpop.f32.mrf.mxu1  ;;  %9014 = vmatprep.mubr.msk.f32.mxu0 %vm9394_vm2, %v9393_v54 }
0x2664   :  { %v5630_v45 = vpop.xlane.xlu0 %5629 }
0x2665   :  { %v5634_v46 = vsub.f32 %v5546_v43, %v5630_v45 }
0x2667   :  { %v5636_v47 = vmul.f32 1.442695, %v5634_v46 }
0x2669   :  { %9315 = vpow2.f32 %v5636_v47 }
0x2676   :  { %v9316_v10 = vpop.eup %9315 }
0x2677   :  { %v5640_v48 = vsel %vm510_vm4, %v9316_v10, 0.0 }
0x2678   :  { %5641 = vadd.xlane.f32.xlu0 %v5640_v48 }
0x2696   :  { %v8996_v50 = vpop.f32.mrf.mxu0 }
0x2697   :  { %v10264_v51 = vadd.f32 %v8996_v50, %v10214_v1 }
0x2698   :  { %v5461_v53 = vpop.f32.mrf.mxu0 }
0x2699   :  { %v10267_v8 = vadd.f32 %v5461_v53, %v10216_v4  ;;  %v5802_v4 = vrot.slane %v10245_v32, 4 }
0x269a   :  { %v5624_v39 = vpop.f32.mrf.mxu0 }
0x269b   :  { %v5631_v57 = vsel %vm510_vm4, %v5624_v39, -inf }
0x269c   :  { %5632 = vmax.xlane.f32.xlu1 %v5631_v57  ;;  %v9006_v62 = vpop.f32.mrf.mxu0 }
0x26ad   :  { %5726 = vrot.lane.b32.xlu1 %v10118_v26, %s9397_s25 }
0x26b1   :  { %5890 = vrot.lane.b32.xlu1 %v10097_v17, %s9398_s28 }
0x26b5   :  { %5968 = vrot.lane.b32.xlu1 %v10095_v15, %s9398_s28 }
0x26b9   :  { %5966 = vrot.lane.b32.xlu1 %v10101_v19, %s9398_s28 }
0x2701   :  { %v5642_v0 = vpop.xlane.xlu0 %5641 }
0x2725   :  { %v5633_v2 = vpop.xlane.xlu1 %5632 }
0x2726   :  { %v5635_v5 = vsub.f32 %v5624_v39, %v5633_v2 }
0x2728   :  { %v5638_v58 = vmul.f32 1.442695, %v5635_v5 }
0x2729   :  { %v5727_v59 = vpop.permute.xlu1 %5726 }
0x272a   :  { %9317 = vpow2.f32 %v5638_v58  ;;  %9013 = vmatpush3.msra.mxu0 %v5727_v59  ;;  %v10341_v58 = vld [vmem:[%s10631_s3 + $0xf0] sm:$0xff] }
0x272b   :  { %9022 = vmatprep.subr.mxu0 %v9393_v54  ;;  %9319 = vrcp.f32 %v5642_v0 }
0x272d   :  { %v5891_v21 = vpop.permute.xlu1 %5890 }
0x2731   :  { %v5969_v13 = vpop.permute.xlu1 %5968 }
0x2735   :  { %v5967_v25 = vpop.permute.xlu1 %5966 }
0x2737   :  { %v9318_v60 = vpop.eup %9317 }
0x2738   :  { %v5643_v61 = vsel %vm510_vm4, %v9318_v60, 0.0  ;;  %v9320_v3 = vpop.eup %9319 }
0x2739   :  { %5644 = vadd.xlane.f32.xlu0 %v5643_v61  ;;  %v5648_v11 = vmul.f32 %v9320_v3, %v9316_v10 }
0x274f   :  { %5650 = vrot.lane.b32.xlu0 %v10122_v27, %s9397_s25 }
0x2753   :  { %5888 = vrot.lane.b32.xlu0 %v10109_v23, %s9398_s28 }
0x27c2   :  { %v5645_v1 = vpop.xlane.xlu0 %5644 }
0x27c3   :  { %9321 = vrcp.f32 %v5645_v1 }
0x27c6   :  { %v5651_v7 = vpop.permute.xlu0 %5650 }
0x27c7   :  { %9008 = vmatpush3.msra.mxu1 %v5651_v7 }
0x27c8   :  { %9010 = vmatmul.mubr.msk.f32.vlgmr.msra.gmra.mxu1 %vm510_vm4, %v5648_v11  ;;  %9017 = vmatprep.subr.msk.mxu1 %vm685_vm5, %v5802_v4 }
0x27c9   :  { %9018 = vmatpush3.msk.msra.mxu1 %vm685_vm5, %v5802_v4 }
0x27ca   :  { %9027 = vmatprep.subr.mxu1 %v9393_v54  ;;  %v5889_v24 = vpop.permute.xlu0 %5888 }
0x27d0   :  { %v9322_v14 = vpop.eup %9321 }
0x27d1   :  { %v5649_v41 = vmul.f32 %v9322_v14, %v9318_v60 }
0x27d3   :  { %9015 = vmatmul.mubr.msk.f32.vlgmr.msra.gmra.mxu0 %vm510_vm4, %v5649_v41 }
0x27d4   :  { %9023 = vmatpush3.xpose.msk.msra.mxu0 %vm357_vm3, %v5891_v21  ;;  %9024 = vmatprep.mubr.msk.f32.mxu0 %vm9394_vm2, %v9393_v54 }
0x27d5   :  { %9032 = vmatprep.subr.mxu0 %v9393_v54 }
0x27d7   :  { %9025 = vmatmul.mubr.msk.f32.vlgmr.msra.gmra.mxu0 %vm357_vm3, %v5889_v24 }
0x27d8   :  { %9034 = vmatprep.mubr.msk.f32.mxu0 %vm9394_vm2, %v9393_v54 }
0x2888   :  { %v5722_v49 = vpop.f32.mrf.mxu1 }
0x2889   :  { %9019 = vmatprep.mubr.msk.f32.mxu1 %vm357_vm3, %v5722_v49 }
0x288a   :  { %v9011_v12 = vpop.f32.mrf.mxu1 }
0x2893   :  { %v5798_v16 = vpop.f32.mrf.mxu0 }
0x2894   :  { %9020 = vmatmul.mubr.msk.f32.vlgmr.msra.gmra.mxu1 %vm357_vm3, %v5798_v16 }
0x2895   :  { %9028 = vmatpush3.xpose.msk.msra.mxu1 %vm357_vm3, %v5969_v13  ;;  %v9016_v20 = vpop.f32.mrf.mxu0  ;;  %9029 = vmatprep.mubr.msk.f32.mxu1 %vm9394_vm2, %v9393_v54 }
0x2896   :  { %9037 = vmatprep.subr.mxu1 %v9393_v54 }
0x2897   :  { %v5962_v63 = vpop.f32.mrf.mxu0 }
0x2898   :  { %9030 = vmatmul.mubr.msk.f32.vlgmr.msra.gmra.mxu1 %vm357_vm3, %v5967_v25  ;;  %v6044_v28 = vsel %vm510_vm4, %v5962_v63, -inf }
0x2899   :  { %6045 = vmax.xlane.f32.xlu0 %v6044_v28  ;;  %v9026_v29 = vpop.f32.mrf.mxu0  ;;  %9039 = vmatprep.mubr.msk.f32.mxu1 %vm9394_vm2, %v9393_v54 }
0x2922   :  { %v6046_v30 = vpop.xlane.xlu0 %6045 }
0x2923   :  { %v6050_v31 = vsub.f32 %v5962_v63, %v6046_v30 }
0x2925   :  { %v6052_v52 = vmul.f32 1.442695, %v6050_v31 }
0x2927   :  { %9323 = vpow2.f32 %v6052_v52 }
0x2934   :  { %v9324_v32 = vpop.eup %9323 }
0x2935   :  { %v6056_v6 = vsel %vm510_vm4, %v9324_v32, 0.0 }
0x2936   :  { %6057 = vadd.xlane.f32.xlu0 %v6056_v6 }
0x2954   :  { %v9021_v33 = vpop.f32.mrf.mxu1 }
0x2955   :  { %v10309_v34 = vadd.f32 %v9021_v33, %v10264_v51 }
0x2956   :  { %v5877_v35 = vpop.f32.mrf.mxu1 }
0x2957   :  { %v10312_v36 = vadd.f32 %v5877_v35, %v10267_v8 }
0x2958   :  { %v6040_v42 = vpop.f32.mrf.mxu1 }
0x2959   :  { %v6047_v43 = vsel %vm510_vm4, %v6040_v42, -inf }
0x295a   :  { %6048 = vmax.xlane.f32.xlu1 %v6047_v43  ;;  %v9031_v44 = vpop.f32.mrf.mxu1 }
0x296b   :  { %6142 = vrot.lane.b32.xlu1 %v10118_v26, %s9398_s28 }
0x296f   :  { %6306 = vrot.lane.b32.xlu1 %v10097_v17, %s9399_s29 }
0x2973   :  { %6384 = vrot.lane.b32.xlu1 %v10095_v15, %s9399_s29 }
0x2977   :  { %6382 = vrot.lane.b32.xlu1 %v10101_v19, %s9399_s29 }
0x29bf   :  { %v6058_v50 = vpop.xlane.xlu0 %6057 }
0x29e3   :  { %v6049_v9 = vpop.xlane.xlu1 %6048 }
0x29e4   :  { %v6051_v45 = vsub.f32 %v6040_v42, %v6049_v9 }
0x29e6   :  { %v6054_v46 = vmul.f32 1.442695, %v6051_v45 }
0x29e7   :  { %v6143_v47 = vpop.permute.xlu1 %6142 }
0x29e8   :  { %9325 = vpow2.f32 %v6054_v46  ;;  %9038 = vmatpush3.msra.mxu1 %v6143_v47 }
0x29e9   :  { %9047 = vmatprep.subr.mxu1 %v9393_v54  ;;  %9327 = vrcp.f32 %v6058_v50 }
0x29eb   :  { %v6307_v2 = vpop.permute.xlu1 %6306 }
0x29ef   :  { %v6385_v61 = vpop.permute.xlu1 %6384 }
0x29f3   :  { %v6383_v3 = vpop.permute.xlu1 %6382 }
0x29f5   :  { %v9326_v10 = vpop.eup %9325 }
0x29f6   :  { %v6059_v48 = vsel %vm510_vm4, %v9326_v10, 0.0  ;;  %v9328_v53 = vpop.eup %9327 }
0x29f7   :  { %6060 = vadd.xlane.f32.xlu0 %v6059_v48  ;;  %v6064_v39 = vmul.f32 %v9328_v53, %v9324_v32 }
0x2a0d   :  { %6066 = vrot.lane.b32.xlu0 %v10122_v27, %s9398_s28 }
0x2a11   :  { %6304 = vrot.lane.b32.xlu0 %v10109_v23, %s9399_s29 }
0x2a80   :  { %v6061_v51 = vpop.xlane.xlu0 %6060 }
0x2a81   :  { %9329 = vrcp.f32 %v6061_v51 }
0x2a84   :  { %v6067_v8 = vpop.permute.xlu0 %6066 }
0x2a85   :  { %9033 = vmatpush3.msra.mxu0 %v6067_v8 }
0x2a86   :  { %9035 = vmatmul.mubr.msk.f32.vlgmr.msra.gmra.mxu0 %vm510_vm4, %v6064_v39  ;;  %9042 = vmatprep.subr.msk.mxu0 %vm685_vm5, %v10341_v58 }
0x2a87   :  { %9043 = vmatpush3.msk.msra.mxu0 %vm685_vm5, %v10341_v58 }
0x2a88   :  { %v6305_v5 = vpop.permute.xlu0 %6304  ;;  %9052 = vmatprep.subr.mxu0 %v9393_v54 }
0x2a8e   :  { %v9330_v57 = vpop.eup %9329 }
0x2a8f   :  { %v6065_v62 = vmul.f32 %v9330_v57, %v9326_v10 }
0x2a91   :  { %9040 = vmatmul.mubr.msk.f32.vlgmr.msra.gmra.mxu1 %vm510_vm4, %v6065_v62 }
0x2a92   :  { %9048 = vmatpush3.xpose.msk.msra.mxu1 %vm357_vm3, %v6307_v2  ;;  %9049 = vmatprep.mubr.msk.f32.mxu1 %vm9394_vm2, %v9393_v54 }
0x2a93   :  { %9057 = vmatprep.subr.mxu1 %v9393_v54 }
0x2a95   :  { %9050 = vmatmul.mubr.msk.f32.vlgmr.msra.gmra.mxu1 %vm357_vm3, %v6305_v5 }
0x2a96   :  { %9059 = vmatprep.mubr.msk.f32.mxu1 %vm9394_vm2, %v9393_v54 }
0x2b46   :  { %v6138_v59 = vpop.f32.mrf.mxu0 }
0x2b47   :  { %9044 = vmatprep.mubr.msk.f32.mxu0 %vm357_vm3, %v6138_v59 }
0x2b48   :  { %v9036_v60 = vpop.f32.mrf.mxu0 }
0x2b51   :  { %v6214_v0 = vpop.f32.mrf.mxu1 }
0x2b52   :  { %9045 = vmatmul.mubr.msk.f32.vlgmr.msra.gmra.mxu0 %vm357_vm3, %v6214_v0 }
0x2b53   :  { %9053 = vmatpush3.xpose.msk.msra.mxu0 %vm357_vm3, %v6385_v61  ;;  %v9041_v1 = vpop.f32.mrf.mxu1  ;;  %9054 = vmatprep.mubr.msk.f32.mxu0 %vm9394_vm2, %v9393_v54 }
0x2b54   :  { %9062 = vmatprep.subr.mxu0 %v9393_v54 }
0x2b55   :  { %v6378_v4 = vpop.f32.mrf.mxu1 }
0x2b56   :  { %9055 = vmatmul.mubr.msk.f32.vlgmr.msra.gmra.mxu0 %vm357_vm3, %v6383_v3  ;;  %v6460_v7 = vsel %vm510_vm4, %v6378_v4, -inf }
0x2b57   :  { %6461 = vmax.xlane.f32.xlu0 %v6460_v7  ;;  %v9051_v11 = vpop.f32.mrf.mxu1  ;;  %9064 = vmatprep.mubr.msk.f32.mxu0 %vm9394_vm2, %v9393_v54 }
0x2be0   :  { %v6462_v14 = vpop.xlane.xlu0 %6461 }
0x2be1   :  { %v6466_v41 = vsub.f32 %v6378_v4, %v6462_v14 }
0x2be3   :  { %v6468_v21 = vmul.f32 1.442695, %v6466_v41 }
0x2be5   :  { %9331 = vpow2.f32 %v6468_v21 }
0x2bf2   :  { %v9332_v24 = vpop.eup %9331 }
0x2bf3   :  { %v6472_v49 = vsel %vm510_vm4, %v9332_v24, 0.0 }
0x2bf4   :  { %6473 = vadd.xlane.f32.xlu0 %v6472_v49 }
0x2c12   :  { %v9046_v12 = vpop.f32.mrf.mxu0 }
0x2c13   :  { %v10360_v13 = vadd.f32 %v9046_v12, %v10309_v34 }
0x2c14   :  { %v6293_v16 = vpop.f32.mrf.mxu0 }
0x2c15   :  { %v10363_v20 = vadd.f32 %v6293_v16, %v10312_v36  ;;  %v6634_v36 = vrot.slane %v10341_v58, 4 }
0x2c16   :  { %v6456_v25 = vpop.f32.mrf.mxu0 }
0x2c17   :  { %v6463_v63 = vsel %vm510_vm4, %v6456_v25, -inf }
0x2c18   :  { %6464 = vmax.xlane.f32.xlu1 %v6463_v63  ;;  %v9056_v28 = vpop.f32.mrf.mxu0  ;;  %v8227_v63 = vld [vmem:[%s10631_s3 + $0xf8] sm:$0xff] }
0x2c29   :  { %6558 = vrot.lane.b32.xlu1 %v10118_v26, %s9399_s29 }
0x2c2d   :  { %6722 = vrot.lane.b32.xlu1 %v10097_v17, %s9400_s12 }
0x2c31   :  { %6800 = vrot.lane.b32.xlu1 %v10095_v15, %s9400_s12 }
0x2c35   :  { %6798 = vrot.lane.b32.xlu1 %v10101_v19, %s9400_s12 }
0x2c7d   :  { %v6474_v33 = vpop.xlane.xlu0 %6473 }
0x2ca1   :  { %v6465_v29 = vpop.xlane.xlu1 %6464 }
0x2ca2   :  { %v6467_v30 = vsub.f32 %v6456_v25, %v6465_v29 }
0x2ca4   :  { %v6470_v31 = vmul.f32 1.442695, %v6467_v30 }
0x2ca5   :  { %v6559_v52 = vpop.permute.xlu1 %6558 }
0x2ca6   :  { %9333 = vpow2.f32 %v6470_v31  ;;  %9063 = vmatpush3.msra.mxu0 %v6559_v52 }
0x2ca7   :  { %9072 = vmatprep.subr.mxu0 %v9393_v54  ;;  %9335 = vrcp.f32 %v6474_v33 }
0x2ca9   :  { %v6723_v45 = vpop.permute.xlu1 %6722 }
0x2cad   :  { %v6801_v48 = vpop.permute.xlu1 %6800 }
0x2cb1   :  { %v6799_v53 = vpop.permute.xlu1 %6798 }
0x2cb3   :  { %v9334_v32 = vpop.eup %9333 }
0x2cb4   :  { %v6475_v6 = vsel %vm510_vm4, %v9334_v32, 0.0  ;;  %v9336_v35 = vpop.eup %9335 }
0x2cb5   :  { %6476 = vadd.xlane.f32.xlu0 %v6475_v6  ;;  %v6480_v43 = vmul.f32 %v9336_v35, %v9332_v24 }
0x2ccb   :  { %6482 = vrot.lane.b32.xlu0 %v10122_v27, %s9399_s29 }
0x2ccf   :  { %6720 = vrot.lane.b32.xlu0 %v10109_v23, %s9400_s12 }
0x2d3e   :  { %v6477_v34 = vpop.xlane.xlu0 %6476 }
0x2d3f   :  { %9337 = vrcp.f32 %v6477_v34 }
0x2d42   :  { %v6483_v42 = vpop.permute.xlu0 %6482 }
0x2d43   :  { %9058 = vmatpush3.msra.mxu1 %v6483_v42 }
0x2d44   :  { %9060 = vmatmul.mubr.msk.f32.vlgmr.msra.gmra.mxu1 %vm510_vm4, %v6480_v43  ;;  %9067 = vmatprep.subr.msk.mxu1 %vm685_vm5, %v6634_v36 }
0x2d45   :  { %9068 = vmatpush3.msk.msra.mxu1 %vm685_vm5, %v6634_v36 }
0x2d46   :  { %9077 = vmatprep.subr.mxu1 %v9393_v54  ;;  %v6721_v46 = vpop.permute.xlu0 %6720 }
0x2d4c   :  { %v9338_v44 = vpop.eup %9337 }
0x2d4d   :  { %v6481_v9 = vmul.f32 %v9338_v44, %v9334_v32 }
0x2d4f   :  { %9065 = vmatmul.mubr.msk.f32.vlgmr.msra.gmra.mxu0 %vm510_vm4, %v6481_v9 }
0x2d50   :  { %9073 = vmatpush3.xpose.msk.msra.mxu0 %vm357_vm3, %v6723_v45  ;;  %9074 = vmatprep.mubr.msk.f32.mxu0 %vm9394_vm2, %v9393_v54 }
0x2d51   :  { %9082 = vmatprep.subr.mxu0 %v9393_v54 }
0x2d53   :  { %9075 = vmatmul.mubr.msk.f32.vlgmr.msra.gmra.mxu0 %vm357_vm3, %v6721_v46 }
0x2d54   :  { %9084 = vmatprep.mubr.msk.f32.mxu0 %vm9394_vm2, %v9393_v54 }
0x2e04   :  { %v6554_v47 = vpop.f32.mrf.mxu1 }
0x2e05   :  { %9069 = vmatprep.mubr.msk.f32.mxu1 %vm357_vm3, %v6554_v47 }
0x2e06   :  { %v9061_v10 = vpop.f32.mrf.mxu1 }
0x2e0f   :  { %v6630_v50 = vpop.f32.mrf.mxu0 }
0x2e10   :  { %9070 = vmatmul.mubr.msk.f32.vlgmr.msra.gmra.mxu1 %vm357_vm3, %v6630_v50 }
0x2e11   :  { %9078 = vmatpush3.xpose.msk.msra.mxu1 %vm357_vm3, %v6801_v48  ;;  %v9066_v51 = vpop.f32.mrf.mxu0  ;;  %9079 = vmatprep.mubr.msk.f32.mxu1 %vm9394_vm2, %v9393_v54 }
0x2e12   :  { %9087 = vmatprep.subr.mxu1 %v9393_v54 }
0x2e13   :  { %v6794_v8 = vpop.f32.mrf.mxu0 }
0x2e14   :  { %9080 = vmatmul.mubr.msk.f32.vlgmr.msra.gmra.mxu1 %vm357_vm3, %v6799_v53  ;;  %v6876_v39 = vsel %vm510_vm4, %v6794_v8, -inf }
0x2e15   :  { %6877 = vmax.xlane.f32.xlu0 %v6876_v39  ;;  %v9076_v57 = vpop.f32.mrf.mxu0  ;;  %9089 = vmatprep.mubr.msk.f32.mxu1 %vm9394_vm2, %v9393_v54 }
0x2e9e   :  { %v6878_v62 = vpop.xlane.xlu0 %6877 }
0x2e9f   :  { %v6882_v2 = vsub.f32 %v6794_v8, %v6878_v62 }
0x2ea1   :  { %v6884_v5 = vmul.f32 1.442695, %v6882_v2 }
0x2ea3   :  { %9339 = vpow2.f32 %v6884_v5 }
0x2eb0   :  { %v9340_v58 = vpop.eup %9339 }
0x2eb1   :  { %v6888_v59 = vsel %vm510_vm4, %v9340_v58, 0.0 }
0x2eb2   :  { %6889 = vadd.xlane.f32.xlu0 %v6888_v59  ;;  %v7466_v59 = vrot.slane %v8227_v63, 4 }
0x2ed0   :  { %v9071_v60 = vpop.f32.mrf.mxu1 }
0x2ed1   :  { %v10405_v61 = vadd.f32 %v9071_v60, %v10360_v13 }
0x2ed2   :  { %v6709_v0 = vpop.f32.mrf.mxu1 }
0x2ed3   :  { %v10408_v1 = vadd.f32 %v6709_v0, %v10363_v20 }
0x2ed4   :  { %v6872_v3 = vpop.f32.mrf.mxu1 }
0x2ed5   :  { %v6879_v4 = vsel %vm510_vm4, %v6872_v3, -inf }
0x2ed6   :  { %6880 = vmax.xlane.f32.xlu1 %v6879_v4  ;;  %v9081_v7 = vpop.f32.mrf.mxu1 }
0x2ee7   :  { %6974 = vrot.lane.b32.xlu1 %v10118_v26, %s9400_s12 }
0x2eeb   :  { %7138 = vrot.lane.b32.xlu1 %v10097_v17, %s9401_s13 }
0x2eef   :  { %7216 = vrot.lane.b32.xlu1 %v10095_v15, %s9401_s13 }
0x2ef3   :  { %7214 = vrot.lane.b32.xlu1 %v10101_v19, %s9401_s13 }
0x2f3b   :  { %v6890_v15 = vpop.xlane.xlu0 %6889 }
0x2f5f   :  { %v6881_v11 = vpop.xlane.xlu1 %6880 }
0x2f60   :  { %v6883_v14 = vsub.f32 %v6872_v3, %v6881_v11 }
0x2f62   :  { %v6886_v41 = vmul.f32 1.442695, %v6883_v14 }
0x2f63   :  { %v6975_v21 = vpop.permute.xlu1 %6974 }
0x2f64   :  { %9341 = vpow2.f32 %v6886_v41  ;;  %9088 = vmatpush3.msra.mxu1 %v6975_v21 }
0x2f65   :  { %9097 = vmatprep.subr.mxu1 %v9393_v54  ;;  %9343 = vrcp.f32 %v6890_v15 }
0x2f67   :  { %v7139_v25 = vpop.permute.xlu1 %7138 }
0x2f6b   :  { %v7217_v30 = vpop.permute.xlu1 %7216 }
0x2f6f   :  { %v7215_v32 = vpop.permute.xlu1 %7214 }
0x2f71   :  { %v9342_v24 = vpop.eup %9341 }
0x2f72   :  { %v6891_v49 = vsel %vm510_vm4, %v9342_v24, 0.0  ;;  %v9344_v19 = vpop.eup %9343 }
0x2f73   :  { %6892 = vadd.xlane.f32.xlu0 %v6891_v49  ;;  %v6896_v13 = vmul.f32 %v9344_v19, %v9340_v58 }
0x2f89   :  { %6898 = vrot.lane.b32.xlu0 %v10122_v27, %s9400_s12 }
0x2f8d   :  { %7136 = vrot.lane.b32.xlu0 %v10109_v23, %s9401_s13 }
0x2ffc   :  { %v6893_v17 = vpop.xlane.xlu0 %6892 }
0x2ffd   :  { %9345 = vrcp.f32 %v6893_v17 }
0x3000   :  { %v6899_v12 = vpop.permute.xlu0 %6898 }
0x3001   :  { %9083 = vmatpush3.msra.mxu0 %v6899_v12 }
0x3002   :  { %9085 = vmatmul.mubr.msk.f32.vlgmr.msra.gmra.mxu0 %vm510_vm4, %v6896_v13  ;;  %9092 = vmatprep.subr.msk.mxu0 %vm685_vm5, %v8227_v63 }
0x3003   :  { %9093 = vmatpush3.msk.msra.mxu0 %vm685_vm5, %v8227_v63  ;;  %v8309_v63 = vld [vmem:[%s10632_s4 + $0x38] sm:$0xff] }
0x3004   :  { %v7137_v23 = vpop.permute.xlu0 %7136  ;;  %9102 = vmatprep.subr.mxu0 %v9393_v54 }
0x300a   :  { %v9346_v16 = vpop.eup %9345 }
0x300b   :  { %v6897_v20 = vmul.f32 %v9346_v16, %v9342_v24 }
0x300d   :  { %9090 = vmatmul.mubr.msk.f32.vlgmr.msra.gmra.mxu1 %vm510_vm4, %v6897_v20 }
0x300e   :  { %9098 = vmatpush3.xpose.msk.msra.mxu1 %vm357_vm3, %v7139_v25  ;;  %9099 = vmatprep.mubr.msk.f32.mxu1 %vm9394_vm2, %v9393_v54 }
0x300f   :  { %9107 = vmatprep.subr.mxu1 %v9393_v54 }
0x3011   :  { %9100 = vmatmul.mubr.msk.f32.vlgmr.msra.gmra.mxu1 %vm357_vm3, %v7137_v23 }
0x3012   :  { %9109 = vmatprep.mubr.msk.f32.mxu1 %vm9394_vm2, %v9393_v54 }
0x30c2   :  { %v6970_v28 = vpop.f32.mrf.mxu0 }
0x30c3   :  { %9094 = vmatprep.mubr.msk.f32.mxu0 %vm357_vm3, %v6970_v28  ;;  %v8308_v28 = vld [vmem:[%s10632_s4 + $0x30] sm:$0xff] }
0x30c4   :  { %v9086_v29 = vpop.f32.mrf.mxu0 }
0x30c5   :  { %v8307_v29 = vld [vmem:[%s10632_s4 + $0x28] sm:$0xff] }
0x30cd   :  { %v7046_v31 = vpop.f32.mrf.mxu1 }
0x30ce   :  { %9095 = vmatmul.mubr.msk.f32.vlgmr.msra.gmra.mxu0 %vm357_vm3, %v7046_v31 }
0x30cf   :  { %9103 = vmatpush3.xpose.msk.msra.mxu0 %vm357_vm3, %v7217_v30  ;;  %v9091_v52 = vpop.f32.mrf.mxu1  ;;  %9104 = vmatprep.mubr.msk.f32.mxu0 %vm9394_vm2, %v9393_v54  ;;  %v8306_v30 = vld [vmem:[%s10632_s4 + $0x20] sm:$0xff] }
0x30d0   :  { %9112 = vmatprep.subr.mxu0 %v9393_v54 }
0x30d1   :  { %v7210_v6 = vpop.f32.mrf.mxu1 }
0x30d2   :  { %9105 = vmatmul.mubr.msk.f32.vlgmr.msra.gmra.mxu0 %vm357_vm3, %v7215_v32  ;;  %v7292_v33 = vsel %vm510_vm4, %v7210_v6, -inf }
0x30d3   :  { %7293 = vmax.xlane.f32.xlu0 %v7292_v33  ;;  %v9101_v34 = vpop.f32.mrf.mxu1  ;;  %9114 = vmatprep.mubr.msk.f32.mxu0 %vm9394_vm2, %v9393_v54 }
0x315c   :  { %v7294_v35 = vpop.xlane.xlu0 %7293 }
0x315d   :  { %v7298_v36 = vsub.f32 %v7210_v6, %v7294_v35 }
0x315f   :  { %v7300_v42 = vmul.f32 1.442695, %v7298_v36  ;;  %v9370_v36 = vld [vmem:[%s10630_s2 + $0x10] sm:$0xff] }
0x3161   :  { %9347 = vpow2.f32 %v7300_v42  ;;  %v7581_v42 = vrot.slane %v9370_v36, %v3708_v18  ;;  %v8329_v18 = vld [vmem:[%s10634_s6 + $0xf8] sm:$0xff] }
0x316e   :  { %v9348_v43 = vpop.eup %9347 }
0x316f   :  { %v7304_v44 = vsel %vm510_vm4, %v9348_v43, 0.0 }
0x3170   :  { %7305 = vadd.xlane.f32.xlu0 %v7304_v44 }
0x318e   :  { %v9096_v9 = vpop.f32.mrf.mxu0 }
0x318f   :  { %v7135_v45 = vadd.f32 %v9096_v9, %v10405_v61 }
0x3190   :  { %v7125_v46 = vpop.f32.mrf.mxu0 }
0x3191   :  { %v7134_v47 = vadd.f32 %v7125_v46, %v10408_v1  ;;  %v7587_v46 = vrot.slane %v9370_v36, %v3714_v22  ;;  %v8327_v22 = vld [vmem:[%s10634_s6 + $0xe8] sm:$0xff] }
0x3192   :  { %v7288_v10 = vpop.f32.mrf.mxu0 }
0x3193   :  { %v7295_v48 = vsel %vm510_vm4, %v7288_v10, -inf }
0x3194   :  { %7296 = vmax.xlane.f32.xlu1 %v7295_v48  ;;  %v9106_v50 = vpop.f32.mrf.mxu0 }
0x3195   :  { %v8326_v50 = vld [vmem:[%s10634_s6 + $0xe0] sm:$0xff] }
0x31a5   :  { %7390 = vrot.lane.b32.xlu1 %v10118_v26, %s9401_s13 }
0x31f9   :  { %v7306_v2 = vpop.xlane.xlu0 %7305 }
0x321d   :  { %v7297_v51 = vpop.xlane.xlu1 %7296 }
0x321e   :  { %v7299_v53 = vsub.f32 %v7288_v10, %v7297_v51  ;;  %v8325_v51 = vld [vmem:[%s10634_s6 + $0xd8] sm:$0xff] }
0x3220   :  { %v7302_v8 = vmul.f32 1.442695, %v7299_v53  ;;  %v8324_v53 = vld [vmem:[%s10634_s6 + $0xd0] sm:$0xff] }
0x3221   :  { %v7391_v39 = vpop.permute.xlu1 %7390 }
0x3222   :  { %9349 = vpow2.f32 %v7302_v8  ;;  %9113 = vmatpush3.msra.mxu0 %v7391_v39  ;;  %v8323_v8 = vld [vmem:[%s10634_s6 + $0xc8] sm:$0xff]  ;;  %v8322_v39 = vld [vmem:[%s10634_s6 + $0xc0] sm:$0xff] }
0x3223   :  { %9351 = vrcp.f32 %v7306_v2  ;;  %9122 = vmatprep.subr.mxu0 %v8309_v63  ;;  %v8319_v2 = vld [vmem:[%s10634_s6 + $0xa8] sm:$0xff] }
0x322f   :  { %v9350_v57 = vpop.eup %9349 }
0x3230   :  { %v7307_v62 = vsel %vm510_vm4, %v9350_v57, 0.0  ;;  %v9352_v58 = vpop.eup %9351 }
0x3231   :  { %7308 = vadd.xlane.f32.xlu0 %v7307_v62  ;;  %v7312_v60 = vmul.f32 %v9352_v58, %v9348_v43  ;;  %v8320_v62 = vld [vmem:[%s10634_s6 + $0xb0] sm:$0xff]  ;;  %v8317_v58 = vld [vmem:[%s10634_s6 + $0x98] sm:$0xff] }
0x3247   :  { %7314 = vrot.lane.b32.xlu0 %v10122_v27, %s9401_s13 }
0x32ba   :  { %v7309_v5 = vpop.xlane.xlu0 %7308 }
0x32bb   :  { %9353 = vrcp.f32 %v7309_v5  ;;  %v8318_v5 = vld [vmem:[%s10634_s6 + $0xa0] sm:$0xff] }
0x32be   :  { %v7315_v26 = vpop.permute.xlu0 %7314 }
0x32bf   :  { %9108 = vmatpush3.msra.mxu1 %v7315_v26  ;;  %v8315_v26 = vld [vmem:[%s10634_s6 + $0x88] sm:$0xff] }
0x32c0   :  { %9110 = vmatmul.mubr.msk.f32.vlgmr.msra.gmra.mxu1 %vm510_vm4, %v7312_v60  ;;  %9117 = vmatprep.subr.msk.mxu1 %vm685_vm5, %v7466_v59  ;;  %v8314_v60 = vld [vmem:[%s10634_s6 + $0x80] sm:$0xff] }
0x32c1   :  { %9118 = vmatpush3.msk.msra.mxu1 %vm685_vm5, %v7466_v59  ;;  %v8316_v59 = vld [vmem:[%s10634_s6 + $0x90] sm:$0xff] }
0x32c2   :  { %9133 = vmatprep.subr.mxu1 %v8329_v18 }
0x32c8   :  { %v9354_v61 = vpop.eup %9353 }
0x32c9   :  { %v7313_v0 = vmul.f32 %v9354_v61, %v9350_v57  ;;  %v8321_v57 = vld [vmem:[%s10634_s6 + $0xb8] sm:$0xff]  ;;  %v8311_v61 = vld [vmem:[%s10633_s5 + $0x1] ss:$0 sm:$0xff]  ;;  %s9402_s6 = smov [#allocation2]  }
0x32cb   :  { %9115 = vmatmul.mubr.msk.f32.vlgmr.msra.gmra.mxu0 %vm510_vm4, %v7313_v0 }
0x32cc   :  { %9123 = vmatpush3.msra.mxu0 %v8309_v63 }
0x32cd   :  { %9124 = vmatprep.subr.mxu0 %v8308_v28 }
0x32ce   :  { %9125 = vmatpush3.msra.mxu0 %v8308_v28 }
0x32cf   :  { %9126 = vmatprep.subr.mxu0 %v8307_v29 }
0x32d0   :  { %9127 = vmatpush3.msra.mxu0 %v8307_v29 }
0x32d1   :  { %9128 = vmatprep.subr.mxu0 %v8306_v30 }
0x32d2   :  { %9129 = vmatpush3.msra.mxu0 %v8306_v30  ;;  %v8330_v30 = vld [vmem:[%s10630_s2 + $0x18] ss:$0 sm:$0xff]  ;;  %s8120_s2 = sshll.u32 %s9402_s6, 4  ;;  %s8121_s2 = int_to_ptr.vmem [resolvable:$true] %s8120_s2 }
0x32d3   :  { %9168 = vmatprep.subr.mxu0 %v9393_v54  ;;  %s9371_s25 = scalar_lea.vmem %s8121_s2, 32  ;;  %p9376_p1 = scmp.lt.s32.totalorder %s8121_s2, %s8121_s2 }
0x32d4   :  { %p9372_p0 = scmp.ne.s32.totalorder %s8121_s2, %s9371_s25  ;;  %p9377_p2 = scmp.lt.s32.totalorder %s9371_s25, %s9371_s25 }
0x32d6   :  { %p9378_p3 = por %p9377_p2, %p9376_p1 }
0x32d8   :  { %p9379_p4 = pnand %p9378_p3, %p9372_p0 }
0x3380   :  { %v7386_v27 = vpop.f32.mrf.mxu1 }
0x3381   :  { %9119 = vmatprep.mubr.msk.f32.mxu1 %vm357_vm3, %v7386_v27 }
0x3382   :  { %v9111_v1 = vpop.f32.mrf.mxu1 }
0x338b   :  { %v7462_v3 = vpop.f32.mrf.mxu0 }
0x338c   :  { %9120 = vmatmul.mubr.msk.f32.vlgmr.msra.gmra.mxu1 %vm357_vm3, %v7462_v3 }
0x338d   :  { %v9116_v4 = vpop.f32.mrf.mxu0  ;;  %9134 = vmatpush3.msra.mxu1 %v8329_v18 }
0x338e   :  { %9135 = vmatprep.subr.mxu1 %v8328_v37 }
0x338f   :  { %9136 = vmatpush3.msra.mxu1 %v8328_v37  ;;  %v7803_v37 = vld [vmem:[%s10636_s8 + $0x10] sm:$0xff] }
0x3390   :  { %9137 = vmatprep.subr.mxu1 %v8327_v22 }
0x3391   :  { %9138 = vmatpush3.msra.mxu1 %v8327_v22  ;;  %v7802_v22 = vld [vmem:[%s10636_s8 + $0x8] sm:$0xff] }
0x3392   :  { %9139 = vmatprep.subr.mxu1 %v8326_v50 }
0x3393   :  { %9140 = vmatpush3.msra.mxu1 %v8326_v50  ;;  %v7801_v50 = vld [vmem:[%s10636_s8] sm:$0xff] }
0x3394   :  { %9141 = vmatprep.subr.mxu1 %v8325_v51 }
0x3395   :  { %9142 = vmatpush3.msra.mxu1 %v8325_v51 }
0x3396   :  { %9143 = vmatprep.subr.mxu1 %v8324_v53 }
0x3397   :  { %9144 = vmatpush3.msra.mxu1 %v8324_v53 }
0x3398   :  { %9145 = vmatprep.subr.mxu1 %v8323_v8 }
0x3399   :  { %9146 = vmatpush3.msra.mxu1 %v8323_v8 }
0x339a   :  { %9147 = vmatprep.subr.mxu1 %v8322_v39 }
0x339b   :  { %9148 = vmatpush3.msra.mxu1 %v8322_v39  ;;  %v7800_v39 = vld [vmem:[%s10635_s7] sm:$0xf] }
0x339c   :  { %9149 = vmatprep.subr.mxu1 %v8321_v57 }
0x339d   :  { %9150 = vmatpush3.msra.mxu1 %v8321_v57 }
0x339e   :  { %9151 = vmatprep.subr.mxu1 %v8320_v62 }
0x339f   :  { %9152 = vmatpush3.msra.mxu1 %v8320_v62 }
0x33a0   :  { %9153 = vmatprep.subr.mxu1 %v8319_v2 }
0x33a1   :  { %9154 = vmatpush3.msra.mxu1 %v8319_v2 }
0x33a2   :  { %9155 = vmatprep.subr.mxu1 %v8318_v5 }
0x33a3   :  { %9156 = vmatpush3.msra.mxu1 %v8318_v5  ;;  %v7848_v5 = vrot.slane %v7800_v39, %v9509_v38  ;;  %v7807_v38 = vld [vmem:[%s10636_s8 + $0x30] sm:$0xff] }
0x33a4   :  { %9157 = vmatprep.subr.mxu1 %v8317_v58 }
0x33a5   :  { %9158 = vmatpush3.msra.mxu1 %v8317_v58 }
0x33a6   :  { %9159 = vmatprep.subr.mxu1 %v8316_v59 }
0x33a7   :  { %9160 = vmatpush3.msra.mxu1 %v8316_v59 }
0x33a8   :  { %9161 = vmatprep.subr.mxu1 %v8315_v26 }
0x33a9   :  { %9162 = vmatpush3.msra.mxu1 %v8315_v26 }
0x33aa   :  { %9163 = vmatprep.subr.mxu1 %v8314_v60 }
0x33ab   :  { %9164 = vmatpush3.msra.mxu1 %v8314_v60  ;;  %v7854_v60 = vrot.slane %v7800_v39, %v9517_v40  ;;  %v7806_v40 = vld [vmem:[%s10636_s8 + $0x28] sm:$0xff] }
0x344c   :  { %v9121_v7 = vpop.f32.mrf.mxu1 }
0x344d   :  { %v10465_v11 = vadd.f32 %v9121_v7, %v7135_v45 }
0x344e   :  { %v7541_v14 = vpop.f32.mrf.mxu1 }
0x344f   :  { %v10467_v41 = vadd.f32 %v7541_v14, %v7134_v47  ;;  %v7555_v21 = vsel %vm68_vm1, %v10465_v11, 0.0 }
0x3450   :  { %7556 = vadd.xlane.f32.xlu0 %v7555_v21 }
0x3451   :  { %v7552_v24 = vsel %vm68_vm1, %v10467_v41, 0.0 }
0x3452   :  { %7553 = vadd.xlane.f32.xlu1 %v7552_v24 }
0x34d9   :  { %v7557_v49 = vpop.xlane.xlu0 %7556 }
0x34da   :  { %v7559_v15 = vmul.f32 0.03125, %v7557_v49 }
0x34db   :  { %v7554_v17 = vpop.xlane.xlu1 %7553 }
0x34dc   :  { %v7561_v19 = vsub.f32 %v10465_v11, %v7559_v15  ;;  %v7558_v12 = vmul.f32 0.03125, %v7554_v17 }
0x34de   :  { %v7560_v13 = vsub.f32 %v10467_v41, %v7558_v12  ;;  %v7563_v16 = vmul.f32 %v7561_v19, %v7561_v19 }
0x34e0   :  { %v7567_v20 = vsel %vm68_vm1, %v7563_v16, 0.0  ;;  %v7562_v25 = vmul.f32 %v7560_v13, %v7560_v13 }
0x34e1   :  { %7568 = vadd.xlane.f32.xlu1 %v7567_v20 }
0x34e2   :  { %v7564_v23 = vsel %vm68_vm1, %v7562_v25, 0.0 }
0x34e3   :  { %7565 = vadd.xlane.f32.xlu0 %v7564_v23 }
0x356a   :  { %v7569_v31 = vpop.xlane.xlu1 %7568 }
0x356b   :  { %v7571_v52 = vmul.f32 0.03125, %v7569_v31 }
0x356c   :  { %v7566_v32 = vpop.xlane.xlu0 %7565 }
0x356d   :  { %v7573_v6 = vadd.f32 1e-06, %v7571_v52  ;;  %v7570_v33 = vmul.f32 0.03125, %v7566_v32 }
0x356f   :  { %9355 = vrsqrt.f32 %v7573_v6  ;;  %v7572_v34 = vadd.f32 1e-06, %v7570_v33 }
0x3571   :  { %9357 = vrsqrt.f32 %v7572_v34 }
0x357c   :  { %v9356_v35 = vpop.eup %9355 }
0x357d   :  { %v7577_v43 = vmul.f32 %v9356_v35, %v7561_v19 }
0x357e   :  { %v9358_v44 = vpop.eup %9357 }
0x357f   :  { %v7576_v9 = vmul.f32 %v9358_v44, %v7560_v13  ;;  %v7583_v45 = vmul.f32 %v7581_v42, %v7577_v43 }
0x3581   :  { %v7582_v47 = vmul.f32 %v7581_v42, %v7576_v9  ;;  %v7589_v48 = vadd.f32 %v7587_v46, %v7583_v45 }
0x3583   :  { %v7588_v10 = vadd.f32 %v7587_v46, %v7582_v47 }
0x3585   :  { %9130 = vmatprep.mubr.msk.f32.mxu0 %vm68_vm1, %v7588_v10 }
0x3586   :  { %9131 = vmatmul.mubr.msk.f32.vlgmr.msra.gmra.mxu0 %vm68_vm1, %v7589_v48 }
0x3587   :  { %9176 = vmatprep.mubr.msk.f32.mxu0 %vm9394_vm2, %v9393_v54 }
0x3646   :  { %v9132_v0 = vpop.f32.mrf.mxu0 }
0x3647   :  { %v7681_v27 = vadd.f32 %v9132_v0, %v8311_v61 }
0x3648   :  { %v7675_v1 = vpop.f32.mrf.mxu0 }
0x3649   :  { %v7687_v3 = vmul.f32 0.044715, %v7681_v27  ;;  %v7676_v4 = vadd.f32 %v8311_v61, %v7675_v1  ;;  %v7685_v63 = vmul.f32 0.5, %v7681_v27  ;;  %v7808_v1 = vld [vmem:[%s10636_s8 + $0x38] sm:$0xff] }
0x364b   :  { %v7689_v7 = vmul.f32 %v7687_v3, %v7681_v27  ;;  %v7686_v14 = vmul.f32 0.044715, %v7676_v4  ;;  %v7684_v25 = vmul.f32 0.5, %v7676_v4 }
0x364d   :  { %v7691_v21 = vmul.f32 %v7689_v7, %v7681_v27  ;;  %v7688_v24 = vmul.f32 %v7686_v14, %v7676_v4  ;;  %v7860_v7 = vrot.slane %v7800_v39, %v9548_v56  ;;  %v8028_v56 = vld [vmem:[%s10637_s9 + $0x8] sm:$0xff] }
0x364f   :  { %v7693_v49 = vadd.f32 %v7691_v21, %v7681_v27  ;;  %v7690_v15 = vmul.f32 %v7688_v24, %v7676_v4 }
0x3651   :  { %v7692_v17 = vadd.f32 %v7690_v15, %v7676_v4  ;;  %v7695_v19 = vmul.f32 0.7978846, %v7693_v49  ;;  %v7805_v4 = vld [vmem:[%s10636_s8 + $0x20] sm:$0xff]  ;;  %v8030_v15 = vld [vmem:[%s10637_s9 + $0x18] sm:$0xff] }
0x3653   :  { %v7694_v12 = vmul.f32 0.7978846, %v7692_v17  ;;  %9359 = vtanh.f32 %v7695_v19  ;;  %v8029_v17 = vld [vmem:[%s10637_s9 + $0x10] sm:$0xff]  ;;  %v8027_v19 = vld [vmem:[%s10637_s9] sm:$0xff] }
0x3655   :  { %9361 = vtanh.f32 %v7694_v12  ;;  %v7941_v12 = vrot.slane %v7800_v39, %v9545_v55 }
0x3660   :  { %v9360_v13 = vpop.eup %9359 }
0x3661   :  { %v7699_v20 = vadd.f32 1.0, %v9360_v13 }
0x3662   :  { %v9362_v16 = vpop.eup %9361 }
0x3663   :  { %v7698_v23 = vadd.f32 1.0, %v9362_v16  ;;  %v7701_v29 = vmul.f32 %v7699_v20, %v7685_v63 }
0x3665   :  { %v7700_v28 = vmul.f32 %v7698_v23, %v7684_v25 }
0x3667   :  { %9165 = vmatprep.mubr.f32.mxu1 %v7700_v28 }
0x3668   :  { %9166 = vmatmul.mubr.f32.vlgmr.msra.gmra.mxu1 %v7701_v29 }
0x3728   :  { %v9167_v31 = vpop.f32.mrf.mxu1 }
0x3729   :  { %v7795_v52 = vadd.f32 %v9167_v31, %v8330_v30 }
0x372a   :  { %v7789_v32 = vpop.f32.mrf.mxu1 }
0x372b   :  { %v7799_v6 = vadd.f32 %v7795_v52, %v10465_v11  ;;  %v7790_v33 = vadd.f32 %v8330_v30, %v7789_v32 }
0x372d   :  { %v7811_v34 = vrot.slane %v7799_v6, 7  ;;  %v7798_v35 = vadd.f32 %v7790_v33, %v10467_v41  ;;  %v7804_v41 = vld [vmem:[%s10636_s8 + $0x18] sm:$0xff] }
0x372e   :  { %9169 = vmatpush3.msra.mxu0 %v7804_v41 }
0x372f   :  { %v7813_v36 = vsel %vm7812_vm6, %v7811_v34, %v7798_v35  ;;  %9170 = vmatprep.subr.mxu0 %v9393_v54 }
0x3730   :  { %v7816_v42 = vsel %vm7815_vm7, %v7813_v36, 0.0  ;;  %9171 = vmatpush3.msra.mxu0 %v7803_v37 }
0x3731   :  { %7817 = vadd.xlane.f32.xlu0 %v7816_v42  ;;  %9172 = vmatprep.subr.mxu0 %v9393_v54 }
0x3732   :  { %9173 = vmatpush3.msra.mxu0 %v7802_v22 }
0x3733   :  { %9174 = vmatprep.subr.mxu0 %v9393_v54 }
0x3734   :  { %9175 = vmatpush3.msra.mxu0 %v7801_v50 }
0x3735   :  { %9179 = vmatprep.subr.mxu0 %v9393_v54 }
0x37ba   :  { %v7818_v43 = vpop.xlane.xlu0 %7817 }
0x37bb   :  { %v7819_v44 = vmul.f32 0.03125, %v7818_v43 }
0x37bd   :  { %v7821_v9 = vrot.slane %v7819_v44, 1  ;;  %v7824_v45 = vsub.f32 %v7798_v35, %v7819_v44 }
0x37bf   :  { %v7825_v46 = vsub.f32 %v7799_v6, %v7821_v9  ;;  %v7826_v10 = vmul.f32 %v7824_v45, %v7824_v45 }
0x37c1   :  { %v7827_v47 = vmul.f32 %v7825_v46, %v7825_v46 }
0x37c3   :  { %v7830_v48 = vrot.slane %v7827_v47, 7 }
0x37c5   :  { %v7831_v11 = vsel %vm7812_vm6, %v7830_v48, %v7826_v10 }
0x37c6   :  { %v7833_v18 = vsel %vm7815_vm7, %v7831_v11, 0.0 }
0x37c7   :  { %7834 = vadd.xlane.f32.xlu1 %v7833_v18 }
0x3850   :  { %v7835_v51 = vpop.xlane.xlu1 %7834 }
0x3851   :  { %v7836_v53 = vmul.f32 0.03125, %v7835_v51 }
0x3853   :  { %v7837_v8 = vadd.f32 1e-06, %v7836_v53 }
0x3855   :  { %9363 = vrsqrt.f32 %v7837_v8 }
0x3862   :  { %v9364_v57 = vpop.eup %9363 }
0x3863   :  { %v7840_v62 = vrot.slane %v9364_v57, 1  ;;  %v7843_v2 = vmul.f32 %v9364_v57, %v7824_v45 }
0x3865   :  { %v7844_v58 = vmul.f32 %v7840_v62, %v7825_v46  ;;  %v7849_v59 = vmul.f32 %v7848_v5, %v7843_v2 }
0x3867   :  { %v7850_v26 = vmul.f32 %v7848_v5, %v7844_v58  ;;  %v7855_v0 = vadd.f32 %v7854_v60, %v7849_v59 }
0x3869   :  { %v7856_v61 = vadd.f32 %v7854_v60, %v7850_v26 }
0x386b   :  { %v7863_v27 = vrot.slane %v7856_v61, 7 }
0x386d   :  { %v7864_v3 = vsel %vm7812_vm6, %v7863_v27, %v7855_v0 }
0x386e   :  { %9177 = vmatmul.mubr.msk.f32.vlgmr.msra.gmra.mxu0 %vm68_vm1, %v7864_v3 }
0x386f   :  { %9180 = vmatpush3.msra.mxu0 %v7808_v1  ;;  %9187 = vmatprep.mubr.msk.f32.mxu0 %vm9394_vm2, %v9393_v54 }
0x3870   :  { %9181 = vmatprep.subr.mxu0 %v9393_v54 }
0x3871   :  { %9182 = vmatpush3.msra.mxu0 %v7807_v38 }
0x3872   :  { %9183 = vmatprep.subr.mxu0 %v9393_v54 }
0x3873   :  { %9184 = vmatpush3.msra.mxu0 %v7806_v40 }
0x3874   :  { %9185 = vmatprep.subr.mxu0 %v9393_v54 }
0x3875   :  { %9186 = vmatpush3.msra.mxu0 %v7805_v4 }
0x3876   :  { %9190 = vmatprep.subr.mxu0 %v9393_v54 }
0x392e   :  { %v7933_v14 = vpop.f32.mrf.mxu0 }
0x392f   :  { %v7934_v21 = vadd.f32 %v7933_v14, %v7860_v7 }
0x3930   :  { %v9178_v24 = vpop.f32.mrf.mxu0 }
0x3931   :  { %v7937_v49 = vmax.f32 %v7934_v21, 0.0 }
0x3933   :  { %9188 = vmatmul.mubr.msk.f32.vlgmr.msra.gmra.mxu0 %vm68_vm1, %v7937_v49 }
0x3934   :  { %9198 = vmatprep.mubr.msk.f32.mxu0 %vm9394_vm2, %v9393_v54  ;;  %9191 = vmatpush3.msra.mxu0 %v8030_v15 }
0x3935   :  { %9192 = vmatprep.subr.mxu0 %v9393_v54 }
0x3936   :  { %9193 = vmatpush3.msra.mxu0 %v8029_v17 }
0x3937   :  { %9194 = vmatprep.subr.mxu0 %v9393_v54 }
0x3938   :  { %9195 = vmatpush3.msra.mxu0 %v8028_v56 }
0x3939   :  { %9196 = vmatprep.subr.mxu0 %v9393_v54  ;;  %v8333_v54 = vld [vmem:[%s10637_s9 + $0x20] ss:$0 sm:$0xff] }
0x393a   :  { %9197 = vmatpush3.msra.mxu0 %v8027_v19 }
0x39f3   :  { %v8011_v13 = vpop.f32.mrf.mxu0 }
0x39f4   :  { %v8012_v16 = vadd.f32 %v8011_v13, %v7941_v12 }
0x39f5   :  { %v9189_v20 = vpop.f32.mrf.mxu0 }
0x39f6   :  { %v8015_v25 = vsub.f32 0.0, %v8012_v16 }
0x39f8   :  { %v8016_v23 = vmul.f32 1.442695, %v8015_v25 }
0x39fa   :  { %9365 = vpow2.f32 %v8016_v23 }
0x3a07   :  { %v9366_v63 = vpop.eup %9365 }
0x3a08   :  { %v8018_v28 = vadd.f32 1.0, %v9366_v63 }
0x3a0a   :  { %9367 = vrcp.f32 %v8018_v28 }
0x3a17   :  { %v9368_v29 = vpop.eup %9367 }
0x3a18   :  { %v8022_v30 = vrot.slane %v9368_v29, 1  ;;  %v8025_v52 = vmul.f32 %v9368_v29, %v7855_v0 }
0x3a1a   :  { %v8026_v31 = vmul.f32 %v8022_v30, %v7856_v61 }
0x3a1c   :  { %v8038_v32 = vrot.slane %v8026_v31, 7 }
0x3a1e   :  { %v8039_v6 = vsel %vm7812_vm6, %v8038_v32, %v8025_v52 }
0x3a1f   :  { %9199 = vmatmul.mubr.msk.f32.vlgmr.msra.gmra.mxu0 %vm68_vm1, %v8039_v6 }
0x3adf   :  { %v8108_v55 = vpop.f32.mrf.mxu0 }
0x3ae0   :  { %v8109_v33 = vadd.f32 %v8333_v54, %v8108_v55 }
0x3ae1   :  { %v9200_v34 = vpop.f32.mrf.mxu0 }
0x3ae2   :  { %8113 = vst.msk [vmem:[#allocation2] sm:$0x3] %vm8112_vm8, %v8109_v33 }
0x3ae3   :  { %9382 = shalt.err (!%p9379_p4)
}
0x3ae4   :  { %8123 = dma.vmem_to_hbm [thread:$0]  %s8121_s2, 32, %s10638_s10, [#allocation3]  }
0x3ae5   :  { %9391 = dma.done.wait [#allocation3], 32  }
0x3ae6   :  { %9392 = vsyncadd [#allocation3], 4294967264 }
0x3ae7   :  { %8127 = vsyncpa [#allocation3], 1 }

</bundles_post_ra>
